<compile_context>
chip_gen: v7x
topology: tpu7x:2x2x1
jax: 0.10.0
libtpu: 0.0.40
codegen_flags: <defaults>
</compile_context>

<pallas_src>
import jax
import jax.numpy as jnp
import numpy as np
from jax.experimental import pallas as pl
from jax.experimental.pallas import tpu as pltpu

BB = 8            # images per grid step (stacked onto the MXU M axis)
K = 5             # conv kernel size
PAD = 2           # conv padding
# lane-padded per-kh (or per-h for the FC) output block widths
N1, N2, N3, NF = 256, 128, 128, 128   # conv1 (16*12->256), conv2/3 (8*12->128), fc (10->128)


# ----------------------------------------------------------------------------- kernel
def _lenet_kernel(x_ref,
                  s1_ref, g1_ref, b1_ref,
                  s2_ref, g2_ref, b2_ref,
                  s3_ref, g3_ref, b3_ref,
                  sfc_ref, wfc_ref, bfc_ref,
                  o_ref):
    f32, bf16 = jnp.float32, jnp.bfloat16
    dot = lambda a, b: jnp.dot(a, b, preferred_element_type=f32)

    def tree_sum(parts):
        while len(parts) > 1:
            nxt = [parts[i] + parts[i + 1] for i in range(0, len(parts) - 1, 2)]
            if len(parts) % 2:
                nxt.append(parts[-1])
            parts = nxt
        return parts[0]

    def conv_layer(x_bf, s_ref, g_ref, b_ref, nblk):
        # x_bf: (BB*Hin, Cin_cols) bf16;  g: (Cin_cols, K*nblk) bf16;  s[kh]: (BB*Ho, BB*Hin).
        # One lane-wide matmul for all kernel rows, then K aligned-slice selections.
        y = dot(x_bf, g_ref[...]).astype(bf16)                              # (BB*Hin, K*nblk)
        parts = [dot(s_ref[kh], y[:, kh * nblk:(kh + 1) * nblk]) for kh in range(K)]
        z = tree_sum(parts) + b_ref[...]                                    # f32 (BB*Ho, nblk)
        return jax.nn.sigmoid(z).astype(bf16)

    x = x_ref[...]                                                          # (BB*32, 96) bf16
    h1 = conv_layer(x,  s1_ref, g1_ref, b1_ref, N1)                         # (BB*16, 256)
    h2 = conv_layer(h1, s2_ref, g2_ref, b2_ref, N2)                         # (BB*8, 128)
    h3 = conv_layer(h2, s3_ref, g3_ref, b3_ref, N3)                         # (BB*8, 128)

    # ---- fc: 768 -> 10, same select-and-sum idiom over the 8 feature-map rows per image.
    yf = dot(h3, wfc_ref[...]).astype(bf16)                                 # (BB*8, 8*NF)
    parts = [dot(sfc_ref[h], yf[:, h * NF:(h + 1) * NF]) for h in range(8)]
    logits = tree_sum(parts) + bfc_ref[...]                                 # (BB, 128) f32
    o_ref[...] = logits.astype(o_ref.dtype)


_CONST_NAMES = ("s1", "g1", "b1", "s2", "g2", "b2", "s3", "g3", "b3", "sfc", "wfc", "bfc")


def lenet_forward(consts, x_nchw):
    """Fused LeNet forward: x_nchw (B,3,32,32) -> logits (B,10)."""
    B, C, H, W = x_nchw.shape
    assert (C, H, W) == (3, 32, 32), x_nchw.shape
    b_pad = -(-B // BB) * BB
    n_steps = b_pad // BB

    # Wrapper-side layout plumbing (cheap, mem-bound, outside the kernel):
    # NCHW -> NHWC (H, W*C) slab, pad batch to a multiple of BB, stack batch on the M axis.
    x = jnp.transpose(x_nchw, (0, 2, 3, 1)).reshape(B, H, W * C)
    if b_pad != B:
        x = jnp.concatenate([x, jnp.zeros((b_pad - B, H, W * C), x.dtype)], axis=0)
    x = x.reshape(b_pad * H, W * C).astype(jnp.bfloat16)

    def const_spec(a):
        zeros = (0,) * a.ndim          # constant block index -> fetched to VMEM once
        return pl.BlockSpec(a.shape, lambda b, z=zeros: z)

    out = pl.pallas_call(
        _lenet_kernel,
        out_shape=jax.ShapeDtypeStruct((b_pad, 128), jnp.float32),
        grid=(n_steps,),
        in_specs=[pl.BlockSpec((BB * H, W * C), lambda b: (b, 0))]
                 + [const_spec(consts[k]) for k in _CONST_NAMES],
        out_specs=pl.BlockSpec((BB, 128), lambda b: (b, 0)),
        compiler_params=pltpu.CompilerParams(dimension_semantics=("parallel",)),
    )(x, *[consts[k] for k in _CONST_NAMES])
    return out[:B, :10].astype(x_nchw.dtype)


# ----------------------------------------------------------------------------- init-time lowering
def init_lenet_params(key, dtype=jnp.float32):
    """Parameters in the original PyTorch layouts: conv (Cout,Cin,KH,KW), fc (out,in)."""
    ks = jax.random.split(key, 8)
    norm = lambda k, s: 0.1 * jax.random.normal(k, s, dtype)
    return {
        "conv1_w": norm(ks[0], (12, 3, 5, 5)),  "conv1_b": norm(ks[1], (12,)),
        "conv2_w": norm(ks[2], (12, 12, 5, 5)), "conv2_b": norm(ks[3], (12,)),
        "conv3_w": norm(ks[4], (12, 12, 5, 5)), "conv3_b": norm(ks[5], (12,)),
        "fc_w":    norm(ks[6], (10, 768)),      "fc_b":    norm(ks[7], (10,)),
    }


def build_constants(params, dtype=jnp.bfloat16):
    """Host-side lowering of the PyTorch weights into block-diagonal S / concatenated G consts."""
    w1 = np.asarray(params["conv1_w"], np.float32); b1 = np.asarray(params["conv1_b"], np.float32)
    w2 = np.asarray(params["conv2_w"], np.float32); b2 = np.asarray(params["conv2_b"], np.float32)
    w3 = np.asarray(params["conv3_w"], np.float32); b3 = np.asarray(params["conv3_b"], np.float32)
    wf = np.asarray(params["fc_w"], np.float32);    bf = np.asarray(params["fc_b"], np.float32)

    def sel_bd(Ho, Hin, stride):
        # 0/1 row-selection (stride + H-padding folded in), block-diagonal over BB images.
        S = np.zeros((K, BB * Ho, BB * Hin), np.float32)
        for kh in range(K):
            for oh in range(Ho):
                h = stride * oh + kh - PAD
                if 0 <= h < Hin:
                    for b in range(BB):
                        S[kh, b * Ho + oh, b * Hin + h] = 1.0
        return S

    def gcat(w, Win, Wo, stride, in_cols, nblk):
        # Kernel-row-kh weight matrices (W-padding folded in), concatenated along columns
        # with each kh block lane-padded to nblk.  Rows: w_in*Cin + ci.  Cols: kh*nblk + ow*Cout + co.
        Cout, Cin, _, _ = w.shape
        G = np.zeros((in_cols, K * nblk), np.float32)
        for kh in range(K):
            for ow in range(Wo):
                for kw in range(K):
                    win = stride * ow + kw - PAD
                    if 0 <= win < Win:
                        for ci in range(Cin):
                            G[win * Cin + ci,
                              kh * nblk + ow * Cout: kh * nblk + (ow + 1) * Cout] = w[:, ci, kh, kw]
        return G

    def bias_row(b, Wo, nblk):
        r = np.zeros((1, nblk), np.float32)
        r[0, :Wo * b.shape[0]] = np.tile(b, Wo)
        return r

    s1 = sel_bd(16, 32, 2); g1 = gcat(w1, 32, 16, 2, 32 * 3, N1); b1r = bias_row(b1, 16, N1)
    s2 = sel_bd(8, 16, 2);  g2 = gcat(w2, 16, 8, 2, N1, N2);      b2r = bias_row(b2, 8, N2)
    s3 = sel_bd(8, 8, 1);   g3 = gcat(w3, 8, 8, 1, N2, N3);       b3r = bias_row(b3, 8, N3)

    # FC: fold PyTorch's NCHW flatten (index c*64 + h*8 + w) and the (out,in) transpose.
    # Column blocks per feature-map row h (lane-padded to NF); padded rows/cols are zero so the
    # junk columns of h3 (sigmoid(0)=0.5) never contribute.
    wfc = np.zeros((N3, 8 * NF), np.float32)
    for h in range(8):
        for w in range(8):
            for c in range(12):
                wfc[w * 12 + c, h * NF: h * NF + 10] = wf[:, c * 64 + h * 8 + w]
    sfc = np.zeros((8, BB, BB * 8), np.float32)
    for h in range(8):
        for b in range(BB):
            sfc[h, b, b * 8 + h] = 1.0
    bfcr = np.zeros((1, NF), np.float32); bfcr[0, :10] = bf

    to = lambda a: jnp.asarray(a, dtype)          # matmul constants: bf16 (S is 0/1, exact)
    to32 = lambda a: jnp.asarray(a, jnp.float32)  # biases stay f32 (added to f32 accumulators)
    return {"s1": to(s1), "g1": to(g1), "b1": to32(b1r),
            "s2": to(s2), "g2": to(g2), "b2": to32(b2r),
            "s3": to(s3), "g3": to(g3), "b3": to32(b3r),
            "sfc": to(sfc), "wfc": to(wfc), "bfc": to32(bfcr)}


# ----------------------------------------------------------------------------- reference
def lenet_reference(params, x_nchw):
    def conv(x, w, b, stride):
        y = jax.lax.conv_general_dilated(
            x, w, window_strides=(stride, stride), padding=((2, 2), (2, 2)),
            dimension_numbers=("NCHW", "OIHW", "NCHW"),
            precision=jax.lax.Precision.HIGHEST)
        return jax.nn.sigmoid(y + b[None, :, None, None])

    x = conv(x_nchw, params["conv1_w"], params["conv1_b"], 2)
    x = conv(x, params["conv2_w"], params["conv2_b"], 2)
    x = conv(x, params["conv3_w"], params["conv3_b"], 1)
    x = x.reshape(x.shape[0], -1)                          # PyTorch NCHW flatten
    return jnp.dot(x, params["fc_w"].T,
                   precision=jax.lax.Precision.HIGHEST) + params["fc_b"]


# ----------------------------------------------------------------------------- main
if __name__ == "__main__":
    key = jax.random.PRNGKey(0)
    pkey, xkey = jax.random.split(key)
    params = init_lenet_params(pkey)
    consts = build_constants(params)   # init-time layout plumbing (host-side numpy)

    # Linear(768, 10) implies 32x32 inputs (12 * 8 * 8 = 768 features).
    # B=10 exercises both batch padding (10 -> 16) and a multi-step grid (2 steps of BB=8).
    x = jax.random.normal(xkey, (10, 3, 32, 32), jnp.float32)

    fwd = jax.jit(lenet_forward)
    out = jax.block_until_ready(fwd(consts, x))
    assert out.shape == (10, 10), out.shape

    ref = lenet_reference(params, x)
    np.testing.assert_allclose(np.asarray(out), np.asarray(ref), atol=1e-2, rtol=1e-2)

    print("KERNEL_OK")
</pallas_src>

<mosaic_0001>
module attributes {stable_mosaic.version = 11 : i64} {
  func.func @_lenet_kernel(%arg0: i32, %arg1: memref<256x96xbf16, #tpu.memory_space<vmem>>, %arg2: memref<5x128x256xbf16, #tpu.memory_space<vmem>>, %arg3: memref<96x1280xbf16, #tpu.memory_space<vmem>>, %arg4: memref<1x256xf32, #tpu.memory_space<vmem>>, %arg5: memref<5x64x128xbf16, #tpu.memory_space<vmem>>, %arg6: memref<256x640xbf16, #tpu.memory_space<vmem>>, %arg7: memref<1x128xf32, #tpu.memory_space<vmem>>, %arg8: memref<5x64x64xbf16, #tpu.memory_space<vmem>>, %arg9: memref<128x640xbf16, #tpu.memory_space<vmem>>, %arg10: memref<1x128xf32, #tpu.memory_space<vmem>>, %arg11: memref<8x8x64xbf16, #tpu.memory_space<vmem>>, %arg12: memref<128x1024xbf16, #tpu.memory_space<vmem>>, %arg13: memref<1x128xf32, #tpu.memory_space<vmem>>, %arg14: memref<8x128xf32, #tpu.memory_space<vmem>>) attributes {dimension_semantics = [#tpu.dimension_semantics<parallel>], iteration_bounds = array<i64: 2>, scalar_prefetch = 0 : i64, scratch_operands = 0 : i64, tpu.core_type = #tpu.core_type<tc>, window_params = [{transform_indices = @transform_0, window_bounds = array<i64: 256, 96>}, {pipeline_mode = #tpu.pipeline_mode<synchronous>, transform_indices = @transform_1, window_bounds = array<i64: 5, 128, 256>}, {pipeline_mode = #tpu.pipeline_mode<synchronous>, transform_indices = @transform_2, window_bounds = array<i64: 96, 1280>}, {pipeline_mode = #tpu.pipeline_mode<synchronous>, transform_indices = @transform_3, window_bounds = array<i64: 1, 256>}, {pipeline_mode = #tpu.pipeline_mode<synchronous>, transform_indices = @transform_4, window_bounds = array<i64: 5, 64, 128>}, {pipeline_mode = #tpu.pipeline_mode<synchronous>, transform_indices = @transform_5, window_bounds = array<i64: 256, 640>}, {pipeline_mode = #tpu.pipeline_mode<synchronous>, transform_indices = @transform_6, window_bounds = array<i64: 1, 128>}, {pipeline_mode = #tpu.pipeline_mode<synchronous>, transform_indices = @transform_7, window_bounds = array<i64: 5, 64, 64>}, {pipeline_mode = #tpu.pipeline_mode<synchronous>, transform_indices = @transform_8, window_bounds = array<i64: 128, 640>}, {pipeline_mode = #tpu.pipeline_mode<synchronous>, transform_indices = @transform_9, window_bounds = array<i64: 1, 128>}, {pipeline_mode = #tpu.pipeline_mode<synchronous>, transform_indices = @transform_10, window_bounds = array<i64: 8, 8, 64>}, {pipeline_mode = #tpu.pipeline_mode<synchronous>, transform_indices = @transform_11, window_bounds = array<i64: 128, 1024>}, {pipeline_mode = #tpu.pipeline_mode<synchronous>, transform_indices = @transform_12, window_bounds = array<i64: 1, 128>}, {transform_indices = @transform_13, window_bounds = array<i64: 8, 128>}]} {
    %c0 = arith.constant 0 : index
    %c0_0 = arith.constant 0 : index
    %0 = vector.load %arg1[%c0, %c0_0] : memref<256x96xbf16, #tpu.memory_space<vmem>>, vector<256x96xbf16>
    %c0_1 = arith.constant 0 : index
    %c0_2 = arith.constant 0 : index
    %1 = vector.load %arg3[%c0_1, %c0_2] : memref<96x1280xbf16, #tpu.memory_space<vmem>>, vector<96x1280xbf16>
    %cst = arith.constant dense<0.000000e+00> : vector<256x1280xf32>
    %2 = tpu.matmul %0, %1, %cst {dimension_numbers = #tpu.dot_dimension_numbers<[1], [0], [0], [1], [0, 0, 1, 1], [], []>} : vector<256x96xbf16>, vector<96x1280xbf16>, vector<256x1280xf32> -> vector<256x1280xf32>
    %3 = arith.truncf %2 : vector<256x1280xf32> to vector<256x1280xbf16>
    %c0_3 = arith.constant 0 : index
    %c0_4 = arith.constant 0 : index
    %c0_5 = arith.constant 0 : index
    %4 = vector.load %arg2[%c0_3, %c0_4, %c0_5] : memref<5x128x256xbf16, #tpu.memory_space<vmem>>, vector<1x128x256xbf16>
    %5 = vector.shape_cast %4 : vector<1x128x256xbf16> to vector<128x256xbf16>
    %6 = vector.extract_strided_slice %3 {offsets = [0, 0], sizes = [256, 256], strides = [1, 1]} : vector<256x1280xbf16> to vector<256x256xbf16>
    %cst_6 = arith.constant dense<0.000000e+00> : vector<128x256xf32>
    %7 = tpu.matmul %5, %6, %cst_6 {dimension_numbers = #tpu.dot_dimension_numbers<[1], [0], [0], [1], [0, 0, 1, 1], [], []>} : vector<128x256xbf16>, vector<256x256xbf16>, vector<128x256xf32> -> vector<128x256xf32>
    %c1 = arith.constant 1 : index
    %c0_7 = arith.constant 0 : index
    %c0_8 = arith.constant 0 : index
    %8 = vector.load %arg2[%c1, %c0_7, %c0_8] : memref<5x128x256xbf16, #tpu.memory_space<vmem>>, vector<1x128x256xbf16>
    %9 = vector.shape_cast %8 : vector<1x128x256xbf16> to vector<128x256xbf16>
    %10 = vector.extract_strided_slice %3 {offsets = [0, 256], sizes = [256, 256], strides = [1, 1]} : vector<256x1280xbf16> to vector<256x256xbf16>
    %cst_9 = arith.constant dense<0.000000e+00> : vector<128x256xf32>
    %11 = tpu.matmul %9, %10, %cst_9 {dimension_numbers = #tpu.dot_dimension_numbers<[1], [0], [0], [1], [0, 0, 1, 1], [], []>} : vector<128x256xbf16>, vector<256x256xbf16>, vector<128x256xf32> -> vector<128x256xf32>
    %c2 = arith.constant 2 : index
    %c0_10 = arith.constant 0 : index
    %c0_11 = arith.constant 0 : index
    %12 = vector.load %arg2[%c2, %c0_10, %c0_11] : memref<5x128x256xbf16, #tpu.memory_space<vmem>>, vector<1x128x256xbf16>
    %13 = vector.shape_cast %12 : vector<1x128x256xbf16> to vector<128x256xbf16>
    %14 = vector.extract_strided_slice %3 {offsets = [0, 512], sizes = [256, 256], strides = [1, 1]} : vector<256x1280xbf16> to vector<256x256xbf16>
    %cst_12 = arith.constant dense<0.000000e+00> : vector<128x256xf32>
    %15 = tpu.matmul %13, %14, %cst_12 {dimension_numbers = #tpu.dot_dimension_numbers<[1], [0], [0], [1], [0, 0, 1, 1], [], []>} : vector<128x256xbf16>, vector<256x256xbf16>, vector<128x256xf32> -> vector<128x256xf32>
    %c3 = arith.constant 3 : index
    %c0_13 = arith.constant 0 : index
    %c0_14 = arith.constant 0 : index
    %16 = vector.load %arg2[%c3, %c0_13, %c0_14] : memref<5x128x256xbf16, #tpu.memory_space<vmem>>, vector<1x128x256xbf16>
    %17 = vector.shape_cast %16 : vector<1x128x256xbf16> to vector<128x256xbf16>
    %18 = vector.extract_strided_slice %3 {offsets = [0, 768], sizes = [256, 256], strides = [1, 1]} : vector<256x1280xbf16> to vector<256x256xbf16>
    %cst_15 = arith.constant dense<0.000000e+00> : vector<128x256xf32>
    %19 = tpu.matmul %17, %18, %cst_15 {dimension_numbers = #tpu.dot_dimension_numbers<[1], [0], [0], [1], [0, 0, 1, 1], [], []>} : vector<128x256xbf16>, vector<256x256xbf16>, vector<128x256xf32> -> vector<128x256xf32>
    %c4 = arith.constant 4 : index
    %c0_16 = arith.constant 0 : index
    %c0_17 = arith.constant 0 : index
    %20 = vector.load %arg2[%c4, %c0_16, %c0_17] : memref<5x128x256xbf16, #tpu.memory_space<vmem>>, vector<1x128x256xbf16>
    %21 = vector.shape_cast %20 : vector<1x128x256xbf16> to vector<128x256xbf16>
    %22 = vector.extract_strided_slice %3 {offsets = [0, 1024], sizes = [256, 256], strides = [1, 1]} : vector<256x1280xbf16> to vector<256x256xbf16>
    %cst_18 = arith.constant dense<0.000000e+00> : vector<128x256xf32>
    %23 = tpu.matmul %21, %22, %cst_18 {dimension_numbers = #tpu.dot_dimension_numbers<[1], [0], [0], [1], [0, 0, 1, 1], [], []>} : vector<128x256xbf16>, vector<256x256xbf16>, vector<128x256xf32> -> vector<128x256xf32>
    %24 = arith.addf %7, %11 : vector<128x256xf32>
    %25 = arith.addf %15, %19 : vector<128x256xf32>
    %26 = arith.addf %24, %25 : vector<128x256xf32>
    %27 = arith.addf %26, %23 : vector<128x256xf32>
    %c0_19 = arith.constant 0 : index
    %c0_20 = arith.constant 0 : index
    %28 = vector.load %arg4[%c0_19, %c0_20] : memref<1x256xf32, #tpu.memory_space<vmem>>, vector<1x256xf32>
    %29 = vector.broadcast %28 : vector<1x256xf32> to vector<128x256xf32>
    %30 = arith.addf %27, %29 : vector<128x256xf32>
    %31 = arith.negf %30 : vector<128x256xf32>
    %32 = math.exp %31 : vector<128x256xf32>
    %cst_21 = arith.constant 1.000000e+00 : f32
    %33 = vector.broadcast %cst_21 : f32 to vector<128x256xf32>
    %34 = arith.addf %33, %32 : vector<128x256xf32>
    %35 = arith.divf %33, %34 : vector<128x256xf32>
    %36 = arith.truncf %35 : vector<128x256xf32> to vector<128x256xbf16>
    %c0_22 = arith.constant 0 : index
    %c0_23 = arith.constant 0 : index
    %37 = vector.load %arg6[%c0_22, %c0_23] : memref<256x640xbf16, #tpu.memory_space<vmem>>, vector<256x640xbf16>
    %cst_24 = arith.constant dense<0.000000e+00> : vector<128x640xf32>
    %38 = tpu.matmul %36, %37, %cst_24 {dimension_numbers = #tpu.dot_dimension_numbers<[1], [0], [0], [1], [0, 0, 1, 1], [], []>} : vector<128x256xbf16>, vector<256x640xbf16>, vector<128x640xf32> -> vector<128x640xf32>
    %39 = arith.truncf %38 : vector<128x640xf32> to vector<128x640xbf16>
    %c0_25 = arith.constant 0 : index
    %c0_26 = arith.constant 0 : index
    %c0_27 = arith.constant 0 : index
    %40 = vector.load %arg5[%c0_25, %c0_26, %c0_27] : memref<5x64x128xbf16, #tpu.memory_space<vmem>>, vector<1x64x128xbf16>
    %41 = vector.shape_cast %40 : vector<1x64x128xbf16> to vector<64x128xbf16>
    %42 = vector.extract_strided_slice %39 {offsets = [0, 0], sizes = [128, 128], strides = [1, 1]} : vector<128x640xbf16> to vector<128x128xbf16>
    %cst_28 = arith.constant dense<0.000000e+00> : vector<64x128xf32>
    %43 = tpu.matmul %41, %42, %cst_28 {dimension_numbers = #tpu.dot_dimension_numbers<[1], [0], [0], [1], [0, 0, 1, 1], [], []>} : vector<64x128xbf16>, vector<128x128xbf16>, vector<64x128xf32> -> vector<64x128xf32>
    %c1_29 = arith.constant 1 : index
    %c0_30 = arith.constant 0 : index
    %c0_31 = arith.constant 0 : index
    %44 = vector.load %arg5[%c1_29, %c0_30, %c0_31] : memref<5x64x128xbf16, #tpu.memory_space<vmem>>, vector<1x64x128xbf16>
    %45 = vector.shape_cast %44 : vector<1x64x128xbf16> to vector<64x128xbf16>
    %46 = vector.extract_strided_slice %39 {offsets = [0, 128], sizes = [128, 128], strides = [1, 1]} : vector<128x640xbf16> to vector<128x128xbf16>
    %cst_32 = arith.constant dense<0.000000e+00> : vector<64x128xf32>
    %47 = tpu.matmul %45, %46, %cst_32 {dimension_numbers = #tpu.dot_dimension_numbers<[1], [0], [0], [1], [0, 0, 1, 1], [], []>} : vector<64x128xbf16>, vector<128x128xbf16>, vector<64x128xf32> -> vector<64x128xf32>
    %c2_33 = arith.constant 2 : index
    %c0_34 = arith.constant 0 : index
    %c0_35 = arith.constant 0 : index
    %48 = vector.load %arg5[%c2_33, %c0_34, %c0_35] : memref<5x64x128xbf16, #tpu.memory_space<vmem>>, vector<1x64x128xbf16>
    %49 = vector.shape_cast %48 : vector<1x64x128xbf16> to vector<64x128xbf16>
    %50 = vector.extract_strided_slice %39 {offsets = [0, 256], sizes = [128, 128], strides = [1, 1]} : vector<128x640xbf16> to vector<128x128xbf16>
    %cst_36 = arith.constant dense<0.000000e+00> : vector<64x128xf32>
    %51 = tpu.matmul %49, %50, %cst_36 {dimension_numbers = #tpu.dot_dimension_numbers<[1], [0], [0], [1], [0, 0, 1, 1], [], []>} : vector<64x128xbf16>, vector<128x128xbf16>, vector<64x128xf32> -> vector<64x128xf32>
    %c3_37 = arith.constant 3 : index
    %c0_38 = arith.constant 0 : index
    %c0_39 = arith.constant 0 : index
    %52 = vector.load %arg5[%c3_37, %c0_38, %c0_39] : memref<5x64x128xbf16, #tpu.memory_space<vmem>>, vector<1x64x128xbf16>
    %53 = vector.shape_cast %52 : vector<1x64x128xbf16> to vector<64x128xbf16>
    %54 = vector.extract_strided_slice %39 {offsets = [0, 384], sizes = [128, 128], strides = [1, 1]} : vector<128x640xbf16> to vector<128x128xbf16>
    %cst_40 = arith.constant dense<0.000000e+00> : vector<64x128xf32>
    %55 = tpu.matmul %53, %54, %cst_40 {dimension_numbers = #tpu.dot_dimension_numbers<[1], [0], [0], [1], [0, 0, 1, 1], [], []>} : vector<64x128xbf16>, vector<128x128xbf16>, vector<64x128xf32> -> vector<64x128xf32>
    %c4_41 = arith.constant 4 : index
    %c0_42 = arith.constant 0 : index
    %c0_43 = arith.constant 0 : index
    %56 = vector.load %arg5[%c4_41, %c0_42, %c0_43] : memref<5x64x128xbf16, #tpu.memory_space<vmem>>, vector<1x64x128xbf16>
    %57 = vector.shape_cast %56 : vector<1x64x128xbf16> to vector<64x128xbf16>
    %58 = vector.extract_strided_slice %39 {offsets = [0, 512], sizes = [128, 128], strides = [1, 1]} : vector<128x640xbf16> to vector<128x128xbf16>
    %cst_44 = arith.constant dense<0.000000e+00> : vector<64x128xf32>
    %59 = tpu.matmul %57, %58, %cst_44 {dimension_numbers = #tpu.dot_dimension_numbers<[1], [0], [0], [1], [0, 0, 1, 1], [], []>} : vector<64x128xbf16>, vector<128x128xbf16>, vector<64x128xf32> -> vector<64x128xf32>
    %60 = arith.addf %43, %47 : vector<64x128xf32>
    %61 = arith.addf %51, %55 : vector<64x128xf32>
    %62 = arith.addf %60, %61 : vector<64x128xf32>
    %63 = arith.addf %62, %59 : vector<64x128xf32>
    %c0_45 = arith.constant 0 : index
    %c0_46 = arith.constant 0 : index
    %64 = vector.load %arg7[%c0_45, %c0_46] : memref<1x128xf32, #tpu.memory_space<vmem>>, vector<1x128xf32>
    %65 = vector.broadcast %64 : vector<1x128xf32> to vector<64x128xf32>
    %66 = arith.addf %63, %65 : vector<64x128xf32>
    %67 = arith.negf %66 : vector<64x128xf32>
    %68 = math.exp %67 : vector<64x128xf32>
    %cst_47 = arith.constant 1.000000e+00 : f32
    %69 = vector.broadcast %cst_47 : f32 to vector<64x128xf32>
    %70 = arith.addf %69, %68 : vector<64x128xf32>
    %71 = arith.divf %69, %70 : vector<64x128xf32>
    %72 = arith.truncf %71 : vector<64x128xf32> to vector<64x128xbf16>
    %c0_48 = arith.constant 0 : index
    %c0_49 = arith.constant 0 : index
    %73 = vector.load %arg9[%c0_48, %c0_49] : memref<128x640xbf16, #tpu.memory_space<vmem>>, vector<128x640xbf16>
    %cst_50 = arith.constant dense<0.000000e+00> : vector<64x640xf32>
    %74 = tpu.matmul %72, %73, %cst_50 {dimension_numbers = #tpu.dot_dimension_numbers<[1], [0], [0], [1], [0, 0, 1, 1], [], []>} : vector<64x128xbf16>, vector<128x640xbf16>, vector<64x640xf32> -> vector<64x640xf32>
    %75 = arith.truncf %74 : vector<64x640xf32> to vector<64x640xbf16>
    %c0_51 = arith.constant 0 : index
    %c0_52 = arith.constant 0 : index
    %c0_53 = arith.constant 0 : index
    %76 = vector.load %arg8[%c0_51, %c0_52, %c0_53] : memref<5x64x64xbf16, #tpu.memory_space<vmem>>, vector<1x64x64xbf16>
    %77 = vector.shape_cast %76 : vector<1x64x64xbf16> to vector<64x64xbf16>
    %78 = vector.extract_strided_slice %75 {offsets = [0, 0], sizes = [64, 128], strides = [1, 1]} : vector<64x640xbf16> to vector<64x128xbf16>
    %cst_54 = arith.constant dense<0.000000e+00> : vector<64x128xf32>
    %79 = tpu.matmul %77, %78, %cst_54 {dimension_numbers = #tpu.dot_dimension_numbers<[1], [0], [0], [1], [0, 0, 1, 1], [], []>} : vector<64x64xbf16>, vector<64x128xbf16>, vector<64x128xf32> -> vector<64x128xf32>
    %c1_55 = arith.constant 1 : index
    %c0_56 = arith.constant 0 : index
    %c0_57 = arith.constant 0 : index
    %80 = vector.load %arg8[%c1_55, %c0_56, %c0_57] : memref<5x64x64xbf16, #tpu.memory_space<vmem>>, vector<1x64x64xbf16>
    %81 = vector.shape_cast %80 : vector<1x64x64xbf16> to vector<64x64xbf16>
    %82 = vector.extract_strided_slice %75 {offsets = [0, 128], sizes = [64, 128], strides = [1, 1]} : vector<64x640xbf16> to vector<64x128xbf16>
    %cst_58 = arith.constant dense<0.000000e+00> : vector<64x128xf32>
    %83 = tpu.matmul %81, %82, %cst_58 {dimension_numbers = #tpu.dot_dimension_numbers<[1], [0], [0], [1], [0, 0, 1, 1], [], []>} : vector<64x64xbf16>, vector<64x128xbf16>, vector<64x128xf32> -> vector<64x128xf32>
    %c2_59 = arith.constant 2 : index
    %c0_60 = arith.constant 0 : index
    %c0_61 = arith.constant 0 : index
    %84 = vector.load %arg8[%c2_59, %c0_60, %c0_61] : memref<5x64x64xbf16, #tpu.memory_space<vmem>>, vector<1x64x64xbf16>
    %85 = vector.shape_cast %84 : vector<1x64x64xbf16> to vector<64x64xbf16>
    %86 = vector.extract_strided_slice %75 {offsets = [0, 256], sizes = [64, 128], strides = [1, 1]} : vector<64x640xbf16> to vector<64x128xbf16>
    %cst_62 = arith.constant dense<0.000000e+00> : vector<64x128xf32>
    %87 = tpu.matmul %85, %86, %cst_62 {dimension_numbers = #tpu.dot_dimension_numbers<[1], [0], [0], [1], [0, 0, 1, 1], [], []>} : vector<64x64xbf16>, vector<64x128xbf16>, vector<64x128xf32> -> vector<64x128xf32>
    %c3_63 = arith.constant 3 : index
    %c0_64 = arith.constant 0 : index
    %c0_65 = arith.constant 0 : index
    %88 = vector.load %arg8[%c3_63, %c0_64, %c0_65] : memref<5x64x64xbf16, #tpu.memory_space<vmem>>, vector<1x64x64xbf16>
    %89 = vector.shape_cast %88 : vector<1x64x64xbf16> to vector<64x64xbf16>
    %90 = vector.extract_strided_slice %75 {offsets = [0, 384], sizes = [64, 128], strides = [1, 1]} : vector<64x640xbf16> to vector<64x128xbf16>
    %cst_66 = arith.constant dense<0.000000e+00> : vector<64x128xf32>
    %91 = tpu.matmul %89, %90, %cst_66 {dimension_numbers = #tpu.dot_dimension_numbers<[1], [0], [0], [1], [0, 0, 1, 1], [], []>} : vector<64x64xbf16>, vector<64x128xbf16>, vector<64x128xf32> -> vector<64x128xf32>
    %c4_67 = arith.constant 4 : index
    %c0_68 = arith.constant 0 : index
    %c0_69 = arith.constant 0 : index
    %92 = vector.load %arg8[%c4_67, %c0_68, %c0_69] : memref<5x64x64xbf16, #tpu.memory_space<vmem>>, vector<1x64x64xbf16>
    %93 = vector.shape_cast %92 : vector<1x64x64xbf16> to vector<64x64xbf16>
    %94 = vector.extract_strided_slice %75 {offsets = [0, 512], sizes = [64, 128], strides = [1, 1]} : vector<64x640xbf16> to vector<64x128xbf16>
    %cst_70 = arith.constant dense<0.000000e+00> : vector<64x128xf32>
    %95 = tpu.matmul %93, %94, %cst_70 {dimension_numbers = #tpu.dot_dimension_numbers<[1], [0], [0], [1], [0, 0, 1, 1], [], []>} : vector<64x64xbf16>, vector<64x128xbf16>, vector<64x128xf32> -> vector<64x128xf32>
    %96 = arith.addf %79, %83 : vector<64x128xf32>
    %97 = arith.addf %87, %91 : vector<64x128xf32>
    %98 = arith.addf %96, %97 : vector<64x128xf32>
    %99 = arith.addf %98, %95 : vector<64x128xf32>
    %c0_71 = arith.constant 0 : index
    %c0_72 = arith.constant 0 : index
    %100 = vector.load %arg10[%c0_71, %c0_72] : memref<1x128xf32, #tpu.memory_space<vmem>>, vector<1x128xf32>
    %101 = vector.broadcast %100 : vector<1x128xf32> to vector<64x128xf32>
    %102 = arith.addf %99, %101 : vector<64x128xf32>
    %103 = arith.negf %102 : vector<64x128xf32>
    %104 = math.exp %103 : vector<64x128xf32>
    %cst_73 = arith.constant 1.000000e+00 : f32
    %105 = vector.broadcast %cst_73 : f32 to vector<64x128xf32>
    %106 = arith.addf %105, %104 : vector<64x128xf32>
    %107 = arith.divf %105, %106 : vector<64x128xf32>
    %108 = arith.truncf %107 : vector<64x128xf32> to vector<64x128xbf16>
    %c0_74 = arith.constant 0 : index
    %c0_75 = arith.constant 0 : index
    %109 = vector.load %arg12[%c0_74, %c0_75] : memref<128x1024xbf16, #tpu.memory_space<vmem>>, vector<128x1024xbf16>
    %cst_76 = arith.constant dense<0.000000e+00> : vector<64x1024xf32>
    %110 = tpu.matmul %108, %109, %cst_76 {dimension_numbers = #tpu.dot_dimension_numbers<[1], [0], [0], [1], [0, 0, 1, 1], [], []>} : vector<64x128xbf16>, vector<128x1024xbf16>, vector<64x1024xf32> -> vector<64x1024xf32>
    %111 = arith.truncf %110 : vector<64x1024xf32> to vector<64x1024xbf16>
    %c0_77 = arith.constant 0 : index
    %c0_78 = arith.constant 0 : index
    %c0_79 = arith.constant 0 : index
    %112 = vector.load %arg11[%c0_77, %c0_78, %c0_79] : memref<8x8x64xbf16, #tpu.memory_space<vmem>>, vector<1x8x64xbf16>
    %113 = vector.shape_cast %112 : vector<1x8x64xbf16> to vector<8x64xbf16>
    %114 = vector.extract_strided_slice %111 {offsets = [0, 0], sizes = [64, 128], strides = [1, 1]} : vector<64x1024xbf16> to vector<64x128xbf16>
    %cst_80 = arith.constant dense<0.000000e+00> : vector<8x128xf32>
    %115 = tpu.matmul %113, %114, %cst_80 {dimension_numbers = #tpu.dot_dimension_numbers<[1], [0], [0], [1], [0, 0, 1, 1], [], []>} : vector<8x64xbf16>, vector<64x128xbf16>, vector<8x128xf32> -> vector<8x128xf32>
    %c1_81 = arith.constant 1 : index
    %c0_82 = arith.constant 0 : index
    %c0_83 = arith.constant 0 : index
    %116 = vector.load %arg11[%c1_81, %c0_82, %c0_83] : memref<8x8x64xbf16, #tpu.memory_space<vmem>>, vector<1x8x64xbf16>
    %117 = vector.shape_cast %116 : vector<1x8x64xbf16> to vector<8x64xbf16>
    %118 = vector.extract_strided_slice %111 {offsets = [0, 128], sizes = [64, 128], strides = [1, 1]} : vector<64x1024xbf16> to vector<64x128xbf16>
    %cst_84 = arith.constant dense<0.000000e+00> : vector<8x128xf32>
    %119 = tpu.matmul %117, %118, %cst_84 {dimension_numbers = #tpu.dot_dimension_numbers<[1], [0], [0], [1], [0, 0, 1, 1], [], []>} : vector<8x64xbf16>, vector<64x128xbf16>, vector<8x128xf32> -> vector<8x128xf32>
    %c2_85 = arith.constant 2 : index
    %c0_86 = arith.constant 0 : index
    %c0_87 = arith.constant 0 : index
    %120 = vector.load %arg11[%c2_85, %c0_86, %c0_87] : memref<8x8x64xbf16, #tpu.memory_space<vmem>>, vector<1x8x64xbf16>
    %121 = vector.shape_cast %120 : vector<1x8x64xbf16> to vector<8x64xbf16>
    %122 = vector.extract_strided_slice %111 {offsets = [0, 256], sizes = [64, 128], strides = [1, 1]} : vector<64x1024xbf16> to vector<64x128xbf16>
    %cst_88 = arith.constant dense<0.000000e+00> : vector<8x128xf32>
    %123 = tpu.matmul %121, %122, %cst_88 {dimension_numbers = #tpu.dot_dimension_numbers<[1], [0], [0], [1], [0, 0, 1, 1], [], []>} : vector<8x64xbf16>, vector<64x128xbf16>, vector<8x128xf32> -> vector<8x128xf32>
    %c3_89 = arith.constant 3 : index
    %c0_90 = arith.constant 0 : index
    %c0_91 = arith.constant 0 : index
    %124 = vector.load %arg11[%c3_89, %c0_90, %c0_91] : memref<8x8x64xbf16, #tpu.memory_space<vmem>>, vector<1x8x64xbf16>
    %125 = vector.shape_cast %124 : vector<1x8x64xbf16> to vector<8x64xbf16>
    %126 = vector.extract_strided_slice %111 {offsets = [0, 384], sizes = [64, 128], strides = [1, 1]} : vector<64x1024xbf16> to vector<64x128xbf16>
    %cst_92 = arith.constant dense<0.000000e+00> : vector<8x128xf32>
    %127 = tpu.matmul %125, %126, %cst_92 {dimension_numbers = #tpu.dot_dimension_numbers<[1], [0], [0], [1], [0, 0, 1, 1], [], []>} : vector<8x64xbf16>, vector<64x128xbf16>, vector<8x128xf32> -> vector<8x128xf32>
    %c4_93 = arith.constant 4 : index
    %c0_94 = arith.constant 0 : index
    %c0_95 = arith.constant 0 : index
    %128 = vector.load %arg11[%c4_93, %c0_94, %c0_95] : memref<8x8x64xbf16, #tpu.memory_space<vmem>>, vector<1x8x64xbf16>
    %129 = vector.shape_cast %128 : vector<1x8x64xbf16> to vector<8x64xbf16>
    %130 = vector.extract_strided_slice %111 {offsets = [0, 512], sizes = [64, 128], strides = [1, 1]} : vector<64x1024xbf16> to vector<64x128xbf16>
    %cst_96 = arith.constant dense<0.000000e+00> : vector<8x128xf32>
    %131 = tpu.matmul %129, %130, %cst_96 {dimension_numbers = #tpu.dot_dimension_numbers<[1], [0], [0], [1], [0, 0, 1, 1], [], []>} : vector<8x64xbf16>, vector<64x128xbf16>, vector<8x128xf32> -> vector<8x128xf32>
    %c5 = arith.constant 5 : index
    %c0_97 = arith.constant 0 : index
    %c0_98 = arith.constant 0 : index
    %132 = vector.load %arg11[%c5, %c0_97, %c0_98] : memref<8x8x64xbf16, #tpu.memory_space<vmem>>, vector<1x8x64xbf16>
    %133 = vector.shape_cast %132 : vector<1x8x64xbf16> to vector<8x64xbf16>
    %134 = vector.extract_strided_slice %111 {offsets = [0, 640], sizes = [64, 128], strides = [1, 1]} : vector<64x1024xbf16> to vector<64x128xbf16>
    %cst_99 = arith.constant dense<0.000000e+00> : vector<8x128xf32>
    %135 = tpu.matmul %133, %134, %cst_99 {dimension_numbers = #tpu.dot_dimension_numbers<[1], [0], [0], [1], [0, 0, 1, 1], [], []>} : vector<8x64xbf16>, vector<64x128xbf16>, vector<8x128xf32> -> vector<8x128xf32>
    %c6 = arith.constant 6 : index
    %c0_100 = arith.constant 0 : index
    %c0_101 = arith.constant 0 : index
    %136 = vector.load %arg11[%c6, %c0_100, %c0_101] : memref<8x8x64xbf16, #tpu.memory_space<vmem>>, vector<1x8x64xbf16>
    %137 = vector.shape_cast %136 : vector<1x8x64xbf16> to vector<8x64xbf16>
    %138 = vector.extract_strided_slice %111 {offsets = [0, 768], sizes = [64, 128], strides = [1, 1]} : vector<64x1024xbf16> to vector<64x128xbf16>
    %cst_102 = arith.constant dense<0.000000e+00> : vector<8x128xf32>
    %139 = tpu.matmul %137, %138, %cst_102 {dimension_numbers = #tpu.dot_dimension_numbers<[1], [0], [0], [1], [0, 0, 1, 1], [], []>} : vector<8x64xbf16>, vector<64x128xbf16>, vector<8x128xf32> -> vector<8x128xf32>
    %c7 = arith.constant 7 : index
    %c0_103 = arith.constant 0 : index
    %c0_104 = arith.constant 0 : index
    %140 = vector.load %arg11[%c7, %c0_103, %c0_104] : memref<8x8x64xbf16, #tpu.memory_space<vmem>>, vector<1x8x64xbf16>
    %141 = vector.shape_cast %140 : vector<1x8x64xbf16> to vector<8x64xbf16>
    %142 = vector.extract_strided_slice %111 {offsets = [0, 896], sizes = [64, 128], strides = [1, 1]} : vector<64x1024xbf16> to vector<64x128xbf16>
    %cst_105 = arith.constant dense<0.000000e+00> : vector<8x128xf32>
    %143 = tpu.matmul %141, %142, %cst_105 {dimension_numbers = #tpu.dot_dimension_numbers<[1], [0], [0], [1], [0, 0, 1, 1], [], []>} : vector<8x64xbf16>, vector<64x128xbf16>, vector<8x128xf32> -> vector<8x128xf32>
    %144 = arith.addf %115, %119 : vector<8x128xf32>
    %145 = arith.addf %123, %127 : vector<8x128xf32>
    %146 = arith.addf %131, %135 : vector<8x128xf32>
    %147 = arith.addf %139, %143 : vector<8x128xf32>
    %148 = arith.addf %144, %145 : vector<8x128xf32>
    %149 = arith.addf %146, %147 : vector<8x128xf32>
    %150 = arith.addf %148, %149 : vector<8x128xf32>
    %c0_106 = arith.constant 0 : index
    %c0_107 = arith.constant 0 : index
    %151 = vector.load %arg13[%c0_106, %c0_107] : memref<1x128xf32, #tpu.memory_space<vmem>>, vector<1x128xf32>
    %152 = vector.broadcast %151 : vector<1x128xf32> to vector<8x128xf32>
    %153 = arith.addf %150, %152 : vector<8x128xf32>
    %c0_108 = arith.constant 0 : index
    %c0_109 = arith.constant 0 : index
    %154 = vector.load %arg14[%c0_108, %c0_109] : memref<8x128xf32, #tpu.memory_space<vmem>>, vector<8x128xf32>
    tpu.vector_store %arg14[%c0_108, %c0_109], %153 {strides = array<i32>} : memref<8x128xf32, #tpu.memory_space<vmem>>, vector<8x128xf32>,
    return
  }
  func.func @transform_0(%arg0: i32) -> (i32, i32) {
    %c0_i32 = arith.constant 0 : i32
    %c0_i32_0 = arith.constant 0 : i32
    return %arg0, %c0_i32 : i32, i32
  }
  func.func @transform_1(%arg0: i32) -> (i32, i32, i32) {
    %c0_i32 = arith.constant 0 : i32
    %c0_i32_0 = arith.constant 0 : i32
    %c0_i32_1 = arith.constant 0 : i32
    %c0_i32_2 = arith.constant 0 : i32
    return %c0_i32, %c0_i32_0, %c0_i32_1 : i32, i32, i32
  }
  func.func @transform_2(%arg0: i32) -> (i32, i32) {
    %c0_i32 = arith.constant 0 : i32
    %c0_i32_0 = arith.constant 0 : i32
    %c0_i32_1 = arith.constant 0 : i32
    return %c0_i32, %c0_i32_0 : i32, i32
  }
  func.func @transform_3(%arg0: i32) -> (i32, i32) {
    %c0_i32 = arith.constant 0 : i32
    %c0_i32_0 = arith.constant 0 : i32
    %c0_i32_1 = arith.constant 0 : i32
    return %c0_i32, %c0_i32_0 : i32, i32
  }
  func.func @transform_4(%arg0: i32) -> (i32, i32, i32) {
    %c0_i32 = arith.constant 0 : i32
    %c0_i32_0 = arith.constant 0 : i32
    %c0_i32_1 = arith.constant 0 : i32
    %c0_i32_2 = arith.constant 0 : i32
    return %c0_i32, %c0_i32_0, %c0_i32_1 : i32, i32, i32
  }
  func.func @transform_5(%arg0: i32) -> (i32, i32) {
    %c0_i32 = arith.constant 0 : i32
    %c0_i32_0 = arith.constant 0 : i32
    %c0_i32_1 = arith.constant 0 : i32
    return %c0_i32, %c0_i32_0 : i32, i32
  }
  func.func @transform_6(%arg0: i32) -> (i32, i32) {
    %c0_i32 = arith.constant 0 : i32
    %c0_i32_0 = arith.constant 0 : i32
    %c0_i32_1 = arith.constant 0 : i32
    return %c0_i32, %c0_i32_0 : i32, i32
  }
  func.func @transform_7(%arg0: i32) -> (i32, i32, i32) {
    %c0_i32 = arith.constant 0 : i32
    %c0_i32_0 = arith.constant 0 : i32
    %c0_i32_1 = arith.constant 0 : i32
    %c0_i32_2 = arith.constant 0 : i32
    return %c0_i32, %c0_i32_0, %c0_i32_1 : i32, i32, i32
  }
  func.func @transform_8(%arg0: i32) -> (i32, i32) {
    %c0_i32 = arith.constant 0 : i32
    %c0_i32_0 = arith.constant 0 : i32
    %c0_i32_1 = arith.constant 0 : i32
    return %c0_i32, %c0_i32_0 : i32, i32
  }
  func.func @transform_9(%arg0: i32) -> (i32, i32) {
    %c0_i32 = arith.constant 0 : i32
    %c0_i32_0 = arith.constant 0 : i32
    %c0_i32_1 = arith.constant 0 : i32
    return %c0_i32, %c0_i32_0 : i32, i32
  }
  func.func @transform_10(%arg0: i32) -> (i32, i32, i32) {
    %c0_i32 = arith.constant 0 : i32
    %c0_i32_0 = arith.constant 0 : i32
    %c0_i32_1 = arith.constant 0 : i32
    %c0_i32_2 = arith.constant 0 : i32
    return %c0_i32, %c0_i32_0, %c0_i32_1 : i32, i32, i32
  }
  func.func @transform_11(%arg0: i32) -> (i32, i32) {
    %c0_i32 = arith.constant 0 : i32
    %c0_i32_0 = arith.constant 0 : i32
    %c0_i32_1 = arith.constant 0 : i32
    return %c0_i32, %c0_i32_0 : i32, i32
  }
  func.func @transform_12(%arg0: i32) -> (i32, i32) {
    %c0_i32 = arith.constant 0 : i32
    %c0_i32_0 = arith.constant 0 : i32
    %c0_i32_1 = arith.constant 0 : i32
    return %c0_i32, %c0_i32_0 : i32, i32
  }
  func.func @transform_13(%arg0: i32) -> (i32, i32) {
    %c0_i32 = arith.constant 0 : i32
    %c0_i32_0 = arith.constant 0 : i32
    return %arg0, %c0_i32 : i32, i32
  }
}

</mosaic_0001>

<bundles_post_ra>
// kernel: lenet_forward.1
= control target key start
LH: loop header
LB: loop body
LE: loop exit
PB: predicated region body
PF: predicated region fallthrough
CT: control target
= control target key end

     0   :  { %18 = vsyncpa [#allocation3], 0  ;;  %s11975_s0 = inlined_call_operand.vmem [shape: bf16[512,96], index: 0, kind: input, shape index: {}]   ;;  %s11976_s1 = inlined_call_operand.vmem [shape: bf16[5,128,256], index: 1, kind: input, shape index: {}]   ;;  %s11977_s2 = inlined_call_operand.vmem [shape: bf16[96,1280], index: 2, kind: input, shape index: {}]   ;;  %s11978_s3 = inlined_call_operand.vmem [shape: f32[1,256], index: 3, kind: input, shape index: {}]   ;;  %s11979_s4 = inlined_call_operand.vmem [shape: bf16[5,64,128], index: 4, kind: input, shape index: {}]   ;;  %s11980_s5 = inlined_call_operand.vmem [shape: bf16[256,640], index: 5, kind: input, shape index: {}]   ;;  %s11981_s6 = inlined_call_operand.vmem [shape: f32[1,128], index: 6, kind: input, shape index: {}]   ;;  %s11982_s7 = inlined_call_operand.vmem [shape: bf16[5,64,64], index: 7, kind: input, shape index: {}]   ;;  %s11983_s8 = inlined_call_operand.vmem [shape: bf16[128,640], index: 8, kind: input, shape index: {}]   ;;  %s11984_s9 = inlined_call_operand.vmem [shape: f32[1,128], index: 9, kind: input, shape index: {}]   ;;  %s11985_s10 = inlined_call_operand.vmem [shape: bf16[8,8,64], index: 10, kind: input, shape index: {}]   ;;  %s11986_s11 = inlined_call_operand.vmem [shape: bf16[128,1024], index: 11, kind: input, shape index: {}]   ;;  %s11987_s12 = inlined_call_operand.vmem [shape: f32[1,128], index: 12, kind: input, shape index: {}]   ;;  %s11988_s13 = inlined_call_operand.hbm [shape: f32[16,128], index: 13, kind: output, shape index: {}]  }
   0x1   :  { %20 = vsyncpa [#allocation3 + $0x1], 0  ;;  %s9383_s25 = smov 0   ;;  %s9385_s26 = smov 0  }
   0x2   :  { %s9387_s27 = smov 0   ;;  %s9389_s28 = smov 0  }
   0x3 LB: > { %12079 = sst [smem:[#allocation5_spill]] %s9303_s27  ;;  %s9404_s29 = sadd.s32 4294967295, %s9307_s28   ;;  %s9307_s28 = sphi %s9389_s28, %s12318_s28   ;;  %s9303_s27 = sphi %s9387_s27, %s12320_s27   ;;  %s9299_s26 = sphi %s9385_s26, %s12322_s26   ;;  %s9295_s25 = sphi %s9383_s25, %s12321_s25  }
   0x4   : > { %s7152_s30 = sadd.s32 4294967294, %s9307_s28   ;;  %s9408_s14 = sadd.s32 1, %s9307_s28  }
   0x5   : > { %12080 = sst [smem:[#allocation6_spill]] %s9408_s14  ;;  %s311_s15 = sadd.s32 1, %s9303_s27 }
   0x6   : > { %s308_s16 = ssub.s32 %s9307_s28, %s9408_s14  ;;  %p321_p0 = scmp.ne.s32.totalorder %s9303_s27, %s9299_s26 }
   0x7   : > { %p309_p1 = scmp.eq.s32.totalorder %s308_s16, 0  ;;  %p322_p2 = scmp.eq.s32.totalorder %s9404_s29, 1 }
   0x8   : > { %p327_p3 = scmp.ne.s32.totalorder %s9299_s26, %s9295_s25  ;;  %p328_p4 = scmp.eq.s32.totalorder %s7152_s30, 1 }
   0x9   : > { %s9419_s17 = scalar_select %p309_p1, %s9303_s27, %s311_s15  }
   0xa   : > { %p9421_p5 = por %p322_p2, %p321_p0  ;;  %p9425_p6 = por %p328_p4, %p327_p3 }
   0xb   : > { %12081 = sst [smem:[#allocation7_spill]] %s9419_s17  ;;  %p7155_p7 = scmp.ge.s32.totalorder %s9307_s28, 1 }
   0xc   : > { %s12083_s19 = scalar_select %p9425_p6, 1, 0 }
   0xd   : > { %p391_p8 = scmp.lt.s32.totalorder %s9307_s28, 3 }
   0xe   : > { %12084 = sst [smem:[#allocation8_spill]] %s12083_s19 }
   0xf   : > { %p392_p9 = pnand %p7155_p7, %p391_p8 }
  0x11   : > { %395 = sbr.rel (%p392_p9) target bundleno = 2856 (0xb28), region = 72 }
  0x18   : > { %v8607_v0 = vld [vmem:[%s11977_s2 + $0x4] ss:$40 sps:$4 sm:$0xff]   ;;  %s7157_s22 = sshll.u32 %s9404_s29, 5  ;;  %v8609_v1 = vld [vmem:[%s11977_s2] ss:$40 sps:$4 sm:$0xff]   ;;  %v11994_v2 = vmov 0  }
  0x19   : > { %995 = vmatprep.mubr.bf16.mxu0 %v11994_v2  ;;  %1188 = vmatprep.mubr.bf16.mxu1 %v11994_v2  ;;  %v8610_v3 = vld [vmem:[%s11977_s2 + $0x54] ss:$40 sps:$4 sm:$0xff]   ;;  %p436_p10 = scmp.lt.s32.totalorder %s7157_s22, 63  ;;  %v8614_v5 = vld [vmem:[%s11977_s2 + $0x50] ss:$40 sps:$4 sm:$0xff]   ;;  %vm914_vm0 = vcmask 785408  }
  0x1a   : > { %963 = vmatprep.subr.bf16.mxu0 %v8607_v0  ;;  %v8612_v4 = vld [vmem:[%s11977_s2 + $0xc] ss:$40 sps:$4 sm:$0xff]   ;;  %v8615_v6 = vld [vmem:[%s11977_s2 + $0x8] ss:$40 sps:$4 sm:$0xff]   ;;  %v8618_v8 = vld [vmem:[%s11977_s2 + $0x5c] ss:$40 sps:$4 sm:$0xff]  }
  0x1b   : > { %964 = vmatpush1.bf16.msra.mxu0 %v8609_v1  ;;  %v8616_v7 = vld [vmem:[%s11977_s2 + $0xa4] ss:$40 sps:$4 sm:$0xff]   ;;  %1156 = vmatprep.subr.bf16.mxu1 %v8612_v4  ;;  %v8621_v9 = vld [vmem:[%s11977_s2 + $0x58] ss:$40 sps:$4 sm:$0xff]   ;;  %s12324_s22 = smov (!%p436_p10, %s7157_s22), 63  ;;  %vm5424_vm1 = vcmask 523264  }
  0x1c   : > { %965 = vmatprep.subr.bf16.mxu0 %v8610_v3  ;;  %1157 = vmatpush1.bf16.msra.mxu1 %v8615_v6  ;;  %v8620_v10 = vld [vmem:[%s11977_s2 + $0xa0] ss:$40 sps:$4 sm:$0xff]   ;;  %v8622_v11 = vld [vmem:[%s11977_s2 + $0xf4] ss:$40 sps:$4 sm:$0xff]   ;;  %s7158_s16 = sshll.u32 %s12324_s22, 2  ;;  %vm9311_vm2 = vmmov 0  }
  0x1d   : > { %1158 = vmatprep.subr.bf16.mxu1 %v8618_v8  ;;  %v8624_v12 = vld [vmem:[%s11977_s2 + $0xac] ss:$40 sps:$4 sm:$0xff]   ;;  %v8627_v13 = vld [vmem:[%s11977_s2 + $0xa8] ss:$40 sps:$4 sm:$0xff]   ;;  %v8630_v15 = vld [vmem:[%s11977_s2 + $0xfc] ss:$40 sps:$4 sm:$0xff]   ;;  %s9485_s30 = scalar_lea.vmem %s11975_s0, %s7158_s16 }
  0x1e   : > { %v8626_v14 = vld [vmem:[%s11977_s2 + $0xf0] ss:$40 sps:$4 sm:$0xff]   ;;  %v8628_v16 = vld [vmem:[%s11977_s2 + $0x144] ss:$40 sps:$4 sm:$0xff]   ;;  %v8632_v17 = vld [vmem:[%s11977_s2 + $0x140] ss:$40 sps:$4 sm:$0xff]  }
  0x1f   : > { %966 = vmatpush1.bf16.msra.mxu0 %v8614_v5  ;;  %v8633_v18 = vld [vmem:[%s11977_s2 + $0xf8] ss:$40 sps:$4 sm:$0xff]   ;;  %v8636_v19 = vld [vmem:[%s11977_s2 + $0x14c] ss:$40 sps:$4 sm:$0xff]   ;;  %v8639_v22 = vld [vmem:[%s11977_s2 + $0x148] ss:$40 sps:$4 sm:$0xff]  }
  0x20   : > { %967 = vmatprep.subr.bf16.mxu0 %v8616_v7  ;;  %1159 = vmatpush1.bf16.msra.mxu1 %v8621_v9  ;;  %v8634_v20 = vld [vmem:[%s11977_s2 + $0x194] ss:$40 sps:$4 sm:$0xff]   ;;  %v8638_v21 = vld [vmem:[%s11977_s2 + $0x190] ss:$40 sps:$4 sm:$0xff]   ;;  %v9512_v25 = vld [vmem:[%s9485_s30] sm:$0xff]   ;;  %s432_s27 = sand.u32 1, %s9299_s26  }
  0x21   : > { %1160 = vmatprep.subr.bf16.mxu1 %v8624_v12  ;;  %v8641_v23 = vld [vmem:[%s11977_s2 + $0x19c] ss:$40 sps:$4 sm:$0xff]   ;;  %v8643_v26 = vld [vmem:[%s11977_s2 + $0x198] ss:$40 sps:$4 sm:$0xff]   ;;  %v9535_v31 = vld [vmem:[%s9485_s30 + $0x8] sm:$0xff]   ;;  %s7156_s16 = sshll.u32 %s432_s27, 3 }
  0x22   : > { %v8646_v24 = vld [vmem:[%s11977_s2 + $0x14] ss:$40 sps:$4 sm:$0xff]   ;;  %v8644_v27 = vld [vmem:[%s11977_s2 + $0x10] ss:$40 sps:$4 sm:$0xff]   ;;  %v8652_v28 = vld [vmem:[%s11977_s2 + $0x64] ss:$40 sps:$4 sm:$0xff]  }
  0x23   : > { %968 = vmatpush1.bf16.msra.mxu0 %v8620_v10  ;;  %v8650_v29 = vld [vmem:[%s11977_s2 + $0x60] ss:$40 sps:$4 sm:$0xff]   ;;  %v8657_v30 = vld [vmem:[%s11977_s2 + $0xb4] ss:$40 sps:$4 sm:$0xff]   ;;  %v8655_v32 = vld [vmem:[%s11977_s2 + $0xb0] ss:$40 sps:$4 sm:$0xff]  }
  0x24   : > { %969 = vmatprep.subr.bf16.mxu0 %v8622_v11  ;;  %1161 = vmatpush1.bf16.msra.mxu1 %v8627_v13  ;;  %v8664_v33 = vld [vmem:[%s11977_s2 + $0x18] ss:$40 sps:$4 sm:$0xff]   ;;  %v8666_v34 = vld [vmem:[%s11977_s2 + $0x1c] ss:$40 sps:$4 sm:$0xff]   ;;  %v8673_v38 = vld [vmem:[%s11977_s2 + $0x68] ss:$40 sps:$4 sm:$0xff]  }
  0x25   : > { %1162 = vmatprep.subr.bf16.mxu1 %v8630_v15  ;;  %v8663_v35 = vld [vmem:[%s11977_s2 + $0x104] ss:$40 sps:$4 sm:$0xff]   ;;  %v8661_v36 = vld [vmem:[%s11977_s2 + $0x100] ss:$40 sps:$4 sm:$0xff]   ;;  %v8672_v37 = vld [vmem:[%s11977_s2 + $0x154] ss:$40 sps:$4 sm:$0xff]  }
  0x26   : > { %v8675_v39 = vld [vmem:[%s11977_s2 + $0x6c] ss:$40 sps:$4 sm:$0xff]   ;;  %v8670_v41 = vld [vmem:[%s11977_s2 + $0x150] ss:$40 sps:$4 sm:$0xff]   ;;  %v8683_v43 = vld [vmem:[%s11977_s2 + $0xbc] ss:$40 sps:$4 sm:$0xff]  }
  0x27   : > { %970 = vmatpush1.bf16.msra.mxu0 %v8626_v14  ;;  %v9568_v40 = vld [vmem:[%s9485_s30 + $0x10] sm:$0xff]   ;;  %v8680_v42 = vld [vmem:[%s11977_s2 + $0x1a4] ss:$40 sps:$4 sm:$0xff]   ;;  %v8681_v44 = vld [vmem:[%s11977_s2 + $0xb8] ss:$40 sps:$4 sm:$0xff]   ;;  %s7834_s23 = sshll.u32 %s9404_s29, 7 }
  0x28   : > { %971 = vmatprep.subr.bf16.mxu0 %v8628_v16  ;;  %1163 = vmatpush1.bf16.msra.mxu1 %v8633_v18  ;;  %v8678_v45 = vld [vmem:[%s11977_s2 + $0x1a0] ss:$40 sps:$4 sm:$0xff]   ;;  %v8688_v46 = vld [vmem:[%s11977_s2 + $0x10c] ss:$40 sps:$4 sm:$0xff]   ;;  %v9595_v47 = vld [vmem:[%s9485_s30 + $0x18] sm:$0xff]   ;;  %s434_s24 = scalar_lea.vmem [#allocation2], %s7156_s16  ;;  %s11933_s17 = scalar_lea.hbm %s11988_s13, %s7834_s23 }
  0x29   : > { %1164 = vmatprep.subr.bf16.mxu1 %v8636_v19  ;;  %v8686_v48 = vld [vmem:[%s11977_s2 + $0x108] ss:$40 sps:$4 sm:$0xff]   ;;  %v8691_v49 = vld [vmem:[%s11977_s2 + $0x15c] ss:$40 sps:$4 sm:$0xff]   ;;  %v8689_v51 = vld [vmem:[%s11977_s2 + $0x158] ss:$40 sps:$4 sm:$0xff]  }
  0x2a   : > { %v8697_v50 = vld [vmem:[%s11977_s2 + $0x24] ss:$40 sps:$4 sm:$0xff]   ;;  %v8692_v54 = vld [vmem:[%s11977_s2 + $0x1a8] ss:$40 sps:$4 sm:$0xff]   ;;  %v9647_v57 = vld [vmem:[%s9485_s30 + $0x38] sm:$0xff]   ;;  %s7093_s22 = sshll.u32 %s434_s24, 4  ;;  %s11935_s22 = int_to_ptr.vmem [resolvable:$true] %s7093_s22 }
  0x2b   : > { %972 = vmatpush1.bf16.msra.mxu0 %v8632_v17  ;;  %v8694_v52 = vld [vmem:[%s11977_s2 + $0x1ac] ss:$40 sps:$4 sm:$0xff]   ;;  %v9617_v53 = vld [vmem:[%s9485_s30 + $0x20] sm:$0xff]   ;;  %v9683_v61 = vld [vmem:[%s9485_s30 + $0x58] sm:$0xff]   ;;  %s7080_s19 = scalar_lea.sflag [#allocation3], %s432_s27  ;;  %s9245_s21 = scalar_lea.vmem %s11935_s22, 128 }
  0x2c   : > { %973 = vmatprep.subr.bf16.mxu0 %v8634_v20  ;;  %1165 = vmatpush1.bf16.msra.mxu1 %v8639_v22  ;;  %v9629_v55 = vld [vmem:[%s9485_s30 + $0x28] sm:$0xff]   ;;  %v9640_v56 = vld [vmem:[%s9485_s30 + $0x30] sm:$0xff]   ;;  %v9656_v58 = vld [vmem:[%s9485_s30 + $0x40] sm:$0xff]   ;;  %p9246_p11 = scmp.ne.s32.totalorder %s11935_s22, %s9245_s21  ;;  %s9312_s29 = smov [#allocation2]  }
  0x2d   : > { %1166 = vmatprep.subr.bf16.mxu1 %v8641_v23  ;;  %v9665_v59 = vld [vmem:[%s9485_s30 + $0x48] sm:$0xff]   ;;  %v9674_v60 = vld [vmem:[%s9485_s30 + $0x50] sm:$0xff]   ;;  %v9692_v62 = vld [vmem:[%s9485_s30 + $0x60] sm:$0xff]   ;;  %s9249_s16 = sshll.u32 %s9312_s29, 4  ;;  %s9250_s16 = int_to_ptr.vmem [resolvable:$false] %s9249_s16 }
  0x2e   : > { %v9701_v63 = vld [vmem:[%s9485_s30 + $0x68] sm:$0xff]   ;;  %v9710_v0 = vld [vmem:[%s9485_s30 + $0x70] sm:$0xff]   ;;  %v9719_v1 = vld [vmem:[%s9485_s30 + $0x78] sm:$0xff]   ;;  %p9247_p12 = pnand %p9246_p11, %p9421_p5  ;;  %p9252_p0 = scmp.lt.s32.totalorder %s11935_s22, %s9250_s16 }
  0x2f   : > { %974 = vmatpush1.bf16.msra.mxu0 %v8638_v21  ;;  %v8695_v3 = vld [vmem:[%s11977_s2 + $0x20] ss:$40 sps:$4 sm:$0xff]   ;;  %v8700_v4 = vld [vmem:[%s11977_s2 + $0x74] ss:$40 sps:$4 sm:$0xff]   ;;  %v8698_v5 = vld [vmem:[%s11977_s2 + $0x70] ss:$40 sps:$4 sm:$0xff]  }
  0x30   : > { %1349 = vmatprep.subr.bf16.mxu0 %v8646_v24  ;;  %1167 = vmatpush1.bf16.msra.mxu1 %v8643_v26  ;;  %v8703_v6 = vld [vmem:[%s11977_s2 + $0xc4] ss:$40 sps:$4 sm:$0xff]   ;;  %v8701_v7 = vld [vmem:[%s11977_s2 + $0xc0] ss:$40 sps:$4 sm:$0xff]   ;;  %v8706_v8 = vld [vmem:[%s11977_s2 + $0x114] ss:$40 sps:$4 sm:$0xff]   ;;  %p9248_p13 = pneg %p9247_p12 }
  0x31   : > { %1542 = vmatprep.subr.bf16.mxu1 %v8666_v34  ;;  %v8704_v9 = vld [vmem:[%s11977_s2 + $0x110] ss:$40 sps:$4 sm:$0xff]   ;;  %v8709_v10 = vld [vmem:[%s11977_s2 + $0x164] ss:$40 sps:$4 sm:$0xff]   ;;  %v8707_v11 = vld [vmem:[%s11977_s2 + $0x160] ss:$40 sps:$4 sm:$0xff]  }
  0x32   : > { %7235 = vmatmul.mubr.msk.bf16.vlgmr.msra.gmra.mrb[0].mxu0 %vm914_vm0, %v9512_v25  ;;  %v8712_v12 = vld [vmem:[%s11977_s2 + $0x1b4] ss:$40 sps:$4 sm:$0xff]   ;;  %v8710_v13 = vld [vmem:[%s11977_s2 + $0x1b0] ss:$40 sps:$4 sm:$0xff]  }
  0x33   : > { %1350 = vmatpush1.bf16.msra.mxu0 %v8644_v27  ;;  %1005 = vmatprep.mubr.bf16.mxu0 %v11994_v2 }
  0x34   : > { %1351 = vmatprep.subr.bf16.mxu0 %v8652_v28  ;;  %7251 = vmatmul.mubr.msk.bf16.vlgmr.msra.gmra.mrb[0].mxu1 %vm914_vm0, %v9512_v25 }
  0x35   : > { %1198 = vmatprep.mubr.bf16.mxu1 %v11994_v2  ;;  %1543 = vmatpush1.bf16.msra.mxu1 %v8664_v33 }
  0x36   : > { %1544 = vmatprep.subr.bf16.mxu1 %v8675_v39 }
  0x37   : > { %1352 = vmatpush1.bf16.msra.mxu0 %v8650_v29 }
  0x38   : > { %1353 = vmatprep.subr.bf16.mxu0 %v8657_v30 }
  0x39   : > { %1545 = vmatpush1.bf16.msra.mxu1 %v8673_v38 }
  0x3a   : > { %7236 = vmatmul.mubr.msk.bf16.gmra.mrb[4].mxu0 %vm914_vm0, %v9535_v31  ;;  %1546 = vmatprep.subr.bf16.mxu1 %v8683_v43 }
  0x3b   : > { %1015 = vmatprep.mubr.bf16.mxu0 %v11994_v2  ;;  %1354 = vmatpush1.bf16.msra.mxu0 %v8655_v32 }
  0x3c   : > { %1355 = vmatprep.subr.bf16.mxu0 %v8663_v35  ;;  %7252 = vmatmul.mubr.msk.bf16.gmra.mrb[4].mxu1 %vm914_vm0, %v9535_v31 }
  0x3d   : > { %1208 = vmatprep.mubr.bf16.mxu1 %v11994_v2  ;;  %1547 = vmatpush1.bf16.msra.mxu1 %v8681_v44 }
  0x3e   : > { %1548 = vmatprep.subr.bf16.mxu1 %v8688_v46 }
  0x3f   : > { %1356 = vmatpush1.bf16.msra.mxu0 %v8661_v36 }
  0x40   : > { %1357 = vmatprep.subr.bf16.mxu0 %v8672_v37 }
  0x41   : > { %1549 = vmatpush1.bf16.msra.mxu1 %v8686_v48 }
  0x42   : > { %7237 = vmatmul.mubr.msk.bf16.gmra.mrb[8].mxu0 %vm914_vm0, %v9568_v40  ;;  %1550 = vmatprep.subr.bf16.mxu1 %v8691_v49 }
  0x43   : > { %1025 = vmatprep.mubr.bf16.mxu0 %v11994_v2  ;;  %1358 = vmatpush1.bf16.msra.mxu0 %v8670_v41 }
  0x44   : > { %1359 = vmatprep.subr.bf16.mxu0 %v8680_v42  ;;  %7253 = vmatmul.mubr.msk.bf16.gmra.mrb[8].mxu1 %vm914_vm0, %v9568_v40 }
  0x45   : > { %1218 = vmatprep.mubr.bf16.mxu1 %v11994_v2  ;;  %1551 = vmatpush1.bf16.msra.mxu1 %v8689_v51 }
  0x46   : > { %1552 = vmatprep.subr.bf16.mxu1 %v8694_v52 }
  0x47   : > { %1360 = vmatpush1.bf16.msra.mxu0 %v8678_v45 }
  0x48   : > { %1735 = vmatprep.subr.bf16.mxu0 %v8697_v50 }
  0x49   : > { %1553 = vmatpush1.bf16.msra.mxu1 %v8692_v54 }
  0x4a   : > { %7238 = vmatmul.mubr.msk.bf16.gmra.mrb[12].mxu0 %vm914_vm0, %v9595_v47 }
  0x4b   : > { %1035 = vmatprep.mubr.bf16.mxu0 %v11994_v2 }
  0x4c   : > { %7254 = vmatmul.mubr.msk.bf16.gmra.mrb[12].mxu1 %vm914_vm0, %v9595_v47 }
  0x4d   : > { %1228 = vmatprep.mubr.bf16.mxu1 %v11994_v2 }
  0x52   : > { %7239 = vmatmul.mubr.msk.bf16.gmra.mrb[16].mxu0 %vm914_vm0, %v9617_v53 }
  0x53   : > { %1045 = vmatprep.mubr.bf16.mxu0 %v11994_v2 }
  0x54   : > { %7255 = vmatmul.mubr.msk.bf16.gmra.mrb[16].mxu1 %vm914_vm0, %v9617_v53 }
  0x55   : > { %1238 = vmatprep.mubr.bf16.mxu1 %v11994_v2 }
  0x5a   : > { %7240 = vmatmul.mubr.msk.bf16.gmra.mrb[20].mxu0 %vm914_vm0, %v9629_v55 }
  0x5b   : > { %1055 = vmatprep.mubr.bf16.mxu0 %v11994_v2 }
  0x5c   : > { %7256 = vmatmul.mubr.msk.bf16.gmra.mrb[20].mxu1 %vm914_vm0, %v9629_v55 }
  0x5d   : > { %1248 = vmatprep.mubr.bf16.mxu1 %v11994_v2 }
  0x62   : > { %7241 = vmatmul.mubr.msk.bf16.gmra.mrb[24].mxu0 %vm914_vm0, %v9640_v56 }
  0x63   : > { %1065 = vmatprep.mubr.bf16.mxu0 %v11994_v2 }
  0x64   : > { %7257 = vmatmul.mubr.msk.bf16.gmra.mrb[24].mxu1 %vm914_vm0, %v9640_v56 }
  0x65   : > { %1258 = vmatprep.mubr.bf16.mxu1 %v11994_v2 }
  0x6a   : > { %7242 = vmatmul.mubr.msk.bf16.gmra.mrb[28].mxu0 %vm914_vm0, %v9647_v57 }
  0x6b   : > { %1075 = vmatprep.mubr.bf16.mxu0 %v11994_v2 }
  0x6c   : > { %7258 = vmatmul.mubr.msk.bf16.gmra.mrb[28].mxu1 %vm914_vm0, %v9647_v57 }
  0x6d   : > { %1268 = vmatprep.mubr.bf16.mxu1 %v11994_v2 }
  0x72   : > { %7243 = vmatmul.mubr.msk.bf16.gmra.mrb[32].mxu0 %vm914_vm0, %v9656_v58 }
  0x73   : > { %1085 = vmatprep.mubr.bf16.mxu0 %v11994_v2 }
  0x74   : > { %7259 = vmatmul.mubr.msk.bf16.gmra.mrb[32].mxu1 %vm914_vm0, %v9656_v58 }
  0x75   : > { %1278 = vmatprep.mubr.bf16.mxu1 %v11994_v2 }
  0x7a   : > { %7244 = vmatmul.mubr.msk.bf16.gmra.mrb[36].mxu0 %vm914_vm0, %v9665_v59 }
  0x7b   : > { %1095 = vmatprep.mubr.bf16.mxu0 %v11994_v2 }
  0x7c   : > { %7260 = vmatmul.mubr.msk.bf16.gmra.mrb[36].mxu1 %vm914_vm0, %v9665_v59 }
  0x7d   : > { %1288 = vmatprep.mubr.bf16.mxu1 %v11994_v2 }
  0x82   : > { %7245 = vmatmul.mubr.msk.bf16.gmra.mrb[40].mxu0 %vm914_vm0, %v9674_v60 }
  0x83   : > { %1105 = vmatprep.mubr.bf16.mxu0 %v11994_v2 }
  0x84   : > { %7261 = vmatmul.mubr.msk.bf16.gmra.mrb[40].mxu1 %vm914_vm0, %v9674_v60 }
  0x85   : > { %1298 = vmatprep.mubr.bf16.mxu1 %v11994_v2 }
  0x8a   : > { %7246 = vmatmul.mubr.msk.bf16.gmra.mrb[44].mxu0 %vm914_vm0, %v9683_v61 }
  0x8b   : > { %1115 = vmatprep.mubr.bf16.mxu0 %v11994_v2 }
  0x8c   : > { %7262 = vmatmul.mubr.msk.bf16.gmra.mrb[44].mxu1 %vm914_vm0, %v9683_v61 }
  0x8d   : > { %1308 = vmatprep.mubr.bf16.mxu1 %v11994_v2 }
  0x92   : > { %7247 = vmatmul.mubr.msk.bf16.gmra.mrb[48].mxu0 %vm914_vm0, %v9692_v62 }
  0x93   : > { %1125 = vmatprep.mubr.bf16.mxu0 %v11994_v2 }
  0x94   : > { %7263 = vmatmul.mubr.msk.bf16.gmra.mrb[48].mxu1 %vm914_vm0, %v9692_v62 }
  0x95   : > { %1318 = vmatprep.mubr.bf16.mxu1 %v11994_v2 }
  0x9a   : > { %7248 = vmatmul.mubr.msk.bf16.gmra.mrb[52].mxu0 %vm914_vm0, %v9701_v63 }
  0x9b   : > { %1135 = vmatprep.mubr.bf16.mxu0 %v11994_v2 }
  0x9c   : > { %7264 = vmatmul.mubr.msk.bf16.gmra.mrb[52].mxu1 %vm914_vm0, %v9701_v63 }
  0x9d   : > { %1328 = vmatprep.mubr.bf16.mxu1 %v11994_v2 }
  0xa2   : > { %7249 = vmatmul.mubr.msk.bf16.gmra.mrb[56].mxu0 %vm914_vm0, %v9710_v0 }
  0xa3   : > { %1145 = vmatprep.mubr.bf16.mxu0 %v11994_v2 }
  0xa4   : > { %7265 = vmatmul.mubr.msk.bf16.gmra.mrb[56].mxu1 %vm914_vm0, %v9710_v0 }
  0xa5   : > { %1338 = vmatprep.mubr.bf16.mxu1 %v11994_v2 }
  0xaa   : > { %7250 = vmatmul.mubr.msk.bf16.gmra.mrb[60].mxu0 %vm914_vm0, %v9719_v1 }
  0xab   : > { %1381 = vmatprep.mubr.bf16.mxu0 %v11994_v2 }
  0xac   : > { %7266 = vmatmul.mubr.msk.bf16.gmra.mrb[60].mxu1 %vm914_vm0, %v9719_v1 }
  0xad   : > { %1574 = vmatprep.mubr.bf16.mxu1 %v11994_v2 }
  0xb2   : > { %7267 = vmatmul.mubr.msk.bf16.vlgmr.msra.gmra.mrb[64].mxu0 %vm914_vm0, %v9512_v25 }
  0xb3   : > { %1736 = vmatpush1.bf16.msra.mxu0 %v8695_v3  ;;  %1391 = vmatprep.mubr.bf16.mxu0 %v11994_v2 }
  0xb4   : > { %1737 = vmatprep.subr.bf16.mxu0 %v8700_v4  ;;  %7283 = vmatmul.mubr.msk.bf16.vlgmr.msra.gmra.mrb[64].mxu1 %vm914_vm0, %v9512_v25 }
  0xb5   : > { %1584 = vmatprep.mubr.bf16.mxu1 %v11994_v2 }
  0xb7   : > { %1738 = vmatpush1.bf16.msra.mxu0 %v8698_v5 }
  0xb8   : > { %1739 = vmatprep.subr.bf16.mxu0 %v8703_v6 }
  0xba   : > { %7268 = vmatmul.mubr.msk.bf16.gmra.mrb[68].mxu0 %vm914_vm0, %v9535_v31 }
  0xbb   : > { %1401 = vmatprep.mubr.bf16.mxu0 %v11994_v2  ;;  %1740 = vmatpush1.bf16.msra.mxu0 %v8701_v7 }
  0xbc   : > { %1741 = vmatprep.subr.bf16.mxu0 %v8706_v8  ;;  %7284 = vmatmul.mubr.msk.bf16.gmra.mrb[68].mxu1 %vm914_vm0, %v9535_v31 }
  0xbd   : > { %1594 = vmatprep.mubr.bf16.mxu1 %v11994_v2 }
  0xbf   : > { %1742 = vmatpush1.bf16.msra.mxu0 %v8704_v9 }
  0xc0   : > { %1743 = vmatprep.subr.bf16.mxu0 %v8709_v10 }
  0xc2   : > { %7269 = vmatmul.mubr.msk.bf16.gmra.mrb[72].mxu0 %vm914_vm0, %v9568_v40 }
  0xc3   : > { %1411 = vmatprep.mubr.bf16.mxu0 %v11994_v2  ;;  %1744 = vmatpush1.bf16.msra.mxu0 %v8707_v11 }
  0xc4   : > { %1745 = vmatprep.subr.bf16.mxu0 %v8712_v12  ;;  %7285 = vmatmul.mubr.msk.bf16.gmra.mrb[72].mxu1 %vm914_vm0, %v9568_v40 }
  0xc5   : > { %1604 = vmatprep.mubr.bf16.mxu1 %v11994_v2 }
  0xc7   : > { %1746 = vmatpush1.bf16.msra.mxu0 %v8710_v13 }
  0xca   : > { %7270 = vmatmul.mubr.msk.bf16.gmra.mrb[76].mxu0 %vm914_vm0, %v9595_v47 }
  0xcb   : > { %1421 = vmatprep.mubr.bf16.mxu0 %v11994_v2 }
  0xcc   : > { %7286 = vmatmul.mubr.msk.bf16.gmra.mrb[76].mxu1 %vm914_vm0, %v9595_v47 }
  0xcd   : > { %1614 = vmatprep.mubr.bf16.mxu1 %v11994_v2 }
  0xd2   : > { %7271 = vmatmul.mubr.msk.bf16.gmra.mrb[80].mxu0 %vm914_vm0, %v9617_v53 }
  0xd3   : > { %1431 = vmatprep.mubr.bf16.mxu0 %v11994_v2 }
  0xd4   : > { %7287 = vmatmul.mubr.msk.bf16.gmra.mrb[80].mxu1 %vm914_vm0, %v9617_v53 }
  0xd5   : > { %1624 = vmatprep.mubr.bf16.mxu1 %v11994_v2 }
  0xda   : > { %7272 = vmatmul.mubr.msk.bf16.gmra.mrb[84].mxu0 %vm914_vm0, %v9629_v55 }
  0xdb   : > { %1441 = vmatprep.mubr.bf16.mxu0 %v11994_v2 }
  0xdc   : > { %7288 = vmatmul.mubr.msk.bf16.gmra.mrb[84].mxu1 %vm914_vm0, %v9629_v55 }
  0xdd   : > { %1634 = vmatprep.mubr.bf16.mxu1 %v11994_v2 }
  0xe2   : > { %7273 = vmatmul.mubr.msk.bf16.gmra.mrb[88].mxu0 %vm914_vm0, %v9640_v56 }
  0xe3   : > { %1451 = vmatprep.mubr.bf16.mxu0 %v11994_v2 }
  0xe4   : > { %7289 = vmatmul.mubr.msk.bf16.gmra.mrb[88].mxu1 %vm914_vm0, %v9640_v56 }
  0xe5   : > { %1644 = vmatprep.mubr.bf16.mxu1 %v11994_v2 }
  0xea   : > { %7274 = vmatmul.mubr.msk.bf16.gmra.mrb[92].mxu0 %vm914_vm0, %v9647_v57 }
  0xeb   : > { %1461 = vmatprep.mubr.bf16.mxu0 %v11994_v2 }
  0xec   : > { %7290 = vmatmul.mubr.msk.bf16.gmra.mrb[92].mxu1 %vm914_vm0, %v9647_v57 }
  0xed   : > { %1654 = vmatprep.mubr.bf16.mxu1 %v11994_v2 }
  0xf2   : > { %7275 = vmatmul.mubr.msk.bf16.gmra.mrb[96].mxu0 %vm914_vm0, %v9656_v58 }
  0xf3   : > { %1471 = vmatprep.mubr.bf16.mxu0 %v11994_v2 }
  0xf4   : > { %7291 = vmatmul.mubr.msk.bf16.gmra.mrb[96].mxu1 %vm914_vm0, %v9656_v58 }
  0xf5   : > { %1664 = vmatprep.mubr.bf16.mxu1 %v11994_v2 }
  0xfa   : > { %7276 = vmatmul.mubr.msk.bf16.gmra.mrb[100].mxu0 %vm914_vm0, %v9665_v59 }
  0xfb   : > { %1481 = vmatprep.mubr.bf16.mxu0 %v11994_v2 }
  0xfc   : > { %7292 = vmatmul.mubr.msk.bf16.gmra.mrb[100].mxu1 %vm914_vm0, %v9665_v59 }
  0xfd   : > { %1674 = vmatprep.mubr.bf16.mxu1 %v11994_v2 }
 0x102   : > { %7277 = vmatmul.mubr.msk.bf16.gmra.mrb[104].mxu0 %vm914_vm0, %v9674_v60 }
 0x103   : > { %1491 = vmatprep.mubr.bf16.mxu0 %v11994_v2 }
 0x104   : > { %7293 = vmatmul.mubr.msk.bf16.gmra.mrb[104].mxu1 %vm914_vm0, %v9674_v60 }
 0x105   : > { %v9826_v14 = vpop.f32.mrb[0].mxu0  ;;  %1684 = vmatprep.mubr.bf16.mxu1 %v11994_v2 }
 0x106   : > { %v9830_v15 = vpop.f32.mrb[1].mxu0 }
 0x107   : > { %v9833_v16 = vpop.f32.mrb[2].mxu0  ;;  %v1190_v19 = vpop.f32.mrb[0].mxu1 }
 0x108   : > { %v9837_v18 = vpop.f32.mrb[3].mxu0  ;;  %v1192_v21 = vpop.f32.mrb[1].mxu1 }
 0x109   : > { %v1194_v22 = vpop.f32.mrb[2].mxu1 }
 0x10a   : > { %7278 = vmatmul.mubr.msk.bf16.gmra.mrb[108].mxu0 %vm914_vm0, %v9683_v61  ;;  %v1930_v23 = vpack.c.bf16 %v1194_v22, %v1190_v19  ;;  %v1196_v24 = vpop.f32.mrb[3].mxu1 }
 0x10b   : > { %1501 = vmatprep.mubr.bf16.mxu0 %v11994_v2  ;;  %v1931_v25 = vpack.c.bf16 %v1196_v24, %v1192_v21 }
 0x10c   : > { %7294 = vmatmul.mubr.msk.bf16.gmra.mrb[108].mxu1 %vm914_vm0, %v9683_v61 }
 0x10d   : > { %v9844_v26 = vpop.f32.mrb[4].mxu0  ;;  %1694 = vmatprep.mubr.bf16.mxu1 %v11994_v2  ;;  %2201 = vmatprep.subr.bf16.mxu1 %v1931_v25 }
 0x10e   : > { %v9848_v27 = vpop.f32.mrb[5].mxu0  ;;  %2202 = vmatpush1.bf16.msra.mxu1 %v1930_v23 }
 0x10f   : > { %v9851_v28 = vpop.f32.mrb[6].mxu0  ;;  %v1200_v31 = vpop.f32.mrb[4].mxu1 }
 0x110   : > { %v9855_v30 = vpop.f32.mrb[7].mxu0  ;;  %v1202_v33 = vpop.f32.mrb[5].mxu1 }
 0x111   : > { %v1204_v34 = vpop.f32.mrb[6].mxu1 }
 0x112   : > { %7279 = vmatmul.mubr.msk.bf16.gmra.mrb[112].mxu0 %vm914_vm0, %v9692_v62  ;;  %v1940_v35 = vpack.c.bf16 %v1204_v34, %v1200_v31  ;;  %v1206_v36 = vpop.f32.mrb[7].mxu1 }
 0x113   : > { %1511 = vmatprep.mubr.bf16.mxu0 %v11994_v2  ;;  %v1941_v37 = vpack.c.bf16 %v1206_v36, %v1202_v33 }
 0x114   : > { %7295 = vmatmul.mubr.msk.bf16.gmra.mrb[112].mxu1 %vm914_vm0, %v9692_v62 }
 0x115   : > { %v9862_v38 = vpop.f32.mrb[8].mxu0  ;;  %1704 = vmatprep.mubr.bf16.mxu1 %v11994_v2  ;;  %2203 = vmatprep.subr.bf16.mxu1 %v1941_v37 }
 0x116   : > { %v9866_v39 = vpop.f32.mrb[9].mxu0  ;;  %2204 = vmatpush1.bf16.msra.mxu1 %v1940_v35  ;;  %v9233_v35 = vld [vmem:[%s9485_s30] sm:$0xff]  }
 0x117   : > { %v9869_v40 = vpop.f32.mrb[10].mxu0  ;;  %v1210_v43 = vpop.f32.mrb[8].mxu1 }
 0x118   : > { %v9873_v42 = vpop.f32.mrb[11].mxu0  ;;  %v1212_v45 = vpop.f32.mrb[9].mxu1 }
 0x119   : > { %v1214_v46 = vpop.f32.mrb[10].mxu1 }
 0x11a   : > { %7280 = vmatmul.mubr.msk.bf16.gmra.mrb[116].mxu0 %vm914_vm0, %v9701_v63  ;;  %v1950_v47 = vpack.c.bf16 %v1214_v46, %v1210_v43  ;;  %v1216_v48 = vpop.f32.mrb[11].mxu1 }
 0x11b   : > { %1521 = vmatprep.mubr.bf16.mxu0 %v11994_v2  ;;  %v1951_v49 = vpack.c.bf16 %v1216_v48, %v1212_v45 }
 0x11c   : > { %7296 = vmatmul.mubr.msk.bf16.gmra.mrb[116].mxu1 %vm914_vm0, %v9701_v63 }
 0x11d   : > { %v9880_v50 = vpop.f32.mrb[12].mxu0  ;;  %1714 = vmatprep.mubr.bf16.mxu1 %v11994_v2  ;;  %2205 = vmatprep.subr.bf16.mxu1 %v1951_v49 }
 0x11e   : > { %v9884_v51 = vpop.f32.mrb[13].mxu0  ;;  %2206 = vmatpush1.bf16.msra.mxu1 %v1950_v47 }
 0x11f   : > { %v9887_v52 = vpop.f32.mrb[14].mxu0  ;;  %v1220_v55 = vpop.f32.mrb[12].mxu1 }
 0x120   : > { %v9891_v54 = vpop.f32.mrb[15].mxu0  ;;  %v1222_v57 = vpop.f32.mrb[13].mxu1 }
 0x121   : > { %v1224_v58 = vpop.f32.mrb[14].mxu1 }
 0x122   : > { %7281 = vmatmul.mubr.msk.bf16.gmra.mrb[120].mxu0 %vm914_vm0, %v9710_v0  ;;  %v1960_v59 = vpack.c.bf16 %v1224_v58, %v1220_v55  ;;  %v1226_v60 = vpop.f32.mrb[15].mxu1 }
 0x123   : > { %1531 = vmatprep.mubr.bf16.mxu0 %v11994_v2  ;;  %v1961_v61 = vpack.c.bf16 %v1226_v60, %v1222_v57  ;;  %v9234_v60 = vld [vmem:[%s9485_s30 + $0x8] sm:$0xff]  }
 0x124   : > { %7297 = vmatmul.mubr.msk.bf16.gmra.mrb[120].mxu1 %vm914_vm0, %v9710_v0 }
 0x125   : > { %v9898_v3 = vpop.f32.mrb[16].mxu0  ;;  %1724 = vmatprep.mubr.bf16.mxu1 %v11994_v2  ;;  %2207 = vmatprep.subr.bf16.mxu1 %v1961_v61 }
 0x126   : > { %v9902_v4 = vpop.f32.mrb[17].mxu0  ;;  %2208 = vmatpush1.bf16.msra.mxu1 %v1960_v59 }
 0x127   : > { %v9905_v5 = vpop.f32.mrb[18].mxu0  ;;  %v1230_v8 = vpop.f32.mrb[16].mxu1 }
 0x128   : > { %v9909_v7 = vpop.f32.mrb[19].mxu0  ;;  %v1232_v10 = vpop.f32.mrb[17].mxu1 }
 0x129   : > { %v1234_v11 = vpop.f32.mrb[18].mxu1 }
 0x12a   : > { %7282 = vmatmul.mubr.msk.bf16.gmra.mrb[124].mxu0 %vm914_vm0, %v9719_v1  ;;  %v1970_v12 = vpack.c.bf16 %v1234_v11, %v1230_v8  ;;  %v1236_v13 = vpop.f32.mrb[19].mxu1 }
 0x12b   : > { %1767 = vmatprep.mubr.bf16.mxu0 %v11994_v2  ;;  %v1971_v19 = vpack.c.bf16 %v1236_v13, %v1232_v10 }
 0x12c   : > { %7298 = vmatmul.mubr.msk.bf16.gmra.mrb[124].mxu1 %vm914_vm0, %v9719_v1 }
 0x12d   : > { %v9916_v21 = vpop.f32.mrb[20].mxu0  ;;  %2209 = vmatprep.subr.bf16.mxu1 %v1971_v19 }
 0x12e   : > { %v9920_v22 = vpop.f32.mrb[21].mxu0  ;;  %2210 = vmatpush1.bf16.msra.mxu1 %v1970_v12 }
 0x12f   : > { %v9922_v23 = vpop.f32.mrb[22].mxu0  ;;  %v1240_v31 = vpop.f32.mrb[20].mxu1 }
 0x130   : > { %v9926_v25 = vpop.f32.mrb[23].mxu0  ;;  %v1242_v34 = vpop.f32.mrb[21].mxu1 }
 0x131   : > { %v1244_v36 = vpop.f32.mrb[22].mxu1 }
 0x132   : > { %7299 = vmatmul.mubr.msk.bf16.vlgmr.msra.gmra.mrb[128].mxu0 %vm914_vm0, %v9233_v35  ;;  %v1980_v37 = vpack.c.bf16 %v1244_v36, %v1240_v31  ;;  %v1246_v43 = vpop.f32.mrb[23].mxu1 }
 0x133   : > { %1777 = vmatprep.mubr.bf16.mxu0 %v11994_v2  ;;  %v1981_v45 = vpack.c.bf16 %v1246_v43, %v1242_v34  ;;  %v9235_v43 = vld [vmem:[%s9485_s30 + $0x10] sm:$0xff]  }
 0x135   : > { %v9933_v46 = vpop.f32.mrb[24].mxu0  ;;  %2211 = vmatprep.subr.bf16.mxu1 %v1981_v45 }
 0x136   : > { %v9935_v47 = vpop.f32.mrb[25].mxu0  ;;  %2212 = vmatpush1.bf16.msra.mxu1 %v1980_v37 }
 0x137   : > { %v9937_v48 = vpop.f32.mrb[26].mxu0  ;;  %v1250_v57 = vpop.f32.mrb[24].mxu1 }
 0x138   : > { %v9941_v55 = vpop.f32.mrb[27].mxu0  ;;  %v1252_v59 = vpop.f32.mrb[25].mxu1 }
 0x139   : > { %v1254_v61 = vpop.f32.mrb[26].mxu1 }
 0x13a   : > { %7300 = vmatmul.mubr.msk.bf16.gmra.mrb[132].mxu0 %vm914_vm0, %v9234_v60  ;;  %v1990_v8 = vpack.c.bf16 %v1254_v61, %v1250_v57  ;;  %v1256_v10 = vpop.f32.mrb[27].mxu1 }
 0x13b   : > { %1787 = vmatprep.mubr.bf16.mxu0 %v11994_v2  ;;  %v1991_v11 = vpack.c.bf16 %v1256_v10, %v1252_v59 }
 0x13d   : > { %v9948_v12 = vpop.f32.mrb[28].mxu0  ;;  %2213 = vmatprep.subr.bf16.mxu1 %v1991_v11 }
 0x13e   : > { %v9950_v13 = vpop.f32.mrb[29].mxu0  ;;  %2214 = vmatpush1.bf16.msra.mxu1 %v1990_v8  ;;  %v8715_v8 = vld [vmem:[%s11976_s1 + $0x84] ss:$8 sps:$4 sm:$0xff]  }
 0x13f   : > { %v9952_v19 = vpop.f32.mrb[30].mxu0  ;;  %v1260_v35 = vpop.f32.mrb[28].mxu1  ;;  %2233 = vmatprep.mubr.bf16.mxu1 %v8715_v8 }
 0x140   : > { %v9956_v34 = vpop.f32.mrb[31].mxu0  ;;  %v1262_v37 = vpop.f32.mrb[29].mxu1 }
 0x141   : > { %v1264_v45 = vpop.f32.mrb[30].mxu1 }
 0x142   : > { %7301 = vmatmul.mubr.msk.bf16.gmra.mrb[136].mxu0 %vm914_vm0, %v9235_v43  ;;  %v2000_v57 = vpack.c.bf16 %v1264_v45, %v1260_v35  ;;  %v1266_v59 = vpop.f32.mrb[31].mxu1 }
 0x143   : > { %1797 = vmatprep.mubr.bf16.mxu0 %v11994_v2  ;;  %v2001_v60 = vpack.c.bf16 %v1266_v59, %v1262_v37  ;;  %v9236_v59 = vld [vmem:[%s9485_s30 + $0x18] sm:$0xff]  }
 0x145   : > { %v9963_v61 = vpop.f32.mrb[32].mxu0  ;;  %2215 = vmatprep.subr.bf16.mxu1 %v2001_v60 }
 0x146   : > { %v9968_v10 = vpop.f32.mrb[33].mxu0  ;;  %2216 = vmatpush1.bf16.msra.mxu1 %v2000_v57 }
 0x147   : > { %v9970_v11 = vpop.f32.mrb[34].mxu0  ;;  %v1270_v31 = vpop.f32.mrb[32].mxu1 }
 0x148   : > { %v9972_v43 = vpop.f32.mrb[35].mxu0  ;;  %v1272_v37 = vpop.f32.mrb[33].mxu1 }
 0x149   : > { %v1274_v36 = vpop.f32.mrb[34].mxu1 }
 0x14a   : > { %7302 = vmatmul.mubr.msk.bf16.gmra.mrb[140].mxu0 %vm914_vm0, %v9236_v59  ;;  %v2010_v60 = vpack.c.bf16 %v1274_v36, %v1270_v31  ;;  %v1276_v57 = vpop.f32.mrb[35].mxu1  ;;  %v9237_v36 = vld [vmem:[%s9485_s30 + $0x20] sm:$0xff]  }
 0x14b   : > { %1807 = vmatprep.mubr.bf16.mxu0 %v11994_v2  ;;  %v2011_v8 = vpack.c.bf16 %v1276_v57, %v1272_v37 }
 0x14d   : > { %v9981_v49 = vpop.f32.mrb[36].mxu0  ;;  %2217 = vmatprep.subr.bf16.mxu1 %v2011_v8 }
 0x14e   : > { %v9983_v58 = vpop.f32.mrb[37].mxu0  ;;  %2218 = vmatpush1.bf16.msra.mxu1 %v2010_v60 }
 0x14f   : > { %v9985_v35 = vpop.f32.mrb[38].mxu0  ;;  %v1280_v45 = vpop.f32.mrb[36].mxu1 }
 0x150   : > { %v9987_v24 = vpop.f32.mrb[39].mxu0  ;;  %v1282_v33 = vpop.f32.mrb[37].mxu1 }
 0x151   : > { %v1284_v37 = vpop.f32.mrb[38].mxu1 }
 0x152   : > { %7303 = vmatmul.mubr.msk.bf16.gmra.mrb[144].mxu0 %vm914_vm0, %v9237_v36  ;;  %v2020_v57 = vpack.c.bf16 %v1284_v37, %v1280_v45  ;;  %v1286_v8 = vpop.f32.mrb[39].mxu1  ;;  %v9238_v37 = vld [vmem:[%s9485_s30 + $0x28] sm:$0xff]  }
 0x153   : > { %1817 = vmatprep.mubr.bf16.mxu0 %v11994_v2  ;;  %v2021_v60 = vpack.c.bf16 %v1286_v8, %v1282_v33 }
 0x155   : > { %v9996_v6 = vpop.f32.mrb[40].mxu0  ;;  %2219 = vmatprep.subr.bf16.mxu1 %v2021_v60 }
 0x156   : > { %12085 = vst [vmem:[#allocation9_spill] sm:$0xff] %v9996_v6  ;;  %v9998_v9 = vpop.f32.mrb[41].mxu0  ;;  %2220 = vmatpush1.bf16.msra.mxu1 %v2020_v57 }
 0x157   : > { %v10000_v59 = vpop.f32.mrb[42].mxu0  ;;  %v1290_v36 = vpop.f32.mrb[40].mxu1 }
 0x158   : > { %v10004_v53 = vpop.f32.mrb[43].mxu0  ;;  %v1292_v45 = vpop.f32.mrb[41].mxu1 }
 0x159   : > { %v1294_v33 = vpop.f32.mrb[42].mxu1 }
 0x15a   : > { %7304 = vmatmul.mubr.msk.bf16.gmra.mrb[148].mxu0 %vm914_vm0, %v9238_v37  ;;  %v2030_v8 = vpack.c.bf16 %v1294_v33, %v1290_v36  ;;  %v1296_v60 = vpop.f32.mrb[43].mxu1  ;;  %v9239_v33 = vld [vmem:[%s9485_s30 + $0x30] sm:$0xff]  }
 0x15b   : > { %1827 = vmatprep.mubr.bf16.mxu0 %v11994_v2  ;;  %v2031_v57 = vpack.c.bf16 %v1296_v60, %v1292_v45 }
 0x15d   : > { %v10011_v41 = vpop.f32.mrb[44].mxu0  ;;  %2221 = vmatprep.subr.bf16.mxu1 %v2031_v57 }
 0x15e   : > { %12086 = vst [vmem:[#allocation10_spill] sm:$0xff] %v10011_v41  ;;  %v10013_v31 = vpop.f32.mrb[45].mxu0  ;;  %2222 = vmatpush1.bf16.msra.mxu1 %v2030_v8 }
 0x15f   : > { %12087 = vst [vmem:[#allocation11_spill] sm:$0xff] %v10013_v31  ;;  %v10015_v44 = vpop.f32.mrb[46].mxu0  ;;  %v1300_v37 = vpop.f32.mrb[44].mxu1 }
 0x160   : > { %12088 = vst [vmem:[#allocation12_spill] sm:$0xff] %v10015_v44  ;;  %v10019_v29 = vpop.f32.mrb[47].mxu0  ;;  %v1302_v36 = vpop.f32.mrb[45].mxu1 }
 0x161   : > { %12089 = vst [vmem:[#allocation13_spill] sm:$0xff] %v10019_v29  ;;  %v1304_v45 = vpop.f32.mrb[46].mxu1 }
 0x162   : > { %7305 = vmatmul.mubr.msk.bf16.gmra.mrb[152].mxu0 %vm914_vm0, %v9239_v33  ;;  %v2040_v60 = vpack.c.bf16 %v1304_v45, %v1300_v37  ;;  %v1306_v57 = vpop.f32.mrb[47].mxu1  ;;  %v9240_v45 = vld [vmem:[%s9485_s30 + $0x38] sm:$0xff]  }
 0x163   : > { %1837 = vmatprep.mubr.bf16.mxu0 %v11994_v2  ;;  %v2041_v8 = vpack.c.bf16 %v1306_v57, %v1302_v36  ;;  %v12094_v57 = vmov 0  }
 0x165   : > { %v10026_v17 = vpop.f32.mrb[48].mxu0  ;;  %2223 = vmatprep.subr.bf16.mxu1 %v2041_v8 }
 0x166   : > { %12090 = vst [vmem:[#allocation14_spill] sm:$0xff] %v10026_v17  ;;  %v10028_v56 = vpop.f32.mrb[49].mxu0  ;;  %2224 = vmatpush1.bf16.msra.mxu1 %v2040_v60 }
 0x167   : > { %12091 = vst [vmem:[#allocation15_spill] sm:$0xff] %v10028_v56  ;;  %v10030_v20 = vpop.f32.mrb[50].mxu0  ;;  %v1310_v33 = vpop.f32.mrb[48].mxu1 }
 0x168   : > { %12092 = vst [vmem:[#allocation16_spill] sm:$0xff] %v10030_v20  ;;  %v10034_v41 = vpop.f32.mrb[51].mxu0  ;;  %v1312_v37 = vpop.f32.mrb[49].mxu1 }
 0x169   : > { %12093 = vst [vmem:[#allocation17_spill] sm:$0xff] %v10034_v41  ;;  %v1314_v36 = vpop.f32.mrb[50].mxu1 }
 0x16a   : > { %7306 = vmatmul.mubr.msk.bf16.gmra.mrb[156].mxu0 %vm914_vm0, %v9240_v45  ;;  %v2050_v8 = vpack.c.bf16 %v1314_v36, %v1310_v33  ;;  %v1316_v44 = vpop.f32.mrb[51].mxu1  ;;  %v9241_v36 = vld [vmem:[%s9485_s30 + $0x40] sm:$0xff]  }
 0x16b   : > { %1847 = vmatprep.mubr.bf16.mxu0 %v12094_v57  ;;  %v2051_v60 = vpack.c.bf16 %v1316_v44, %v1312_v37 }
 0x16d   : > { %v10041_v31 = vpop.f32.mrb[52].mxu0  ;;  %2225 = vmatprep.subr.bf16.mxu1 %v2051_v60 }
 0x16e   : > { %12095 = vst [vmem:[#allocation18_spill] sm:$0xff] %v10041_v31  ;;  %v10043_v32 = vpop.f32.mrb[53].mxu0  ;;  %2226 = vmatpush1.bf16.msra.mxu1 %v2050_v8 }
 0x16f   : > { %12096 = vst [vmem:[#allocation19_spill] sm:$0xff] %v10043_v32  ;;  %v10045_v17 = vpop.f32.mrb[54].mxu0  ;;  %v1320_v45 = vpop.f32.mrb[52].mxu1 }
 0x170   : > { %12097 = vst [vmem:[#allocation20_spill] sm:$0xff] %v10045_v17  ;;  %v10049_v20 = vpop.f32.mrb[55].mxu0  ;;  %v1322_v33 = vpop.f32.mrb[53].mxu1 }
 0x171   : > { %12098 = vst [vmem:[#allocation21_spill] sm:$0xff] %v10049_v20  ;;  %v1324_v44 = vpop.f32.mrb[54].mxu1 }
 0x172   : > { %7307 = vmatmul.mubr.msk.bf16.gmra.mrb[160].mxu0 %vm914_vm0, %v9241_v36  ;;  %v2060_v37 = vpack.c.bf16 %v1324_v44, %v1320_v45  ;;  %v1326_v60 = vpop.f32.mrb[55].mxu1  ;;  %v9242_v44 = vld [vmem:[%s9485_s30 + $0x48] sm:$0xff]  }
 0x173   : > { %1857 = vmatprep.mubr.bf16.mxu0 %v12094_v57  ;;  %v2061_v8 = vpack.c.bf16 %v1326_v60, %v1322_v33 }
 0x175   : > { %v10056_v41 = vpop.f32.mrb[56].mxu0  ;;  %2227 = vmatprep.subr.bf16.mxu1 %v2061_v8 }
 0x176   : > { %12099 = vst [vmem:[#allocation22_spill] sm:$0xff] %v10056_v41  ;;  %v10058_v2 = vpop.f32.mrb[57].mxu0  ;;  %2228 = vmatpush1.bf16.msra.mxu1 %v2060_v37 }
 0x177   : > { %12100 = vst [vmem:[#allocation23_spill] sm:$0xff] %v10058_v2  ;;  %v10060_v31 = vpop.f32.mrb[58].mxu0  ;;  %v1330_v36 = vpop.f32.mrb[56].mxu1  ;;  %v8713_v2 = vld [vmem:[%s11976_s1 + $0x80] ss:$8 sps:$4 sm:$0xff]  }
 0x178   : > { %12101 = vst [vmem:[#allocation24_spill] sm:$0xff] %v10060_v31  ;;  %v10064_v17 = vpop.f32.mrb[59].mxu0  ;;  %v1332_v45 = vpop.f32.mrb[57].mxu1 }
 0x179   : > { %12102 = vst [vmem:[#allocation25_spill] sm:$0xff] %v10064_v17  ;;  %v1334_v33 = vpop.f32.mrb[58].mxu1 }
 0x17a   : > { %7308 = vmatmul.mubr.msk.bf16.gmra.mrb[164].mxu0 %vm914_vm0, %v9242_v44  ;;  %v2070_v60 = vpack.c.bf16 %v1334_v33, %v1330_v36  ;;  %v1336_v8 = vpop.f32.mrb[59].mxu1  ;;  %v9243_v33 = vld [vmem:[%s9485_s30 + $0x50] sm:$0xff]  }
 0x17b   : > { %1867 = vmatprep.mubr.bf16.mxu0 %v12094_v57  ;;  %v2071_v37 = vpack.c.bf16 %v1336_v8, %v1332_v45 }
 0x17d   : > { %v10071_v20 = vpop.f32.mrb[60].mxu0  ;;  %2229 = vmatprep.subr.bf16.mxu1 %v2071_v37 }
 0x17e   : > { %12103 = vst [vmem:[#allocation26_spill] sm:$0xff] %v10071_v20  ;;  %v10073_v56 = vpop.f32.mrb[61].mxu0  ;;  %2230 = vmatpush1.bf16.msra.mxu1 %v2070_v60 }
 0x17f   : > { %12104 = vst [vmem:[#allocation27_spill] sm:$0xff] %v10073_v56  ;;  %v10075_v41 = vpop.f32.mrb[62].mxu0  ;;  %v1340_v44 = vpop.f32.mrb[60].mxu1 }
 0x180   : > { %12105 = vst [vmem:[#allocation28_spill] sm:$0xff] %v10075_v41  ;;  %v10079_v31 = vpop.f32.mrb[63].mxu0  ;;  %v1342_v36 = vpop.f32.mrb[61].mxu1  ;;  %v9244_v41 = vld [vmem:[%s9485_s30 + $0x58] sm:$0xff]   ;;  %s9251_s30 = scalar_lea.vmem %s9250_s16, 256 }
 0x181   : > { %12106 = vst [vmem:[#allocation29_spill] sm:$0xff] %v10079_v31  ;;  %v1344_v45 = vpop.f32.mrb[62].mxu1  ;;  %p9253_p1 = scmp.lt.s32.totalorder %s9251_s30, %s9245_s21 }
 0x182   : > { %7309 = vmatmul.mubr.msk.bf16.gmra.mrb[168].mxu0 %vm914_vm0, %v9243_v33  ;;  %v2080_v8 = vpack.c.bf16 %v1344_v45, %v1340_v44  ;;  %v1346_v37 = vpop.f32.mrb[63].mxu1  ;;  %v8716_v33 = vld [vmem:[%s11976_s1 + $0x94] ss:$8 sps:$4 sm:$0xff]  }
 0x183   : > { %1877 = vmatprep.mubr.bf16.mxu0 %v12094_v57  ;;  %v2081_v60 = vpack.c.bf16 %v1346_v37, %v1342_v36  ;;  %v8718_v37 = vld [vmem:[%s11976_s1 + $0x90] ss:$8 sps:$4 sm:$0xff]   ;;  %p9254_p2 = por %p9253_p1, %p9252_p0 }
 0x185   : > { %v10086_v17 = vpop.f32.mrb[64].mxu0  ;;  %2231 = vmatprep.subr.bf16.mxu1 %v2081_v60  ;;  %p9255_p3 = pnand %p9254_p2, %p9248_p13 }
 0x186   : > { %12107 = vst [vmem:[#allocation30_spill] sm:$0xff] %v10086_v17  ;;  %v10088_v32 = vpop.f32.mrb[65].mxu0  ;;  %2232 = vmatpush1.bf16.msra.mxu1 %v2080_v8 }
 0x187   : > { %12108 = vst [vmem:[#allocation31_spill] sm:$0xff] %v10088_v32  ;;  %v10093_v20 = vpop.f32.mrb[66].mxu0  ;;  %v1576_v45 = vpop.f32.mrb[64].mxu1 }
 0x188   : > { %12109 = vst [vmem:[#allocation32_spill] sm:$0xff] %v10093_v20  ;;  %v10100_v36 = vpop.f32.mrb[67].mxu0  ;;  %v1578_v60 = vpop.f32.mrb[65].mxu1 }
 0x189   : > { %v1580_v56 = vpop.f32.mrb[66].mxu1  ;;  %2234 = vmatmul.mubr.bf16.vlgmr.msra.gmra.mrb[128].mxu1 %v8713_v2  ;;  %v8719_v2 = vld [vmem:[%s11976_s1 + $0xa4] ss:$8 sps:$4 sm:$0xff]  }
 0x18a   : > { %7310 = vmatmul.mubr.msk.bf16.gmra.mrb[172].mxu0 %vm914_vm0, %v9244_v41  ;;  %v1934_v8 = vpack.c.bf16 %v1580_v56, %v1576_v45  ;;  %v1582_v31 = vpop.f32.mrb[67].mxu1  ;;  %2243 = vmatprep.mubr.bf16.mxu1 %v8716_v33 }
 0x18b   : > { %1887 = vmatprep.mubr.bf16.mxu0 %v12094_v57  ;;  %v1935_v29 = vpack.c.bf16 %v1582_v31, %v1578_v60 }
 0x18d   : > { %v10107_v6 = vpop.f32.mrb[68].mxu0  ;;  %2428 = vmatprep.subr.bf16.mxu1 %v1935_v29  ;;  %v8721_v29 = vld [vmem:[%s11976_s1 + $0xa0] ss:$8 sps:$4 sm:$0xff]  }
 0x18e   : > { %12110 = vst [vmem:[#allocation33_spill] sm:$0xff] %v10107_v6  ;;  %v10109_v44 = vpop.f32.mrb[69].mxu0  ;;  %2429 = vmatpush1.bf16.msra.mxu1 %v1934_v8 }
 0x18f   : > { %12111 = vst [vmem:[#allocation34_spill] sm:$0xff] %v10109_v44  ;;  %v10114_v17 = vpop.f32.mrb[70].mxu0  ;;  %v1586_v31 = vpop.f32.mrb[68].mxu1 }
 0x190   : > { %12112 = vst [vmem:[#allocation35_spill] sm:$0xff] %v10114_v17  ;;  %v10121_v56 = vpop.f32.mrb[71].mxu0  ;;  %v1588_v33 = vpop.f32.mrb[69].mxu1 }
 0x191   : > { %v1590_v45 = vpop.f32.mrb[70].mxu1  ;;  %2244 = vmatmul.mubr.bf16.gmra.mrb[132].mxu1 %v8718_v37 }
 0x192   : > { %7311 = vmatmul.mubr.msk.bf16.gmra.mrb[176].mxu0 %vm914_vm0, %v9692_v62  ;;  %v1944_v60 = vpack.c.bf16 %v1590_v45, %v1586_v31  ;;  %v1592_v8 = vpop.f32.mrb[71].mxu1  ;;  %2253 = vmatprep.mubr.bf16.mxu1 %v8719_v2  ;;  %v8722_v62 = vld [vmem:[%s11976_s1 + $0xb4] ss:$8 sps:$4 sm:$0xff]  }
 0x193   : > { %1897 = vmatprep.mubr.bf16.mxu0 %v12094_v57  ;;  %v1945_v20 = vpack.c.bf16 %v1592_v8, %v1588_v33 }
 0x195   : > { %v10128_v32 = vpop.f32.mrb[72].mxu0  ;;  %2430 = vmatprep.subr.bf16.mxu1 %v1945_v20  ;;  %v8724_v20 = vld [vmem:[%s11976_s1 + $0xb0] ss:$8 sps:$4 sm:$0xff]  }
 0x196   : > { %12113 = vst [vmem:[#allocation36_spill] sm:$0xff] %v10128_v32  ;;  %v10130_v41 = vpop.f32.mrb[73].mxu0  ;;  %2431 = vmatpush1.bf16.msra.mxu1 %v1944_v60 }
 0x197   : > { %12114 = vst [vmem:[#allocation37_spill] sm:$0xff] %v10130_v41  ;;  %v10135_v6 = vpop.f32.mrb[74].mxu0  ;;  %v1596_v31 = vpop.f32.mrb[72].mxu1 }
 0x198   : > { %12115 = vst [vmem:[#allocation38_spill] sm:$0xff] %v10135_v6  ;;  %v10142_v2 = vpop.f32.mrb[75].mxu0  ;;  %v1598_v33 = vpop.f32.mrb[73].mxu1 }
 0x199   : > { %12116 = vst [vmem:[#allocation39_spill] sm:$0xff] %v10142_v2  ;;  %v1600_v45 = vpop.f32.mrb[74].mxu1  ;;  %2254 = vmatmul.mubr.bf16.gmra.mrb[136].mxu1 %v8721_v29 }
 0x19a   : > { %7312 = vmatmul.mubr.msk.bf16.gmra.mrb[180].mxu0 %vm914_vm0, %v9701_v63  ;;  %v1954_v60 = vpack.c.bf16 %v1600_v45, %v1596_v31  ;;  %v1602_v8 = vpop.f32.mrb[75].mxu1  ;;  %2263 = vmatprep.mubr.bf16.mxu1 %v8722_v62  ;;  %v8725_v63 = vld [vmem:[%s11976_s1 + $0xc4] ss:$8 sps:$4 sm:$0xff]  }
 0x19b   : > { %1907 = vmatprep.mubr.bf16.mxu0 %v12094_v57  ;;  %v1955_v17 = vpack.c.bf16 %v1602_v8, %v1598_v33 }
 0x19d   : > { %v10149_v44 = vpop.f32.mrb[76].mxu0  ;;  %2432 = vmatprep.subr.bf16.mxu1 %v1955_v17  ;;  %v8727_v17 = vld [vmem:[%s11976_s1 + $0xc0] ss:$8 sps:$4 sm:$0xff]  }
 0x19e   : > { %12117 = vst [vmem:[#allocation40_spill] sm:$0xff] %v10149_v44  ;;  %v10151_v37 = vpop.f32.mrb[77].mxu0  ;;  %2433 = vmatpush1.bf16.msra.mxu1 %v1954_v60 }
 0x19f   : > { %12118 = vst [vmem:[#allocation41_spill] sm:$0xff] %v10151_v37  ;;  %v10156_v32 = vpop.f32.mrb[78].mxu0  ;;  %v1606_v31 = vpop.f32.mrb[76].mxu1 }
 0x1a0   : > { %12119 = vst [vmem:[#allocation42_spill] sm:$0xff] %v10156_v32  ;;  %v10163_v62 = vpop.f32.mrb[79].mxu0  ;;  %v1608_v33 = vpop.f32.mrb[77].mxu1 }
 0x1a1   : > { %12120 = vst [vmem:[#allocation43_spill] sm:$0xff] %v10163_v62  ;;  %v1610_v45 = vpop.f32.mrb[78].mxu1  ;;  %2264 = vmatmul.mubr.bf16.gmra.mrb[140].mxu1 %v8724_v20  ;;  %v8730_v20 = vld [vmem:[%s11976_s1 + $0xd0] ss:$8 sps:$4 sm:$0xff]  }
 0x1a2   : > { %7313 = vmatmul.mubr.msk.bf16.gmra.mrb[184].mxu0 %vm914_vm0, %v9710_v0  ;;  %v1964_v60 = vpack.c.bf16 %v1610_v45, %v1606_v31  ;;  %v1612_v8 = vpop.f32.mrb[79].mxu1  ;;  %2273 = vmatprep.mubr.bf16.mxu1 %v8725_v63  ;;  %v8728_v0 = vld [vmem:[%s11976_s1 + $0xd4] ss:$8 sps:$4 sm:$0xff]  }
 0x1a3   : > { %1917 = vmatprep.mubr.bf16.mxu0 %v12094_v57  ;;  %v1965_v6 = vpack.c.bf16 %v1612_v8, %v1608_v33 }
 0x1a5   : > { %v10170_v41 = vpop.f32.mrb[80].mxu0  ;;  %2434 = vmatprep.subr.bf16.mxu1 %v1965_v6 }
 0x1a6   : > { %12121 = vst [vmem:[#allocation44_spill] sm:$0xff] %v10170_v41  ;;  %v10172_v29 = vpop.f32.mrb[81].mxu0  ;;  %2435 = vmatpush1.bf16.msra.mxu1 %v1964_v60 }
 0x1a7   : > { %12122 = vst [vmem:[#allocation45_spill] sm:$0xff] %v10172_v29  ;;  %v10177_v44 = vpop.f32.mrb[82].mxu0  ;;  %v1616_v31 = vpop.f32.mrb[80].mxu1 }
 0x1a8   : > { %12123 = vst [vmem:[#allocation46_spill] sm:$0xff] %v10177_v44  ;;  %v10184_v63 = vpop.f32.mrb[83].mxu0  ;;  %v1618_v33 = vpop.f32.mrb[81].mxu1 }
 0x1a9   : > { %12124 = vst [vmem:[#allocation47_spill] sm:$0xff] %v10184_v63  ;;  %v1620_v45 = vpop.f32.mrb[82].mxu1  ;;  %2274 = vmatmul.mubr.bf16.gmra.mrb[144].mxu1 %v8727_v17  ;;  %v8733_v17 = vld [vmem:[%s11976_s1 + $0xe0] ss:$8 sps:$4 sm:$0xff]  }
 0x1aa   : > { %7314 = vmatmul.mubr.msk.bf16.gmra.mrb[188].mxu0 %vm914_vm0, %v9719_v1  ;;  %v1974_v60 = vpack.c.bf16 %v1620_v45, %v1616_v31  ;;  %v1622_v8 = vpop.f32.mrb[83].mxu1  ;;  %2283 = vmatprep.mubr.bf16.mxu1 %v8728_v0  ;;  %v8731_v1 = vld [vmem:[%s11976_s1 + $0xe4] ss:$8 sps:$4 sm:$0xff]  }
 0x1ab   : > { %v1975_v57 = vpack.c.bf16 %v1622_v8, %v1618_v33 }
 0x1ad   : > { %v10190_v32 = vpop.f32.mrb[84].mxu0  ;;  %2436 = vmatprep.subr.bf16.mxu1 %v1975_v57 }
 0x1ae   : > { %12125 = vst [vmem:[#allocation48_spill] sm:$0xff] %v10190_v32  ;;  %v10192_v37 = vpop.f32.mrb[85].mxu0  ;;  %2437 = vmatpush1.bf16.msra.mxu1 %v1974_v60 }
 0x1af   : > { %12126 = vst [vmem:[#allocation49_spill] sm:$0xff] %v10192_v37  ;;  %v10197_v6 = vpop.f32.mrb[86].mxu0  ;;  %v1626_v31 = vpop.f32.mrb[84].mxu1 }
 0x1b0   : > { %12127 = vst [vmem:[#allocation50_spill] sm:$0xff] %v10197_v6  ;;  %v10204_v0 = vpop.f32.mrb[87].mxu0  ;;  %v1628_v33 = vpop.f32.mrb[85].mxu1 }
 0x1b1   : > { %12128 = vst [vmem:[#allocation51_spill] sm:$0xff] %v10204_v0  ;;  %v1630_v45 = vpop.f32.mrb[86].mxu1  ;;  %2284 = vmatmul.mubr.bf16.gmra.mrb[148].mxu1 %v8730_v20  ;;  %v8734_v20 = vld [vmem:[%s11976_s1 + $0xf4] ss:$8 sps:$4 sm:$0xff]  }
 0x1b2   : > { %v1984_v8 = vpack.c.bf16 %v1630_v45, %v1626_v31  ;;  %v1632_v41 = vpop.f32.mrb[87].mxu1  ;;  %2293 = vmatprep.mubr.bf16.mxu1 %v8731_v1  ;;  %v8736_v1 = vld [vmem:[%s11976_s1 + $0xf0] ss:$8 sps:$4 sm:$0xff]  }
 0x1b3   : > { %v1985_v60 = vpack.c.bf16 %v1632_v41, %v1628_v33 }
 0x1b5   : > { %v10208_v44 = vpop.f32.mrb[88].mxu0  ;;  %2438 = vmatprep.subr.bf16.mxu1 %v1985_v60 }
 0x1b6   : > { %12129 = vst [vmem:[#allocation52_spill] sm:$0xff] %v10208_v44  ;;  %v10210_v29 = vpop.f32.mrb[89].mxu0  ;;  %2439 = vmatpush1.bf16.msra.mxu1 %v1984_v8 }
 0x1b7   : > { %12130 = vst [vmem:[#allocation53_spill] sm:$0xff] %v10210_v29  ;;  %v10215_v32 = vpop.f32.mrb[90].mxu0  ;;  %v1636_v31 = vpop.f32.mrb[88].mxu1 }
 0x1b8   : > { %12131 = vst [vmem:[#allocation54_spill] sm:$0xff] %v10215_v32  ;;  %v10222_v41 = vpop.f32.mrb[91].mxu0  ;;  %v1638_v45 = vpop.f32.mrb[89].mxu1 }
 0x1b9   : > { %12132 = vst [vmem:[#allocation55_spill] sm:$0xff] %v10222_v41  ;;  %v1640_v60 = vpop.f32.mrb[90].mxu1  ;;  %2294 = vmatmul.mubr.bf16.gmra.mrb[152].mxu1 %v8733_v17  ;;  %v8739_v17 = vld [vmem:[%s11976_s1 + $0x184] ss:$8 sps:$4 sm:$0xff]  }
 0x1ba   : > { %v1994_v57 = vpack.c.bf16 %v1640_v60, %v1636_v31  ;;  %v1642_v6 = vpop.f32.mrb[91].mxu1  ;;  %2303 = vmatprep.mubr.bf16.mxu1 %v8734_v20  ;;  %v8740_v20 = vld [vmem:[%s11976_s1 + $0x194] ss:$8 sps:$4 sm:$0xff]  }
 0x1bb   : > { %v1995_v8 = vpack.c.bf16 %v1642_v6, %v1638_v45 }
 0x1bd   : > { %v10226_v37 = vpop.f32.mrb[92].mxu0  ;;  %2440 = vmatprep.subr.bf16.mxu1 %v1995_v8 }
 0x1be   : > { %12133 = vst [vmem:[#allocation56_spill] sm:$0xff] %v10226_v37  ;;  %v10228_v0 = vpop.f32.mrb[93].mxu0  ;;  %2441 = vmatpush1.bf16.msra.mxu1 %v1994_v57 }
 0x1bf   : > { %12134 = vst [vmem:[#allocation57_spill] sm:$0xff] %v10228_v0  ;;  %v10233_v44 = vpop.f32.mrb[94].mxu0  ;;  %v1646_v31 = vpop.f32.mrb[92].mxu1 }
 0x1c0   : > { %12135 = vst [vmem:[#allocation58_spill] sm:$0xff] %v10233_v44  ;;  %v10240_v6 = vpop.f32.mrb[95].mxu0  ;;  %v1648_v60 = vpop.f32.mrb[93].mxu1 }
 0x1c1   : > { %12136 = vst [vmem:[#allocation59_spill] sm:$0xff] %v10240_v6  ;;  %v1650_v8 = vpop.f32.mrb[94].mxu1  ;;  %2304 = vmatmul.mubr.bf16.gmra.mrb[156].mxu1 %v8736_v1 }
 0x1c2   : > { %v2004_v33 = vpack.c.bf16 %v1650_v8, %v1646_v31  ;;  %v1652_v32 = vpop.f32.mrb[95].mxu1  ;;  %2460 = vmatprep.mubr.bf16.mxu1 %v8739_v17 }
 0x1c3   : > { %v2005_v57 = vpack.c.bf16 %v1652_v32, %v1648_v60 }
 0x1c5   : > { %v10244_v29 = vpop.f32.mrb[96].mxu0  ;;  %2442 = vmatprep.subr.bf16.mxu1 %v2005_v57 }
 0x1c6   : > { %12137 = vst [vmem:[#allocation60_spill] sm:$0xff] %v10244_v29  ;;  %v10246_v41 = vpop.f32.mrb[97].mxu0  ;;  %2443 = vmatpush1.bf16.msra.mxu1 %v2004_v33 }
 0x1c7   : > { %12138 = vst [vmem:[#allocation61_spill] sm:$0xff] %v10246_v41  ;;  %v10248_v63 = vpop.f32.mrb[98].mxu0  ;;  %v1656_v45 = vpop.f32.mrb[96].mxu1 }
 0x1c8   : > { %12139 = vst [vmem:[#allocation62_spill] sm:$0xff] %v10248_v63  ;;  %v10252_v37 = vpop.f32.mrb[99].mxu0  ;;  %v1658_v31 = vpop.f32.mrb[97].mxu1 }
 0x1c9   : > { %12140 = vst [vmem:[#allocation63_spill] sm:$0xff] %v10252_v37  ;;  %v1660_v17 = vpop.f32.mrb[98].mxu1 }
 0x1ca   : > { %v2014_v32 = vpack.c.bf16 %v1660_v17, %v1656_v45  ;;  %v1662_v60 = vpop.f32.mrb[99].mxu1 }
 0x1cb   : > { %v2015_v8 = vpack.c.bf16 %v1662_v60, %v1658_v31 }
 0x1cd   : > { %v10256_v44 = vpop.f32.mrb[100].mxu0  ;;  %2444 = vmatprep.subr.bf16.mxu1 %v2015_v8 }
 0x1ce   : > { %12141 = vst [vmem:[#allocation64_spill] sm:$0xff] %v10256_v44  ;;  %v10258_v57 = vpop.f32.mrb[101].mxu0  ;;  %2445 = vmatpush1.bf16.msra.mxu1 %v2014_v32 }
 0x1cf   : > { %12142 = vst [vmem:[#allocation65_spill] sm:$0xff] %v10258_v57  ;;  %v10260_v33 = vpop.f32.mrb[102].mxu0  ;;  %v1666_v63 = vpop.f32.mrb[100].mxu1 }
 0x1d0   : > { %12143 = vst [vmem:[#allocation66_spill] sm:$0xff] %v10260_v33  ;;  %v10264_v29 = vpop.f32.mrb[103].mxu0  ;;  %v1668_v45 = vpop.f32.mrb[101].mxu1 }
 0x1d1   : > { %12144 = vst [vmem:[#allocation67_spill] sm:$0xff] %v10264_v29  ;;  %v1670_v17 = vpop.f32.mrb[102].mxu1 }
 0x1d2   : > { %v2024_v31 = vpack.c.bf16 %v1670_v17, %v1666_v63  ;;  %v1672_v60 = vpop.f32.mrb[103].mxu1 }
 0x1d3   : > { %v2025_v41 = vpack.c.bf16 %v1672_v60, %v1668_v45 }
 0x1d5   : > { %v10268_v37 = vpop.f32.mrb[104].mxu0  ;;  %2446 = vmatprep.subr.bf16.mxu1 %v2025_v41 }
 0x1d6   : > { %12145 = vst [vmem:[#allocation68_spill] sm:$0xff] %v10268_v37  ;;  %v10270_v8 = vpop.f32.mrb[105].mxu0  ;;  %2447 = vmatpush1.bf16.msra.mxu1 %v2024_v31 }
 0x1d7   : > { %12146 = vst [vmem:[#allocation69_spill] sm:$0xff] %v10270_v8  ;;  %v10272_v32 = vpop.f32.mrb[106].mxu0  ;;  %v1676_v33 = vpop.f32.mrb[104].mxu1 }
 0x1d8   : > { %12147 = vst [vmem:[#allocation70_spill] sm:$0xff] %v10272_v32  ;;  %v10276_v44 = vpop.f32.mrb[107].mxu0  ;;  %v1678_v63 = vpop.f32.mrb[105].mxu1 }
 0x1d9   : > { %12148 = vst [vmem:[#allocation71_spill] sm:$0xff] %v10276_v44  ;;  %v1680_v17 = vpop.f32.mrb[106].mxu1 }
 0x1da   : > { %v2034_v45 = vpack.c.bf16 %v1680_v17, %v1676_v33  ;;  %v1682_v60 = vpop.f32.mrb[107].mxu1 }
 0x1db   : > { %v2035_v57 = vpack.c.bf16 %v1682_v60, %v1678_v63 }
 0x1dd   : > { %v10280_v29 = vpop.f32.mrb[108].mxu0  ;;  %2448 = vmatprep.subr.bf16.mxu1 %v2035_v57 }
 0x1de   : > { %12149 = vst [vmem:[#allocation72_spill] sm:$0xff] %v10280_v29  ;;  %v10282_v41 = vpop.f32.mrb[109].mxu0  ;;  %2449 = vmatpush1.bf16.msra.mxu1 %v2034_v45 }
 0x1df   : > { %12150 = vst [vmem:[#allocation73_spill] sm:$0xff] %v10282_v41  ;;  %v10284_v31 = vpop.f32.mrb[110].mxu0  ;;  %v1686_v32 = vpop.f32.mrb[108].mxu1 }
 0x1e0   : > { %12151 = vst [vmem:[#allocation74_spill] sm:$0xff] %v10284_v31  ;;  %v10288_v37 = vpop.f32.mrb[111].mxu0  ;;  %v1688_v33 = vpop.f32.mrb[109].mxu1 }
 0x1e1   : > { %12152 = vst [vmem:[#allocation75_spill] sm:$0xff] %v10288_v37  ;;  %v1690_v17 = vpop.f32.mrb[110].mxu1 }
 0x1e2   : > { %v2044_v63 = vpack.c.bf16 %v1690_v17, %v1686_v32  ;;  %v1692_v60 = vpop.f32.mrb[111].mxu1 }
 0x1e3   : > { %v2045_v8 = vpack.c.bf16 %v1692_v60, %v1688_v33 }
 0x1e5   : > { %v10292_v44 = vpop.f32.mrb[112].mxu0  ;;  %2450 = vmatprep.subr.bf16.mxu1 %v2045_v8 }
 0x1e6   : > { %12153 = vst [vmem:[#allocation76_spill] sm:$0xff] %v10292_v44  ;;  %v10294_v57 = vpop.f32.mrb[113].mxu0  ;;  %2451 = vmatpush1.bf16.msra.mxu1 %v2044_v63 }
 0x1e7   : > { %12154 = vst [vmem:[#allocation77_spill] sm:$0xff] %v10294_v57  ;;  %v10296_v45 = vpop.f32.mrb[114].mxu0  ;;  %v1696_v31 = vpop.f32.mrb[112].mxu1 }
 0x1e8   : > { %12155 = vst [vmem:[#allocation78_spill] sm:$0xff] %v10296_v45  ;;  %v10300_v29 = vpop.f32.mrb[115].mxu0  ;;  %v1698_v32 = vpop.f32.mrb[113].mxu1 }
 0x1e9   : > { %12156 = vst [vmem:[#allocation79_spill] sm:$0xff] %v10300_v29  ;;  %v1700_v17 = vpop.f32.mrb[114].mxu1 }
 0x1ea   : > { %v2054_v33 = vpack.c.bf16 %v1700_v17, %v1696_v31  ;;  %v1702_v60 = vpop.f32.mrb[115].mxu1 }
 0x1eb   : > { %v2055_v41 = vpack.c.bf16 %v1702_v60, %v1698_v32 }
 0x1ed   : > { %v10304_v37 = vpop.f32.mrb[116].mxu0  ;;  %2452 = vmatprep.subr.bf16.mxu1 %v2055_v41 }
 0x1ee   : > { %12157 = vst [vmem:[#allocation80_spill] sm:$0xff] %v10304_v37  ;;  %v10306_v8 = vpop.f32.mrb[117].mxu0  ;;  %2453 = vmatpush1.bf16.msra.mxu1 %v2054_v33 }
 0x1ef   : > { %12158 = vst [vmem:[#allocation81_spill] sm:$0xff] %v10306_v8  ;;  %v10308_v63 = vpop.f32.mrb[118].mxu0  ;;  %v1706_v45 = vpop.f32.mrb[116].mxu1 }
 0x1f0   : > { %12159 = vst [vmem:[#allocation82_spill] sm:$0xff] %v10308_v63  ;;  %v10312_v44 = vpop.f32.mrb[119].mxu0  ;;  %v1708_v31 = vpop.f32.mrb[117].mxu1 }
 0x1f1   : > { %12160 = vst [vmem:[#allocation83_spill] sm:$0xff] %v10312_v44  ;;  %v1710_v17 = vpop.f32.mrb[118].mxu1 }
 0x1f2   : > { %v2064_v32 = vpack.c.bf16 %v1710_v17, %v1706_v45  ;;  %v1712_v60 = vpop.f32.mrb[119].mxu1 }
 0x1f3   : > { %v2065_v57 = vpack.c.bf16 %v1712_v60, %v1708_v31 }
 0x1f5   : > { %v10316_v29 = vpop.f32.mrb[120].mxu0  ;;  %2454 = vmatprep.subr.bf16.mxu1 %v2065_v57 }
 0x1f6   : > { %12161 = vst [vmem:[#allocation84_spill] sm:$0xff] %v10316_v29  ;;  %v10318_v41 = vpop.f32.mrb[121].mxu0  ;;  %2455 = vmatpush1.bf16.msra.mxu1 %v2064_v32 }
 0x1f7   : > { %12162 = vst [vmem:[#allocation85_spill] sm:$0xff] %v10318_v41  ;;  %v10320_v33 = vpop.f32.mrb[122].mxu0  ;;  %v1716_v63 = vpop.f32.mrb[120].mxu1 }
 0x1f8   : > { %12163 = vst [vmem:[#allocation86_spill] sm:$0xff] %v10320_v33  ;;  %v10324_v37 = vpop.f32.mrb[123].mxu0  ;;  %v1718_v45 = vpop.f32.mrb[121].mxu1 }
 0x1f9   : > { %12164 = vst [vmem:[#allocation87_spill] sm:$0xff] %v10324_v37  ;;  %v1720_v17 = vpop.f32.mrb[122].mxu1 }
 0x1fa   : > { %v2074_v31 = vpack.c.bf16 %v1720_v17, %v1716_v63  ;;  %v1722_v60 = vpop.f32.mrb[123].mxu1 }
 0x1fb   : > { %v2075_v8 = vpack.c.bf16 %v1722_v60, %v1718_v45 }
 0x1fd   : > { %v10328_v44 = vpop.f32.mrb[124].mxu0  ;;  %2456 = vmatprep.subr.bf16.mxu1 %v2075_v8  ;;  %v8737_v8 = vld [vmem:[%s11976_s1 + $0x180] ss:$8 sps:$4 sm:$0xff]  }
 0x1fe   : > { %12165 = vst [vmem:[#allocation88_spill] sm:$0xff] %v10328_v44  ;;  %v10330_v57 = vpop.f32.mrb[125].mxu0  ;;  %2457 = vmatpush1.bf16.msra.mxu1 %v2074_v31 }
 0x1ff   : > { %12166 = vst [vmem:[#allocation89_spill] sm:$0xff] %v10330_v57  ;;  %v10332_v32 = vpop.f32.mrb[126].mxu0  ;;  %v1726_v33 = vpop.f32.mrb[124].mxu1 }
 0x200   : > { %12167 = vst [vmem:[#allocation90_spill] sm:$0xff] %v10332_v32  ;;  %v10336_v29 = vpop.f32.mrb[127].mxu0  ;;  %v1728_v63 = vpop.f32.mrb[125].mxu1 }
 0x201   : > { %12168 = vst [vmem:[#allocation91_spill] sm:$0xff] %v10336_v29  ;;  %v1730_v17 = vpop.f32.mrb[126].mxu1 }
 0x202   : > { %v2084_v45 = vpack.c.bf16 %v1730_v17, %v1726_v33  ;;  %v1732_v60 = vpop.f32.mrb[127].mxu1 }
 0x203   : > { %v2085_v41 = vpack.c.bf16 %v1732_v60, %v1728_v63 }
 0x205   : > { %v1769_v37 = vpop.f32.mrb[128].mxu0  ;;  %2458 = vmatprep.subr.bf16.mxu1 %v2085_v41  ;;  %v8742_v41 = vld [vmem:[%s11976_s1 + $0x190] ss:$8 sps:$4 sm:$0xff]  }
 0x206   : > { %v1771_v0 = vpop.f32.mrb[129].mxu0  ;;  %2459 = vmatpush1.bf16.msra.mxu1 %v2084_v45  ;;  %v8743_v45 = vld [vmem:[%s11976_s1 + $0x1a4] ss:$8 sps:$4 sm:$0xff]  }
 0x207   : > { %v1773_v31 = vpop.f32.mrb[130].mxu0 }
 0x208   : > { %v1936_v44 = vpack.c.bf16 %v1773_v31, %v1769_v37  ;;  %v1775_v1 = vpop.f32.mrb[131].mxu0 }
 0x209   : > { %v1937_v32 = vpack.c.bf16 %v1775_v1, %v1771_v0  ;;  %2461 = vmatmul.mubr.bf16.vlgmr.msra.gmra.mrb[128].mxu1 %v8737_v8 }
 0x20a   : > { %2470 = vmatprep.mubr.bf16.mxu1 %v8740_v20  ;;  %v8745_v20 = vld [vmem:[%s11976_s1 + $0x1a0] ss:$8 sps:$4 sm:$0xff]  }
 0x20b   : > { %2638 = vmatprep.subr.bf16.mxu1 %v1937_v32  ;;  %v8746_v32 = vld [vmem:[%s11976_s1 + $0x1b4] ss:$8 sps:$4 sm:$0xff]  }
 0x20c   : > { %2639 = vmatpush1.bf16.msra.mxu1 %v1936_v44 }
 0x20d   : > { %v1779_v33 = vpop.f32.mrb[132].mxu0 }
 0x20e   : > { %v1781_v63 = vpop.f32.mrb[133].mxu0 }
 0x20f   : > { %v1783_v17 = vpop.f32.mrb[134].mxu0 }
 0x210   : > { %v1946_v60 = vpack.c.bf16 %v1783_v17, %v1779_v33  ;;  %v1785_v57 = vpop.f32.mrb[135].mxu0 }
 0x211   : > { %v1947_v37 = vpack.c.bf16 %v1785_v57, %v1781_v63  ;;  %2471 = vmatmul.mubr.bf16.gmra.mrb[132].mxu1 %v8742_v41  ;;  %v8748_v41 = vld [vmem:[%s11976_s1 + $0x1b0] ss:$8 sps:$4 sm:$0xff]  }
 0x212   : > { %2480 = vmatprep.mubr.bf16.mxu1 %v8743_v45  ;;  %v8749_v45 = vld [vmem:[%s11976_s1 + $0x1c4] ss:$8 sps:$4 sm:$0xff]  }
 0x213   : > { %2640 = vmatprep.subr.bf16.mxu1 %v1947_v37 }
 0x214   : > { %2641 = vmatpush1.bf16.msra.mxu1 %v1946_v60 }
 0x215   : > { %v1789_v0 = vpop.f32.mrb[136].mxu0 }
 0x216   : > { %v1791_v44 = vpop.f32.mrb[137].mxu0 }
 0x217   : > { %v1793_v1 = vpop.f32.mrb[138].mxu0 }
 0x218   : > { %v1956_v8 = vpack.c.bf16 %v1793_v1, %v1789_v0  ;;  %v1795_v31 = vpop.f32.mrb[139].mxu0  ;;  %v8751_v1 = vld [vmem:[%s11976_s1 + $0x1c0] ss:$8 sps:$4 sm:$0xff]  }
 0x219   : > { %v1957_v33 = vpack.c.bf16 %v1795_v31, %v1791_v44  ;;  %2481 = vmatmul.mubr.bf16.gmra.mrb[136].mxu1 %v8745_v20 }
 0x21a   : > { %2490 = vmatprep.mubr.bf16.mxu1 %v8746_v32 }
 0x21b   : > { %2642 = vmatprep.subr.bf16.mxu1 %v1957_v33 }
 0x21c   : > { %2643 = vmatpush1.bf16.msra.mxu1 %v1956_v8  ;;  %v8752_v8 = vld [vmem:[%s11976_s1 + $0x1d4] ss:$8 sps:$4 sm:$0xff]  }
 0x21d   : > { %v1799_v57 = vpop.f32.mrb[140].mxu0 }
 0x21e   : > { %v1801_v63 = vpop.f32.mrb[141].mxu0 }
 0x21f   : > { %v1803_v17 = vpop.f32.mrb[142].mxu0 }
 0x220   : > { %v1966_v60 = vpack.c.bf16 %v1803_v17, %v1799_v57  ;;  %v1805_v37 = vpop.f32.mrb[143].mxu0  ;;  %v8754_v17 = vld [vmem:[%s11976_s1 + $0x1d0] ss:$8 sps:$4 sm:$0xff]  }
 0x221   : > { %v1967_v0 = vpack.c.bf16 %v1805_v37, %v1801_v63  ;;  %2491 = vmatmul.mubr.bf16.gmra.mrb[140].mxu1 %v8748_v41 }
 0x222   : > { %2500 = vmatprep.mubr.bf16.mxu1 %v8749_v45 }
 0x223   : > { %2644 = vmatprep.subr.bf16.mxu1 %v1967_v0 }
 0x224   : > { %2645 = vmatpush1.bf16.msra.mxu1 %v1966_v60  ;;  %v8755_v60 = vld [vmem:[%s11976_s1 + $0x1e4] ss:$8 sps:$4 sm:$0xff]  }
 0x225   : > { %v1809_v44 = vpop.f32.mrb[144].mxu0 }
 0x226   : > { %v1811_v20 = vpop.f32.mrb[145].mxu0 }
 0x227   : > { %v1813_v32 = vpop.f32.mrb[146].mxu0 }
 0x228   : > { %v1976_v31 = vpack.c.bf16 %v1813_v32, %v1809_v44  ;;  %v1815_v33 = vpop.f32.mrb[147].mxu0  ;;  %v8757_v32 = vld [vmem:[%s11976_s1 + $0x1e0] ss:$8 sps:$4 sm:$0xff]  }
 0x229   : > { %v1977_v57 = vpack.c.bf16 %v1815_v33, %v1811_v20  ;;  %2501 = vmatmul.mubr.bf16.gmra.mrb[144].mxu1 %v8751_v1 }
 0x22a   : > { %2510 = vmatprep.mubr.bf16.mxu1 %v8752_v8 }
 0x22b   : > { %2646 = vmatprep.subr.bf16.mxu1 %v1977_v57 }
 0x22c   : > { %2647 = vmatpush1.bf16.msra.mxu1 %v1976_v31  ;;  %v8758_v31 = vld [vmem:[%s11976_s1 + $0x1f4] ss:$8 sps:$4 sm:$0xff]  }
 0x22d   : > { %v1819_v63 = vpop.f32.mrb[148].mxu0 }
 0x22e   : > { %v1821_v41 = vpop.f32.mrb[149].mxu0 }
 0x22f   : > { %v1823_v45 = vpop.f32.mrb[150].mxu0 }
 0x230   : > { %v1986_v37 = vpack.c.bf16 %v1823_v45, %v1819_v63  ;;  %v1825_v0 = vpop.f32.mrb[151].mxu0  ;;  %v8760_v45 = vld [vmem:[%s11976_s1 + $0x1f0] ss:$8 sps:$4 sm:$0xff]  }
 0x231   : > { %v1987_v44 = vpack.c.bf16 %v1825_v0, %v1821_v41  ;;  %2511 = vmatmul.mubr.bf16.gmra.mrb[148].mxu1 %v8754_v17 }
 0x232   : > { %2520 = vmatprep.mubr.bf16.mxu1 %v8755_v60 }
 0x233   : > { %2648 = vmatprep.subr.bf16.mxu1 %v1987_v44 }
 0x234   : > { %2649 = vmatpush1.bf16.msra.mxu1 %v1986_v37  ;;  %v8763_v37 = vld [vmem:[%s11976_s1 + $0x204] ss:$8 sps:$4 sm:$0xff]  }
 0x235   : > { %v1829_v20 = vpop.f32.mrb[152].mxu0 }
 0x236   : > { %v1831_v1 = vpop.f32.mrb[153].mxu0 }
 0x237   : > { %v1833_v8 = vpop.f32.mrb[154].mxu0 }
 0x238   : > { %v1996_v33 = vpack.c.bf16 %v1833_v8, %v1829_v20  ;;  %v1835_v57 = vpop.f32.mrb[155].mxu0 }
 0x239   : > { %v1997_v63 = vpack.c.bf16 %v1835_v57, %v1831_v1  ;;  %2521 = vmatmul.mubr.bf16.gmra.mrb[152].mxu1 %v8757_v32 }
 0x23a   : > { %2530 = vmatprep.mubr.bf16.mxu1 %v8758_v31 }
 0x23b   : > { %2650 = vmatprep.subr.bf16.mxu1 %v1997_v63 }
 0x23c   : > { %2651 = vmatpush1.bf16.msra.mxu1 %v1996_v33 }
 0x23d   : > { %v1839_v41 = vpop.f32.mrb[156].mxu0 }
 0x23e   : > { %v1841_v17 = vpop.f32.mrb[157].mxu0 }
 0x23f   : > { %v1843_v60 = vpop.f32.mrb[158].mxu0 }
 0x240   : > { %v2006_v0 = vpack.c.bf16 %v1843_v60, %v1839_v41  ;;  %v1845_v44 = vpop.f32.mrb[159].mxu0 }
 0x241   : > { %v2007_v20 = vpack.c.bf16 %v1845_v44, %v1841_v17  ;;  %2531 = vmatmul.mubr.bf16.gmra.mrb[156].mxu1 %v8760_v45 }
 0x242   : > { %2670 = vmatprep.mubr.bf16.mxu1 %v8763_v37 }
 0x243   : > { %2652 = vmatprep.subr.bf16.mxu1 %v2007_v20 }
 0x244   : > { %2653 = vmatpush1.bf16.msra.mxu1 %v2006_v0 }
 0x245   : > { %v1849_v1 = vpop.f32.mrb[160].mxu0 }
 0x246   : > { %v1851_v32 = vpop.f32.mrb[161].mxu0 }
 0x247   : > { %v1853_v8 = vpop.f32.mrb[162].mxu0 }
 0x248   : > { %v2016_v31 = vpack.c.bf16 %v1853_v8, %v1849_v1  ;;  %v1855_v33 = vpop.f32.mrb[163].mxu0 }
 0x249   : > { %v2017_v57 = vpack.c.bf16 %v1855_v33, %v1851_v32 }
 0x24b   : > { %2654 = vmatprep.subr.bf16.mxu1 %v2017_v57 }
 0x24c   : > { %2655 = vmatpush1.bf16.msra.mxu1 %v2016_v31 }
 0x24d   : > { %v1859_v63 = vpop.f32.mrb[164].mxu0 }
 0x24e   : > { %v1861_v29 = vpop.f32.mrb[165].mxu0 }
 0x24f   : > { %v1863_v6 = vpop.f32.mrb[166].mxu0 }
 0x250   : > { %v2026_v62 = vpack.c.bf16 %v1863_v6, %v1859_v63  ;;  %v1865_v2 = vpop.f32.mrb[167].mxu0 }
 0x251   : > { %v2027_v41 = vpack.c.bf16 %v1865_v2, %v1861_v29 }
 0x253   : > { %2656 = vmatprep.subr.bf16.mxu1 %v2027_v41 }
 0x254   : > { %2657 = vmatpush1.bf16.msra.mxu1 %v2026_v62 }
 0x255   : > { %v1869_v17 = vpop.f32.mrb[168].mxu0 }
 0x256   : > { %v1871_v45 = vpop.f32.mrb[169].mxu0 }
 0x257   : > { %v1873_v60 = vpop.f32.mrb[170].mxu0 }
 0x258   : > { %v2036_v37 = vpack.c.bf16 %v1873_v60, %v1869_v17  ;;  %v1875_v0 = vpop.f32.mrb[171].mxu0 }
 0x259   : > { %v2037_v44 = vpack.c.bf16 %v1875_v0, %v1871_v45 }
 0x25b   : > { %2658 = vmatprep.subr.bf16.mxu1 %v2037_v44 }
 0x25c   : > { %2659 = vmatpush1.bf16.msra.mxu1 %v2036_v37 }
 0x25d   : > { %v1879_v20 = vpop.f32.mrb[172].mxu0 }
 0x25e   : > { %v1881_v1 = vpop.f32.mrb[173].mxu0 }
 0x25f   : > { %v1883_v32 = vpop.f32.mrb[174].mxu0 }
 0x260   : > { %v2046_v8 = vpack.c.bf16 %v1883_v32, %v1879_v20  ;;  %v1885_v31 = vpop.f32.mrb[175].mxu0 }
 0x261   : > { %v2047_v33 = vpack.c.bf16 %v1885_v31, %v1881_v1 }
 0x263   : > { %2660 = vmatprep.subr.bf16.mxu1 %v2047_v33 }
 0x264   : > { %2661 = vmatpush1.bf16.msra.mxu1 %v2046_v8 }
 0x265   : > { %v1889_v6 = vpop.f32.mrb[176].mxu0 }
 0x266   : > { %v1891_v2 = vpop.f32.mrb[177].mxu0 }
 0x267   : > { %v1893_v29 = vpop.f32.mrb[178].mxu0 }
 0x268   : > { %v2056_v62 = vpack.c.bf16 %v1893_v29, %v1889_v6  ;;  %v1895_v57 = vpop.f32.mrb[179].mxu0 }
 0x269   : > { %v2057_v63 = vpack.c.bf16 %v1895_v57, %v1891_v2 }
 0x26b   : > { %2662 = vmatprep.subr.bf16.mxu1 %v2057_v63  ;;  %v8761_v63 = vld [vmem:[%s11976_s1 + $0x200] ss:$8 sps:$4 sm:$0xff]  }
 0x26c   : > { %2663 = vmatpush1.bf16.msra.mxu1 %v2056_v62 }
 0x26d   : > { %v1899_v41 = vpop.f32.mrb[180].mxu0 }
 0x26e   : > { %v1901_v17 = vpop.f32.mrb[181].mxu0 }
 0x26f   : > { %v1903_v45 = vpop.f32.mrb[182].mxu0 }
 0x270   : > { %v2066_v60 = vpack.c.bf16 %v1903_v45, %v1899_v41  ;;  %v1905_v37 = vpop.f32.mrb[183].mxu0  ;;  %v8764_v41 = vld [vmem:[%s11976_s1 + $0x214] ss:$8 sps:$4 sm:$0xff]   ;;  %v12170_v45 = vpack.c.bf16 %v9833_v16, %v9826_v14  ;;  %v12173_v14 = vpack.c.bf16 %v9873_v42, %v9866_v39  ;;  %v12174_v16 = vpack.c.bf16 %v9869_v40, %v9862_v38  ;;  %v8772_v40 = vld [vmem:[%s11976_s1 + $0x230] ss:$8 sps:$4 sm:$0xff]  }
 0x271   : > { %v2067_v0 = vpack.c.bf16 %v1905_v37, %v1901_v17  ;;  %v12169_v17 = vpack.c.bf16 %v9837_v18, %v9830_v15  ;;  %v8766_v37 = vld [vmem:[%s11976_s1 + $0x210] ss:$8 sps:$4 sm:$0xff]   ;;  %v8767_v15 = vld [vmem:[%s11976_s1 + $0x224] ss:$8 sps:$4 sm:$0xff]   ;;  %v12175_v18 = vpack.c.bf16 %v9891_v54, %v9884_v51  ;;  %v12178_v38 = vpack.c.bf16 %v9905_v5, %v9898_v3  ;;  %v8775_v3 = vld [vmem:[%s11976_s1 + $0x240] ss:$8 sps:$4 sm:$0xff]  }
 0x272   : > { %v12179_v39 = vpack.c.bf16 %v9926_v25, %v9920_v22  ;;  %v12180_v42 = vpack.c.bf16 %v9922_v23, %v9916_v21  ;;  %v12181_v51 = vpack.c.bf16 %v9941_v55, %v9935_v47  ;;  %v12183_v54 = vpack.c.bf16 %v9956_v34, %v9950_v13  ;;  %v8776_v5 = vld [vmem:[%s11976_s1 + $0x254] ss:$8 sps:$4 sm:$0xff]   ;;  %v8778_v23 = vld [vmem:[%s11976_s1 + $0x250] ss:$8 sps:$4 sm:$0xff]   ;;  %v12195_v13 = vld [vmem:[#allocation12_spill] sm:$0xff] }
 0x273   : > { %2664 = vmatprep.subr.bf16.mxu1 %v2067_v0  ;;  %v12172_v0 = vpack.c.bf16 %v9851_v28, %v9844_v26  ;;  %v8769_v26 = vld [vmem:[%s11976_s1 + $0x220] ss:$8 sps:$4 sm:$0xff]   ;;  %v8770_v28 = vld [vmem:[%s11976_s1 + $0x234] ss:$8 sps:$4 sm:$0xff]   ;;  %v12186_v21 = vpack.c.bf16 %v9970_v11, %v9963_v61  ;;  %v12187_v22 = vpack.c.bf16 %v9987_v24, %v9983_v58  ;;  %v12188_v25 = vpack.c.bf16 %v9985_v35, %v9981_v49 }
 0x274   : > { %2665 = vmatpush1.bf16.msra.mxu1 %v2066_v60  ;;  %v12171_v60 = vpack.c.bf16 %v9855_v30, %v9848_v27  ;;  %v12176_v27 = vpack.c.bf16 %v9887_v52, %v9880_v50  ;;  %v12177_v30 = vpack.c.bf16 %v9909_v7, %v9902_v4  ;;  %v8773_v50 = vld [vmem:[%s11976_s1 + $0x244] ss:$8 sps:$4 sm:$0xff]   ;;  %v12182_v52 = vpack.c.bf16 %v9937_v48, %v9933_v46  ;;  %v12190_v24 = vld [vmem:[#allocation9_spill] sm:$0xff]  ;;  %v8781_v49 = vld [vmem:[%s11976_s1 + $0x260] ss:$8 sps:$4 sm:$0xff]  }
 0x275   : > { %v1909_v44 = vpop.f32.mrb[184].mxu0  ;;  %v12184_v4 = vpack.c.bf16 %v9952_v19, %v9948_v12  ;;  %v12185_v7 = vpack.c.bf16 %v9972_v43, %v9968_v10  ;;  %v8779_v46 = vld [vmem:[%s11976_s1 + $0x264] ss:$8 sps:$4 sm:$0xff]   ;;  %v12189_v47 = vpack.c.bf16 %v10004_v53, %v9998_v9  ;;  %v12191_v48 = vpack.c.bf16 %v10000_v59, %v12190_v24  ;;  %v12192_v55 = vld [vmem:[#allocation13_spill] sm:$0xff]  ;;  %v12196_v19 = vld [vmem:[#allocation10_spill] sm:$0xff] }
 0x276   : > { %v1911_v20 = vpop.f32.mrb[185].mxu0  ;;  %v12193_v58 = vld [vmem:[#allocation11_spill] sm:$0xff]  ;;  %v12197_v34 = vpack.c.bf16 %v12195_v13, %v12196_v19  ;;  %v8782_v53 = vld [vmem:[%s11976_s1 + $0x274] ss:$8 sps:$4 sm:$0xff]   ;;  %v12201_v11 = vld [vmem:[#allocation16_spill] sm:$0xff] }
 0x277   : > { %v1913_v1 = vpop.f32.mrb[186].mxu0  ;;  %v12194_v12 = vpack.c.bf16 %v12192_v55, %v12193_v58  ;;  %v12198_v9 = vld [vmem:[#allocation17_spill] sm:$0xff]  ;;  %v12199_v61 = vld [vmem:[#allocation15_spill] sm:$0xff]  ;;  %v12202_v43 = vld [vmem:[#allocation14_spill] sm:$0xff] }
 0x278   : > { %v2076_v32 = vpack.c.bf16 %v1913_v1, %v1909_v44  ;;  %v1915_v8 = vpop.f32.mrb[187].mxu0  ;;  %v12200_v10 = vpack.c.bf16 %v12198_v9, %v12199_v61  ;;  %v12203_v35 = vpack.c.bf16 %v12201_v11, %v12202_v43  ;;  %v12204_v59 = vld [vmem:[#allocation21_spill] sm:$0xff]  ;;  %v12205_v44 = vld [vmem:[#allocation19_spill] sm:$0xff]  ;;  %v12235_v24 = vld [vmem:[#allocation38_spill] sm:$0xff] }
 0x279   : > { %v2077_v31 = vpack.c.bf16 %v1915_v8, %v1911_v20  ;;  %v12206_v20 = vpack.c.bf16 %v12204_v59, %v12205_v44  ;;  %v8784_v1 = vld [vmem:[%s11976_s1 + $0x270] ss:$8 sps:$4 sm:$0xff]   ;;  %v12238_v58 = vld [vmem:[#allocation43_spill] sm:$0xff]  ;;  %v8848_v13 = vld [vmem:[%s11980_s5 + $0xc8] ss:$20 sps:$4 sm:$0xff]  }
 0x27a   : > { %v12208_v8 = vld [vmem:[#allocation18_spill] sm:$0xff]  ;;  %v8793_v19 = vld [vmem:[%s11976_s1 + $0x20] ss:$8 sps:$4 sm:$0xff]   ;;  %v12245_v43 = vld [vmem:[#allocation45_spill] sm:$0xff] }
 0x27b   : > { %2666 = vmatprep.subr.bf16.mxu1 %v2077_v31  ;;  %v12242_v9 = vld [vmem:[#allocation40_spill] sm:$0xff]  ;;  %v12244_v11 = vld [vmem:[#allocation47_spill] sm:$0xff]  ;;  %v8856_v44 = vld [vmem:[%s11980_s5 + $0x11c] ss:$20 sps:$4 sm:$0xff]  }
 0x27c   : > { %2667 = vmatpush1.bf16.msra.mxu1 %v2076_v32  ;;  %v12207_v32 = vld [vmem:[#allocation20_spill] sm:$0xff]  ;;  %v8851_v59 = vld [vmem:[%s11980_s5 + $0xf0] ss:$20 sps:$4 sm:$0xff]  }
 0x27d   : > { %v1919_v33 = vpop.f32.mrb[188].mxu0  ;;  %v12209_v31 = vpack.c.bf16 %v12207_v32, %v12208_v8  ;;  %v12250_v8 = vld [vmem:[#allocation51_spill] sm:$0xff] }
 0x27e   : > { %v1921_v6 = vpop.f32.mrb[189].mxu0 }
 0x27f   : > { %v1923_v2 = vpop.f32.mrb[190].mxu0 }
 0x280   : > { %v2086_v29 = vpack.c.bf16 %v1923_v2, %v1919_v33  ;;  %v1925_v62 = vpop.f32.mrb[191].mxu0  ;;  %v8787_v33 = vld [vmem:[%s11976_s1 + $0x4] ss:$8 sps:$4 sm:$0xff]  }
 0x281   : > { %v2087_v57 = vpack.c.bf16 %v1925_v62, %v1921_v6  ;;  %v12210_v6 = vld [vmem:[#allocation25_spill] sm:$0xff]  ;;  %v12211_v2 = vld [vmem:[#allocation23_spill] sm:$0xff] }
 0x282   : > { %v8833_v62 = vld [vmem:[%s11980_s5] ss:$20 sps:$4 sm:$0xff]  }
 0x283   : > { %2668 = vmatprep.subr.bf16.mxu1 %v2087_v57  ;;  %v8835_v57 = vld [vmem:[%s11980_s5 + $0x4] ss:$20 sps:$4 sm:$0xff]  }
 0x284   : > { %2669 = vmatpush1.bf16.msra.mxu1 %v2086_v29  ;;  %v12212_v29 = vpack.c.bf16 %v12210_v6, %v12211_v2  ;;  %3965 = vmatprep.subr.bf16.mxu0 %v8835_v57  ;;  %v8854_v6 = vld [vmem:[%s11980_s5 + $0x118] ss:$20 sps:$4 sm:$0xff]  }
 0x285   : > { %2831 = vmatprep.subr.bf16.mxu1 %v12169_v17  ;;  %3966 = vmatpush1.bf16.msra.mxu0 %v8833_v62  ;;  %v8796_v2 = vld [vmem:[%s11976_s1 + $0x30] ss:$8 sps:$4 sm:$0xff]   ;;  %v12254_v57 = vld [vmem:[#allocation48_spill] sm:$0xff] }
 0x286   : > { %v12253_v62 = vld [vmem:[#allocation50_spill] sm:$0xff] }
 0x287   : > { %2671 = vmatmul.mubr.bf16.vlgmr.msra.gmra.mrb[128].mxu1 %v8761_v63  ;;  %v12213_v63 = vld [vmem:[#allocation24_spill] sm:$0xff] }
 0x288   : > { %2832 = vmatpush1.bf16.msra.mxu1 %v12170_v45  ;;  %2680 = vmatprep.mubr.bf16.mxu1 %v8764_v41  ;;  %v12214_v41 = vld [vmem:[#allocation22_spill] sm:$0xff]  ;;  %v8838_v45 = vld [vmem:[%s11980_s5 + $0x2c] ss:$20 sps:$4 sm:$0xff]  }
 0x289   : > { %2833 = vmatprep.subr.bf16.mxu1 %v12171_v60  ;;  %v12215_v17 = vpack.c.bf16 %v12213_v63, %v12214_v41  ;;  %v12216_v60 = vld [vmem:[#allocation29_spill] sm:$0xff]  ;;  %3967 = vmatprep.subr.bf16.mxu0 %v8838_v45  ;;  %v12255_v63 = vpack.c.bf16 %v12253_v62, %v12254_v57  ;;  %v8797_v41 = vld [vmem:[%s11976_s1 + $0x44] ss:$8 sps:$4 sm:$0xff]  }
 0x28a   : > { %v12257_v45 = vld [vmem:[#allocation53_spill] sm:$0xff]  ;;  %v12302_v62 = vld [vmem:[#allocation80_spill] sm:$0xff] }
 0x28c   : > { %2834 = vmatpush1.bf16.msra.mxu1 %v12172_v0 }
 0x28d   : > { %2835 = vmatprep.subr.bf16.mxu1 %v12173_v14  ;;  %v8785_v14 = vld [vmem:[%s11976_s1] ss:$8 sps:$4 sm:$0xff]  }
 0x28f   : > { %2681 = vmatmul.mubr.bf16.gmra.mrb[132].mxu1 %v8766_v37  ;;  %v12217_v37 = vld [vmem:[#allocation27_spill] sm:$0xff] }
 0x290   : > { %2836 = vmatpush1.bf16.msra.mxu1 %v12174_v16  ;;  %2690 = vmatprep.mubr.bf16.mxu1 %v8767_v15  ;;  %v12218_v0 = vpack.c.bf16 %v12216_v60, %v12217_v37  ;;  %v8836_v15 = vld [vmem:[%s11980_s5 + $0x28] ss:$20 sps:$4 sm:$0xff]   ;;  %v8857_v37 = vld [vmem:[%s11980_s5 + $0x140] ss:$20 sps:$4 sm:$0xff]  }
 0x291   : > { %2837 = vmatprep.subr.bf16.mxu1 %v12175_v18  ;;  %v8841_v16 = vld [vmem:[%s11980_s5 + $0x54] ss:$20 sps:$4 sm:$0xff]   ;;  %3968 = vmatpush1.bf16.msra.mxu0 %v8836_v15  ;;  %v12259_v15 = vld [vmem:[#allocation54_spill] sm:$0xff] }
 0x292   : > { %v12219_v18 = vld [vmem:[#allocation28_spill] sm:$0xff]  ;;  %3969 = vmatprep.subr.bf16.mxu0 %v8841_v16 }
 0x294   : > { %2838 = vmatpush1.bf16.msra.mxu1 %v12176_v27 }
 0x295   : > { %2839 = vmatprep.subr.bf16.mxu1 %v12177_v30  ;;  %v12222_v30 = vld [vmem:[#allocation31_spill] sm:$0xff] }
 0x297   : > { %2691 = vmatmul.mubr.bf16.gmra.mrb[136].mxu1 %v8769_v26  ;;  %v12220_v26 = vld [vmem:[#allocation26_spill] sm:$0xff] }
 0x298   : > { %2840 = vmatpush1.bf16.msra.mxu1 %v12178_v38  ;;  %2700 = vmatprep.mubr.bf16.mxu1 %v8770_v28  ;;  %v12221_v27 = vpack.c.bf16 %v12219_v18, %v12220_v26  ;;  %v8788_v28 = vld [vmem:[%s11976_s1 + $0x14] ss:$8 sps:$4 sm:$0xff]   ;;  %v12223_v38 = vpack.c.bf16 %v10100_v36, %v12222_v30  ;;  %v12262_v18 = vld [vmem:[#allocation59_spill] sm:$0xff] }
 0x299   : > { %2841 = vmatprep.subr.bf16.mxu1 %v12179_v39  ;;  %v8839_v39 = vld [vmem:[%s11980_s5 + $0x50] ss:$20 sps:$4 sm:$0xff]   ;;  %v8799_v30 = vld [vmem:[%s11976_s1 + $0x40] ss:$8 sps:$4 sm:$0xff]  }
 0x29a   : > { %3970 = vmatpush1.bf16.msra.mxu0 %v8839_v39  ;;  %v12263_v26 = vld [vmem:[#allocation57_spill] sm:$0xff]  ;;  %v12265_v39 = vld [vmem:[#allocation58_spill] sm:$0xff] }
 0x29c   : > { %2842 = vmatpush1.bf16.msra.mxu1 %v12180_v42  ;;  %v12224_v42 = vld [vmem:[#allocation32_spill] sm:$0xff] }
 0x29d   : > { %2843 = vmatprep.subr.bf16.mxu1 %v12181_v51 }
 0x29f   : > { %2701 = vmatmul.mubr.bf16.gmra.mrb[140].mxu1 %v8772_v40  ;;  %v8844_v40 = vld [vmem:[%s11980_s5 + $0x7c] ss:$20 sps:$4 sm:$0xff]  }
 0x2a0   : > { %2844 = vmatpush1.bf16.msra.mxu1 %v12182_v52  ;;  %2710 = vmatprep.mubr.bf16.mxu1 %v8773_v50  ;;  %v12225_v50 = vld [vmem:[#allocation30_spill] sm:$0xff] }
 0x2a1   : > { %2845 = vmatprep.subr.bf16.mxu1 %v12183_v54  ;;  %v12226_v51 = vpack.c.bf16 %v12224_v42, %v12225_v50  ;;  %v12227_v52 = vld [vmem:[#allocation34_spill] sm:$0xff]  ;;  %3971 = vmatprep.subr.bf16.mxu0 %v8844_v40  ;;  %v12266_v40 = vld [vmem:[#allocation56_spill] sm:$0xff] }
 0x2a2   : > { %v12228_v36 = vpack.c.bf16 %v10121_v56, %v12227_v52  ;;  %v8842_v54 = vld [vmem:[%s11980_s5 + $0x78] ss:$20 sps:$4 sm:$0xff]   ;;  %v12267_v42 = vpack.c.bf16 %v12265_v39, %v12266_v40  ;;  %v8800_v50 = vld [vmem:[%s11976_s1 + $0x54] ss:$8 sps:$4 sm:$0xff]   ;;  %v8817_v40 = vld [vmem:[%s11976_s1 + $0x120] ss:$8 sps:$4 sm:$0xff]  }
 0x2a3   : > { %v8791_v56 = vld [vmem:[%s11976_s1 + $0x24] ss:$8 sps:$4 sm:$0xff]   ;;  %3972 = vmatpush1.bf16.msra.mxu0 %v8842_v54  ;;  %v12269_v52 = vld [vmem:[#allocation61_spill] sm:$0xff] }
 0x2a4   : > { %2846 = vmatpush1.bf16.msra.mxu1 %v12184_v4  ;;  %v8847_v4 = vld [vmem:[%s11980_s5 + $0xa4] ss:$20 sps:$4 sm:$0xff]  }
 0x2a5   : > { %2847 = vmatprep.subr.bf16.mxu1 %v12185_v7  ;;  %v12230_v7 = vld [vmem:[#allocation33_spill] sm:$0xff]  ;;  %3973 = vmatprep.subr.bf16.mxu0 %v8847_v4  ;;  %v12271_v4 = vld [vmem:[#allocation62_spill] sm:$0xff]  ;;  %v8815_v39 = vld [vmem:[%s11976_s1 + $0x124] ss:$8 sps:$4 sm:$0xff]  }
 0x2a6   : > { %v8863_v54 = vld [vmem:[%s11980_s5 + $0x190] ss:$20 sps:$4 sm:$0xff]  }
 0x2a7   : > { %2711 = vmatmul.mubr.bf16.gmra.mrb[144].mxu1 %v8775_v3  ;;  %v8790_v3 = vld [vmem:[%s11976_s1 + $0x10] ss:$8 sps:$4 sm:$0xff]  }
 0x2a8   : > { %2848 = vmatpush1.bf16.msra.mxu1 %v12186_v21  ;;  %2720 = vmatprep.mubr.bf16.mxu1 %v8776_v5  ;;  %v12229_v5 = vld [vmem:[#allocation35_spill] sm:$0xff] }
 0x2a9   : > { %2849 = vmatprep.subr.bf16.mxu1 %v12187_v22  ;;  %v12231_v21 = vpack.c.bf16 %v12229_v5, %v12230_v7  ;;  %v12232_v22 = vld [vmem:[#allocation39_spill] sm:$0xff]  ;;  %v12272_v5 = vld [vmem:[#allocation60_spill] sm:$0xff] }
 0x2aa   : > { %v12273_v7 = vpack.c.bf16 %v12271_v4, %v12272_v5  ;;  %v8829_v4 = vld [vmem:[%s11976_s1 + $0x160] ss:$8 sps:$4 sm:$0xff]   ;;  %v8830_v5 = vld [vmem:[%s11976_s1 + $0x174] ss:$8 sps:$4 sm:$0xff]  }
 0x2ac   : > { %2850 = vmatpush1.bf16.msra.mxu1 %v12188_v25 }
 0x2ad   : > { %2851 = vmatprep.subr.bf16.mxu1 %v12189_v47  ;;  %v8850_v47 = vld [vmem:[%s11980_s5 + $0xcc] ss:$20 sps:$4 sm:$0xff]  }
 0x2af   : > { %2721 = vmatmul.mubr.bf16.gmra.mrb[148].mxu1 %v8778_v23  ;;  %v12233_v23 = vld [vmem:[#allocation37_spill] sm:$0xff] }
 0x2b0   : > { %2852 = vmatpush1.bf16.msra.mxu1 %v12191_v48  ;;  %2730 = vmatprep.mubr.bf16.mxu1 %v8779_v46  ;;  %v12234_v25 = vpack.c.bf16 %v12232_v22, %v12233_v23  ;;  %v8845_v46 = vld [vmem:[%s11980_s5 + $0xa0] ss:$20 sps:$4 sm:$0xff]   ;;  %v12236_v48 = vld [vmem:[#allocation36_spill] sm:$0xff] }
 0x2b1   : > { %2853 = vmatprep.subr.bf16.mxu1 %v12194_v12  ;;  %v12237_v55 = vpack.c.bf16 %v12235_v24, %v12236_v48  ;;  %v12239_v12 = vld [vmem:[#allocation41_spill] sm:$0xff]  ;;  %3974 = vmatpush1.bf16.msra.mxu0 %v8845_v46  ;;  %v8866_v23 = vld [vmem:[%s11980_s5 + $0x1b8] ss:$20 sps:$4 sm:$0xff]  }
 0x2b2   : > { %3975 = vmatprep.subr.bf16.mxu0 %v8850_v47  ;;  %v12277_v46 = vld [vmem:[#allocation66_spill] sm:$0xff]  ;;  %v12278_v47 = vld [vmem:[#allocation64_spill] sm:$0xff] }
 0x2b3   : > { %v12279_v24 = vpack.c.bf16 %v12277_v46, %v12278_v47  ;;  %v8803_v48 = vld [vmem:[%s11976_s1 + $0x64] ss:$8 sps:$4 sm:$0xff]   ;;  %v8877_v46 = vld [vmem:[%s11980_s5 + $0x234] ss:$20 sps:$4 sm:$0xff]  }
 0x2b4   : > { %2854 = vmatpush1.bf16.msra.mxu1 %v12197_v34  ;;  %v8853_v34 = vld [vmem:[%s11980_s5 + $0xf4] ss:$20 sps:$4 sm:$0xff]   ;;  %v8875_v47 = vld [vmem:[%s11980_s5 + $0x230] ss:$20 sps:$4 sm:$0xff]  }
 0x2b5   : > { %2855 = vmatprep.subr.bf16.mxu1 %v12200_v10  ;;  %v8794_v10 = vld [vmem:[%s11976_s1 + $0x34] ss:$8 sps:$4 sm:$0xff]   ;;  %3976 = vmatpush1.bf16.msra.mxu0 %v8848_v13  ;;  %v12284_v13 = vld [vmem:[#allocation68_spill] sm:$0xff] }
 0x2b6   : > { %3977 = vmatprep.subr.bf16.mxu0 %v8853_v34  ;;  %v12286_v34 = vld [vmem:[#allocation75_spill] sm:$0xff] }
 0x2b7   : > { %2731 = vmatmul.mubr.bf16.gmra.mrb[152].mxu1 %v8781_v49  ;;  %v12240_v49 = vpack.c.bf16 %v12238_v58, %v12239_v12  ;;  %v12281_v58 = vld [vmem:[#allocation69_spill] sm:$0xff] }
 0x2b8   : > { %2856 = vmatpush1.bf16.msra.mxu1 %v12203_v35  ;;  %2740 = vmatprep.mubr.bf16.mxu1 %v8782_v53  ;;  %v12241_v53 = vld [vmem:[#allocation42_spill] sm:$0xff]  ;;  %v12246_v35 = vpack.c.bf16 %v12244_v11, %v12245_v43  ;;  %v12290_v11 = vld [vmem:[#allocation72_spill] sm:$0xff] }
 0x2b9   : > { %2857 = vmatprep.subr.bf16.mxu1 %v12206_v20  ;;  %v12243_v61 = vpack.c.bf16 %v12241_v53, %v12242_v9  ;;  %v12247_v20 = vld [vmem:[#allocation46_spill] sm:$0xff]  ;;  %3978 = vmatpush1.bf16.msra.mxu0 %v8851_v59  ;;  %v12287_v53 = vld [vmem:[#allocation73_spill] sm:$0xff]  ;;  %v12292_v59 = vld [vmem:[#allocation79_spill] sm:$0xff] }
 0x2ba   : > { %3979 = vmatprep.subr.bf16.mxu0 %v8856_v44  ;;  %v12288_v9 = vpack.c.bf16 %v12286_v34, %v12287_v53  ;;  %v12293_v44 = vld [vmem:[#allocation77_spill] sm:$0xff] }
 0x2bc   : > { %2858 = vmatpush1.bf16.msra.mxu1 %v12209_v31  ;;  %v12251_v31 = vld [vmem:[#allocation49_spill] sm:$0xff] }
 0x2bd   : > { %2859 = vmatprep.subr.bf16.mxu1 %v12212_v29  ;;  %v8859_v29 = vld [vmem:[%s11980_s5 + $0x144] ss:$20 sps:$4 sm:$0xff]   ;;  %3980 = vmatpush1.bf16.msra.mxu0 %v8854_v6 }
 0x2be   : > { %3981 = vmatprep.subr.bf16.mxu0 %v8859_v29  ;;  %v12301_v29 = vld [vmem:[#allocation82_spill] sm:$0xff] }
 0x2bf   : > { %2741 = vmatmul.mubr.bf16.gmra.mrb[156].mxu1 %v8784_v1  ;;  %v12248_v1 = vld [vmem:[#allocation44_spill] sm:$0xff]  ;;  %v12303_v57 = vpack.c.bf16 %v12301_v29, %v12302_v62 }
 0x2c0   : > { %2860 = vmatpush1.bf16.msra.mxu1 %v12215_v17  ;;  %2863 = vmatprep.mubr.bf16.mxu1 %v8787_v33  ;;  %v12249_v32 = vpack.c.bf16 %v12247_v20, %v12248_v1  ;;  %v12252_v33 = vpack.c.bf16 %v12250_v8, %v12251_v31  ;;  %v12256_v17 = vld [vmem:[#allocation55_spill] sm:$0xff]  ;;  %v12294_v20 = vpack.c.bf16 %v12292_v59, %v12293_v44  ;;  %v12295_v1 = vld [vmem:[#allocation78_spill] sm:$0xff] }
 0x2c1   : > { %2861 = vmatprep.subr.bf16.mxu1 %v12218_v0  ;;  %v12258_v60 = vpack.c.bf16 %v12256_v17, %v12257_v45  ;;  %v8862_v0 = vld [vmem:[%s11980_s5 + $0x16c] ss:$20 sps:$4 sm:$0xff]   ;;  %3982 = vmatpush1.bf16.msra.mxu0 %v8857_v37  ;;  %v12305_v17 = vld [vmem:[#allocation85_spill] sm:$0xff] }
 0x2c2   : > { %3983 = vmatprep.subr.bf16.mxu0 %v8862_v0  ;;  %v12298_v31 = vld [vmem:[#allocation83_spill] sm:$0xff]  ;;  %v12308_v37 = vld [vmem:[#allocation84_spill] sm:$0xff] }
 0x2c4   : > { %2862 = vmatpush1.bf16.msra.mxu1 %v12221_v27  ;;  %v12264_v27 = vpack.c.bf16 %v12262_v18, %v12263_v26  ;;  %v8809_v18 = vld [vmem:[%s11976_s1 + $0x100] ss:$8 sps:$4 sm:$0xff]   ;;  %v12313_v26 = vld [vmem:[#allocation90_spill] sm:$0xff] }
 0x2c5   : > { %3024 = vmatprep.subr.bf16.mxu1 %v12223_v38  ;;  %v8865_v38 = vld [vmem:[%s11980_s5 + $0x194] ss:$20 sps:$4 sm:$0xff]  }
 0x2c7   : > { %2864 = vmatmul.mubr.bf16.vlgmr.msra.gmra.mrb[128].mxu1 %v8785_v14  ;;  %v12260_v14 = vld [vmem:[#allocation52_spill] sm:$0xff] }
 0x2c8   : > { %3025 = vmatpush1.bf16.msra.mxu1 %v12226_v51  ;;  %2873 = vmatprep.mubr.bf16.mxu1 %v8788_v28  ;;  %v12261_v16 = vpack.c.bf16 %v12259_v15, %v12260_v14  ;;  %v8860_v28 = vld [vmem:[%s11980_s5 + $0x168] ss:$20 sps:$4 sm:$0xff]   ;;  %v12268_v51 = vld [vmem:[#allocation63_spill] sm:$0xff]  ;;  %v12311_v14 = vld [vmem:[#allocation89_spill] sm:$0xff] }
 0x2c9   : > { %3026 = vmatprep.subr.bf16.mxu1 %v12228_v36  ;;  %v12270_v36 = vpack.c.bf16 %v12268_v51, %v12269_v52  ;;  %3984 = vmatpush1.bf16.msra.mxu0 %v8860_v28  ;;  %v12310_v15 = vld [vmem:[#allocation91_spill] sm:$0xff] }
 0x2ca   : > { %3985 = vmatprep.subr.bf16.mxu0 %v8865_v38  ;;  %v8814_v38 = vld [vmem:[%s11976_s1 + $0x110] ss:$8 sps:$4 sm:$0xff]   ;;  %v8821_v51 = vld [vmem:[%s11976_s1 + $0x144] ss:$8 sps:$4 sm:$0xff]   ;;  %v8823_v52 = vld [vmem:[%s11976_s1 + $0x140] ss:$8 sps:$4 sm:$0xff]  }
 0x2cc   : > { %3027 = vmatpush1.bf16.msra.mxu1 %v12231_v21  ;;  %v12274_v21 = vld [vmem:[#allocation67_spill] sm:$0xff] }
 0x2cd   : > { %3028 = vmatprep.subr.bf16.mxu1 %v12234_v25  ;;  %3986 = vmatpush1.bf16.msra.mxu0 %v8863_v54  ;;  %v8802_v25 = vld [vmem:[%s11976_s1 + $0x50] ss:$8 sps:$4 sm:$0xff]  }
 0x2ce   : > { %v8826_v54 = vld [vmem:[%s11976_s1 + $0x150] ss:$8 sps:$4 sm:$0xff]  }
 0x2cf   : > { %2874 = vmatmul.mubr.bf16.gmra.mrb[132].mxu1 %v8790_v3  ;;  %v8868_v3 = vld [vmem:[%s11980_s5 + $0x1bc] ss:$20 sps:$4 sm:$0xff]  }
 0x2d0   : > { %3029 = vmatpush1.bf16.msra.mxu1 %v12237_v55  ;;  %2883 = vmatprep.mubr.bf16.mxu1 %v8791_v56  ;;  %v12275_v56 = vld [vmem:[#allocation65_spill] sm:$0xff]  ;;  %v12280_v55 = vld [vmem:[#allocation71_spill] sm:$0xff] }
 0x2d1   : > { %3030 = vmatprep.subr.bf16.mxu1 %v12240_v49  ;;  %v12276_v22 = vpack.c.bf16 %v12274_v21, %v12275_v56  ;;  %3987 = vmatprep.subr.bf16.mxu0 %v8868_v3  ;;  %v12282_v12 = vpack.c.bf16 %v12280_v55, %v12281_v58  ;;  %v12283_v49 = vld [vmem:[#allocation70_spill] sm:$0xff]  ;;  %v8827_v3 = vld [vmem:[%s11976_s1 + $0x164] ss:$8 sps:$4 sm:$0xff]   ;;  %v12316_v21 = vmov 0   ;;  %v3203_v58 = vlaneseq }
 0x2d2   : > { %3988 = vmatpush1.bf16.msra.mxu0 %v8866_v23  ;;  %v8871_v56 = vld [vmem:[%s11980_s5 + $0x1e4] ss:$20 sps:$4 sm:$0xff]   ;;  %v8874_v23 = vld [vmem:[%s11980_s5 + $0x20c] ss:$20 sps:$4 sm:$0xff]  }
 0x2d3   : > { %3989 = vmatprep.subr.bf16.mxu0 %v8871_v56  ;;  %v8883_v55 = vld [vmem:[%s11980_s5 + $0xc] ss:$20 sps:$4 sm:$0xff]  }
 0x2d4   : > { %3031 = vmatpush1.bf16.msra.mxu1 %v12243_v61  ;;  %v8805_v61 = vld [vmem:[%s11976_s1 + $0x60] ss:$8 sps:$4 sm:$0xff]  }
 0x2d5   : > { %3032 = vmatprep.subr.bf16.mxu1 %v12246_v35  ;;  %v8806_v35 = vld [vmem:[%s11976_s1 + $0x74] ss:$8 sps:$4 sm:$0xff]  }
 0x2d7   : > { %2884 = vmatmul.mubr.bf16.gmra.mrb[136].mxu1 %v8793_v19  ;;  %v12285_v19 = vpack.c.bf16 %v12283_v49, %v12284_v13  ;;  %v3201_v13 = vld [vmem:[%s11978_s3] sm:$0x3] }
 0x2d8   : > { %3033 = vmatpush1.bf16.msra.mxu1 %v12249_v32  ;;  %2893 = vmatprep.mubr.bf16.mxu1 %v8794_v10  ;;  %v12289_v10 = vld [vmem:[#allocation74_spill] sm:$0xff]  ;;  %v12296_v32 = vld [vmem:[#allocation76_spill] sm:$0xff] }
 0x2d9   : > { %3034 = vmatprep.subr.bf16.mxu1 %v12252_v33  ;;  %v12291_v43 = vpack.c.bf16 %v12289_v10, %v12290_v11  ;;  %v12297_v8 = vpack.c.bf16 %v12295_v1, %v12296_v32  ;;  %v12299_v33 = vld [vmem:[#allocation81_spill] sm:$0xff] }
 0x2da   : > { %v12300_v6 = vpack.c.bf16 %v12298_v31, %v12299_v33 }
 0x2dc   : > { %3035 = vmatpush1.bf16.msra.mxu1 %v12255_v63  ;;  %v8811_v63 = vld [vmem:[%s11976_s1 + $0x104] ss:$8 sps:$4 sm:$0xff]  }
 0x2dd   : > { %3036 = vmatprep.subr.bf16.mxu1 %v12258_v60  ;;  %v12307_v60 = vld [vmem:[#allocation86_spill] sm:$0xff] }
 0x2de   : > { %v12309_v0 = vpack.c.bf16 %v12307_v60, %v12308_v37 }
 0x2df   : > { %2894 = vmatmul.mubr.bf16.gmra.mrb[140].mxu1 %v8796_v2  ;;  %v8808_v2 = vld [vmem:[%s11976_s1 + $0x70] ss:$8 sps:$4 sm:$0xff]  }
 0x2e0   : > { %3037 = vmatpush1.bf16.msra.mxu1 %v12261_v16  ;;  %2903 = vmatprep.mubr.bf16.mxu1 %v8797_v41  ;;  %v12304_v41 = vld [vmem:[#allocation87_spill] sm:$0xff]  ;;  %v12312_v16 = vpack.c.bf16 %v12310_v15, %v12311_v14 }
 0x2e1   : > { %3038 = vmatprep.subr.bf16.mxu1 %v12264_v27  ;;  %v12306_v45 = vpack.c.bf16 %v12304_v41, %v12305_v17  ;;  %v12314_v27 = vld [vmem:[#allocation88_spill] sm:$0xff] }
 0x2e2   : > { %v12315_v28 = vpack.c.bf16 %v12313_v26, %v12314_v27 }
 0x2e4   : > { %3039 = vmatpush1.bf16.msra.mxu1 %v12267_v42  ;;  %v8818_v42 = vld [vmem:[%s11976_s1 + $0x134] ss:$8 sps:$4 sm:$0xff]  }
 0x2e5   : > { %3040 = vmatprep.subr.bf16.mxu1 %v12270_v36  ;;  %v8824_v36 = vld [vmem:[%s11976_s1 + $0x154] ss:$8 sps:$4 sm:$0xff]  }
 0x2e7   : > { %2904 = vmatmul.mubr.bf16.gmra.mrb[144].mxu1 %v8799_v30  ;;  %v8812_v30 = vld [vmem:[%s11976_s1 + $0x114] ss:$8 sps:$4 sm:$0xff]  }
 0x2e8   : > { %3041 = vmatpush1.bf16.msra.mxu1 %v12273_v7  ;;  %2913 = vmatprep.mubr.bf16.mxu1 %v8800_v50  ;;  %v8820_v50 = vld [vmem:[%s11976_s1 + $0x130] ss:$8 sps:$4 sm:$0xff]  }
 0x2e9   : > { %3042 = vmatprep.subr.bf16.mxu1 %v12276_v22  ;;  %v8832_v7 = vld [vmem:[%s11976_s1 + $0x170] ss:$8 sps:$4 sm:$0xff]   ;;  %v8869_v22 = vld [vmem:[%s11980_s5 + $0x1e0] ss:$20 sps:$4 sm:$0xff]  }
 0x2ea   : > { %3990 = vmatpush1.bf16.msra.mxu0 %v8869_v22 }
 0x2eb   : > { %3991 = vmatprep.subr.bf16.mxu0 %v8874_v23 }
 0x2ec   : > { %3043 = vmatpush1.bf16.msra.mxu1 %v12279_v24  ;;  %v8880_v24 = vld [vmem:[%s11980_s5 + $0x25c] ss:$20 sps:$4 sm:$0xff]  }
 0x2ed   : > { %3044 = vmatprep.subr.bf16.mxu1 %v12282_v12  ;;  %v3204_v12 = vshrl.u32 %v3203_v58, 7 }
 0x2ef   : > { %2914 = vmatmul.mubr.bf16.gmra.mrb[148].mxu1 %v8802_v25  ;;  %v8872_v25 = vld [vmem:[%s11980_s5 + $0x208] ss:$20 sps:$4 sm:$0xff]   ;;  %v3205_v49 = vsub.s32 0, %v3204_v12 }
 0x2f0   : > { %3045 = vmatpush1.bf16.msra.mxu1 %v12285_v19  ;;  %2923 = vmatprep.mubr.bf16.mxu1 %v8803_v48  ;;  %v8878_v48 = vld [vmem:[%s11980_s5 + $0x258] ss:$20 sps:$4 sm:$0xff]   ;;  %v3209_v19 = vsub.s32 1, %v3204_v12 }
 0x2f1   : > { %3046 = vmatprep.subr.bf16.mxu1 %v12288_v9  ;;  %3992 = vmatpush1.bf16.msra.mxu0 %v8872_v25  ;;  %v10824_v34 = vrot.slane %v3201_v13, %v3205_v49 }
 0x2f2   : > { %3993 = vmatprep.subr.bf16.mxu0 %v8877_v46  ;;  %v10826_v53 = vrot.slane %v3201_v13, %v3209_v19 }
 0x2f4   : > { %3047 = vmatpush1.bf16.msra.mxu1 %v12291_v43 }
 0x2f5   : > { %3048 = vmatprep.subr.bf16.mxu1 %v12294_v20  ;;  %3994 = vmatpush1.bf16.msra.mxu0 %v8875_v47 }
 0x2f6   : > { %3995 = vmatprep.subr.bf16.mxu0 %v8880_v24 }
 0x2f7   : > { %2924 = vmatmul.mubr.bf16.gmra.mrb[152].mxu1 %v8805_v61 }
 0x2f8   : > { %3049 = vmatpush1.bf16.msra.mxu1 %v12297_v8  ;;  %2933 = vmatprep.mubr.bf16.mxu1 %v8806_v35 }
 0x2f9   : > { %3050 = vmatprep.subr.bf16.mxu1 %v12300_v6  ;;  %3996 = vmatpush1.bf16.msra.mxu0 %v8878_v48 }
 0x2fa   : > { %4078 = vmatprep.subr.bf16.mxu0 %v8883_v55 }
 0x2fc   : > { %3051 = vmatpush1.bf16.msra.mxu1 %v12303_v57 }
 0x2fd   : > { %3052 = vmatprep.subr.bf16.mxu1 %v12306_v45 }
 0x2ff   : > { %2934 = vmatmul.mubr.bf16.gmra.mrb[156].mxu1 %v8808_v2 }
 0x300   : > { %3053 = vmatpush1.bf16.msra.mxu1 %v12309_v0  ;;  %3056 = vmatprep.mubr.bf16.mxu1 %v8811_v63 }
 0x301   : > { %3054 = vmatprep.subr.bf16.mxu1 %v12312_v16 }
 0x304   : > { %3055 = vmatpush1.bf16.msra.mxu1 %v12315_v28 }
 0x307   : > { %3057 = vmatmul.mubr.bf16.vlgmr.msra.gmra.mrb[128].mxu1 %v8809_v18 }
 0x308   : > { %3066 = vmatprep.mubr.bf16.mxu1 %v8812_v30 }
 0x30f   : > { %3067 = vmatmul.mubr.bf16.gmra.mrb[132].mxu1 %v8814_v38 }
 0x310   : > { %3076 = vmatprep.mubr.bf16.mxu1 %v8815_v39 }
 0x317   : > { %3077 = vmatmul.mubr.bf16.gmra.mrb[136].mxu1 %v8817_v40 }
 0x318   : > { %3086 = vmatprep.mubr.bf16.mxu1 %v8818_v42 }
 0x31f   : > { %3087 = vmatmul.mubr.bf16.gmra.mrb[140].mxu1 %v8820_v50 }
 0x320   : > { %3096 = vmatprep.mubr.bf16.mxu1 %v8821_v51 }
 0x327   : > { %3097 = vmatmul.mubr.bf16.gmra.mrb[144].mxu1 %v8823_v52 }
 0x328   : > { %3106 = vmatprep.mubr.bf16.mxu1 %v8824_v36 }
 0x32f   : > { %3107 = vmatmul.mubr.bf16.gmra.mrb[148].mxu1 %v8826_v54 }
 0x330   : > { %3116 = vmatprep.mubr.bf16.mxu1 %v8827_v3 }
 0x337   : > { %3117 = vmatmul.mubr.bf16.gmra.mrb[152].mxu1 %v8829_v4 }
 0x338   : > { %3126 = vmatprep.mubr.bf16.mxu1 %v8830_v5 }
 0x33f   : > { %3127 = vmatmul.mubr.bf16.gmra.mrb[156].mxu1 %v8832_v7 }
 0x340   : > { %5188 = vmatprep.mubr.bf16.mxu1 %v12316_v21 }
 0x3da   : > { %v3058_v9 = vpop.f32.mrb[128].mxu1 }
 0x3db   : > { %v3213_v61 = vadd.f32 %v10824_v34, %v3058_v9  ;;  %v3060_v10 = vpop.f32.mrb[129].mxu1 }
 0x3dc   : > { %v3214_v11 = vadd.f32 %v10826_v53, %v3060_v10  ;;  %v3062_v43 = vpop.f32.mrb[130].mxu1 }
 0x3dd   : > { %v7459_v35 = vmul.f32 -1.442695, %v3213_v61  ;;  %v3215_v59 = vadd.f32 %v10824_v34, %v3062_v43  ;;  %v3064_v44 = vpop.f32.mrb[131].mxu1 }
 0x3de   : > { %v7460_v20 = vmul.f32 -1.442695, %v3214_v11  ;;  %v3216_v1 = vadd.f32 %v10826_v53, %v3064_v44 }
 0x3df   : > { %9041 = vpow2.f32 %v7459_v35  ;;  %v7461_v32 = vmul.f32 -1.442695, %v3215_v59 }
 0x3e0   : > { %9043 = vpow2.f32 %v7460_v20  ;;  %v7462_v8 = vmul.f32 -1.442695, %v3216_v1 }
 0x3e1   : > { %9045 = vpow2.f32 %v7461_v32 }
 0x3e2   : > { %9047 = vpow2.f32 %v7462_v8  ;;  %v3068_v31 = vpop.f32.mrb[132].mxu1  ;;  %v8881_v8 = vld [vmem:[%s11980_s5 + $0x8] ss:$20 sps:$4 sm:$0xff]  }
 0x3e3   : > { %v3217_v33 = vadd.f32 %v10824_v34, %v3068_v31  ;;  %v3070_v6 = vpop.f32.mrb[133].mxu1 }
 0x3e4   : > { %v3218_v2 = vadd.f32 %v10826_v53, %v3070_v6  ;;  %v3072_v29 = vpop.f32.mrb[134].mxu1 }
 0x3e5   : > { %v7463_v62 = vmul.f32 -1.442695, %v3217_v33  ;;  %v3219_v57 = vadd.f32 %v10824_v34, %v3072_v29  ;;  %v3074_v63 = vpop.f32.mrb[135].mxu1  ;;  %v8886_v29 = vld [vmem:[%s11980_s5 + $0x34] ss:$20 sps:$4 sm:$0xff]  }
 0x3e6   : > { %v7464_v41 = vmul.f32 -1.442695, %v3218_v2  ;;  %v3220_v17 = vadd.f32 %v10826_v53, %v3074_v63 }
 0x3e7   : > { %9049 = vpow2.f32 %v7463_v62  ;;  %v7465_v45 = vmul.f32 -1.442695, %v3219_v57 }
 0x3e8   : > { %9051 = vpow2.f32 %v7464_v41  ;;  %v7466_v60 = vmul.f32 -1.442695, %v3220_v17 }
 0x3e9   : > { %v9042_v37 = vpop.eup %9041  ;;  %9053 = vpow2.f32 %v7465_v45 }
 0x3ea   : > { %v9044_v0 = vpop.eup %9043  ;;  %v3341_v15 = vadd.f32 1.0, %v9042_v37  ;;  %9055 = vpow2.f32 %v7466_v60  ;;  %v3078_v14 = vpop.f32.mrb[136].mxu1 }
 0x3eb   : > { %v9046_v16 = vpop.eup %9045  ;;  %v3342_v18 = vadd.f32 1.0, %v9044_v0  ;;  %v3221_v26 = vadd.f32 %v10824_v34, %v3078_v14  ;;  %v3080_v27 = vpop.f32.mrb[137].mxu1 }
 0x3ec   : > { %v9048_v28 = vpop.eup %9047  ;;  %9057 = vrcp.f32 %v3341_v15  ;;  %v3343_v30 = vadd.f32 1.0, %v9046_v16  ;;  %v3222_v38 = vadd.f32 %v10826_v53, %v3080_v27  ;;  %v3082_v39 = vpop.f32.mrb[138].mxu1 }
 0x3ed   : > { %9059 = vrcp.f32 %v3342_v18  ;;  %v3344_v40 = vadd.f32 1.0, %v9048_v28  ;;  %v7467_v42 = vmul.f32 -1.442695, %v3221_v26  ;;  %v3223_v50 = vadd.f32 %v10824_v34, %v3082_v39  ;;  %v3084_v51 = vpop.f32.mrb[139].mxu1  ;;  %v8884_v26 = vld [vmem:[%s11980_s5 + $0x30] ss:$20 sps:$4 sm:$0xff]  }
 0x3ee   : > { %9061 = vrcp.f32 %v3343_v30  ;;  %v7468_v52 = vmul.f32 -1.442695, %v3222_v38  ;;  %v3224_v36 = vadd.f32 %v10826_v53, %v3084_v51  ;;  %v8889_v30 = vld [vmem:[%s11980_s5 + $0x5c] ss:$20 sps:$4 sm:$0xff]  }
 0x3ef   : > { %9063 = vrcp.f32 %v3344_v40  ;;  %v7469_v54 = vmul.f32 -1.442695, %v3223_v50 }
 0x3f0   : > { %9065 = vpow2.f32 %v7467_v42  ;;  %v7470_v3 = vmul.f32 -1.442695, %v3224_v36  ;;  %v8887_v36 = vld [vmem:[%s11980_s5 + $0x58] ss:$20 sps:$4 sm:$0xff]  }
 0x3f1   : > { %v9050_v4 = vpop.eup %9049  ;;  %9067 = vpow2.f32 %v7468_v52 }
 0x3f2   : > { %v9052_v5 = vpop.eup %9051  ;;  %v3345_v7 = vadd.f32 1.0, %v9050_v4  ;;  %9069 = vpow2.f32 %v7469_v54  ;;  %v3088_v56 = vpop.f32.mrb[140].mxu1 }
 0x3f3   : > { %v9054_v22 = vpop.eup %9053  ;;  %v3346_v23 = vadd.f32 1.0, %v9052_v5  ;;  %9071 = vpow2.f32 %v7470_v3  ;;  %v3225_v25 = vadd.f32 %v10824_v34, %v3088_v56  ;;  %v3090_v46 = vpop.f32.mrb[141].mxu1 }
 0x3f4   : > { %v9056_v47 = vpop.eup %9055  ;;  %9073 = vrcp.f32 %v3345_v7  ;;  %v3347_v24 = vadd.f32 1.0, %v9054_v22  ;;  %v3226_v48 = vadd.f32 %v10826_v53, %v3090_v46  ;;  %v3092_v55 = vpop.f32.mrb[142].mxu1  ;;  %v8892_v7 = vld [vmem:[%s11980_s5 + $0x84] ss:$20 sps:$4 sm:$0xff]  }
 0x3f5   : > { %9075 = vrcp.f32 %v3346_v23  ;;  %v3348_v58 = vadd.f32 1.0, %v9056_v47  ;;  %v7471_v12 = vmul.f32 -1.442695, %v3225_v25  ;;  %v3227_v49 = vadd.f32 %v10824_v34, %v3092_v55  ;;  %v3094_v13 = vpop.f32.mrb[143].mxu1 }
 0x3f6   : > { %v9058_v19 = vpop.eup %9057  ;;  %9077 = vrcp.f32 %v3347_v24  ;;  %v7472_v9 = vmul.f32 -1.442695, %v3226_v48  ;;  %v3228_v61 = vadd.f32 %v10826_v53, %v3094_v13  ;;  %v8890_v13 = vld [vmem:[%s11980_s5 + $0x80] ss:$20 sps:$4 sm:$0xff]  }
 0x3f7   : > { %v9060_v10 = vpop.eup %9059  ;;  %9079 = vrcp.f32 %v3348_v58  ;;  %v7473_v11 = vmul.f32 -1.442695, %v3227_v49 }
 0x3f8   : > { %v9062_v43 = vpop.eup %9061  ;;  %9081 = vpow2.f32 %v7471_v12  ;;  %v7474_v35 = vmul.f32 -1.442695, %v3228_v61  ;;  %v8895_v61 = vld [vmem:[%s11980_s5 + $0xac] ss:$20 sps:$4 sm:$0xff]  }
 0x3f9   : > { %v9064_v59 = vpop.eup %9063  ;;  %9083 = vpow2.f32 %v7472_v9  ;;  %v10844_v44 = vpack.c.bf16 %v9062_v43, %v9058_v19 }
 0x3fa   : > { %v9066_v20 = vpop.eup %9065  ;;  %9085 = vpow2.f32 %v7473_v11  ;;  %v3098_v1 = vpop.f32.mrb[144].mxu1  ;;  %v10846_v32 = vpack.c.bf16 %v9064_v59, %v9060_v10 }
 0x3fb   : > { %v9068_v31 = vpop.eup %9067  ;;  %v3349_v33 = vadd.f32 1.0, %v9066_v20  ;;  %9087 = vpow2.f32 %v7474_v35  ;;  %v3229_v6 = vadd.f32 %v10824_v34, %v3098_v1  ;;  %v3100_v2 = vpop.f32.mrb[145].mxu1 }
 0x3fc   : > { %v9070_v62 = vpop.eup %9069  ;;  %v3350_v57 = vadd.f32 1.0, %v9068_v31  ;;  %v3230_v63 = vadd.f32 %v10826_v53, %v3100_v2  ;;  %v3102_v41 = vpop.f32.mrb[146].mxu1  ;;  %3997 = vmatprep.mubr.bf16.mxu0 %v10846_v32 }
 0x3fd   : > { %v9072_v17 = vpop.eup %9071  ;;  %9089 = vrcp.f32 %v3349_v33  ;;  %v3351_v45 = vadd.f32 1.0, %v9070_v62  ;;  %v7475_v60 = vmul.f32 -1.442695, %v3229_v6  ;;  %v3231_v37 = vadd.f32 %v10824_v34, %v3102_v41  ;;  %v3104_v0 = vpop.f32.mrb[147].mxu1  ;;  %3998 = vmatmul.mubr.bf16.vlgmr.msra.gmra.mrb[192].mxu0 %v10844_v44  ;;  %v8893_v6 = vld [vmem:[%s11980_s5 + $0xa8] ss:$20 sps:$4 sm:$0xff]  }
 0x3fe   : > { %v9074_v15 = vpop.eup %9073  ;;  %9091 = vrcp.f32 %v3350_v57  ;;  %v3352_v14 = vadd.f32 1.0, %v9072_v17  ;;  %v7476_v16 = vmul.f32 -1.442695, %v3230_v63  ;;  %v3232_v18 = vadd.f32 %v10826_v53, %v3104_v0  ;;  %4079 = vmatpush1.bf16.msra.mxu0 %v8881_v8  ;;  %v8898_v63 = vld [vmem:[%s11980_s5 + $0xd4] ss:$20 sps:$4 sm:$0xff]  }
 0x3ff   : > { %v9076_v27 = vpop.eup %9075  ;;  %9093 = vrcp.f32 %v3351_v45  ;;  %v7477_v28 = vmul.f32 -1.442695, %v3231_v37  ;;  %4080 = vmatprep.subr.bf16.mxu0 %v8886_v29 }
 0x400   : > { %v9078_v38 = vpop.eup %9077  ;;  %9095 = vrcp.f32 %v3352_v14  ;;  %v7478_v39 = vmul.f32 -1.442695, %v3232_v18 }
 0x401   : > { %v9080_v40 = vpop.eup %9079  ;;  %9097 = vpow2.f32 %v7475_v60  ;;  %v10866_v42 = vpack.c.bf16 %v9078_v38, %v9074_v15  ;;  %v8901_v38 = vld [vmem:[%s11980_s5 + $0xfc] ss:$20 sps:$4 sm:$0xff]  }
 0x402   : > { %v9082_v50 = vpop.eup %9081  ;;  %9099 = vpow2.f32 %v7476_v16  ;;  %v3108_v51 = vpop.f32.mrb[148].mxu1  ;;  %4081 = vmatpush1.bf16.msra.mxu0 %v8884_v26  ;;  %v10868_v52 = vpack.c.bf16 %v9080_v40, %v9076_v27  ;;  %v8896_v27 = vld [vmem:[%s11980_s5 + $0xd0] ss:$20 sps:$4 sm:$0xff]  }
 0x403   : > { %v9084_v54 = vpop.eup %9083  ;;  %v3353_v3 = vadd.f32 1.0, %v9082_v50  ;;  %9101 = vpow2.f32 %v7477_v28  ;;  %v3233_v4 = vadd.f32 %v10824_v34, %v3108_v51  ;;  %v3110_v5 = vpop.f32.mrb[149].mxu1  ;;  %4082 = vmatprep.subr.bf16.mxu0 %v8889_v30 }
 0x404   : > { %v9086_v56 = vpop.eup %9085  ;;  %v3354_v22 = vadd.f32 1.0, %v9084_v54  ;;  %9103 = vpow2.f32 %v7478_v39  ;;  %v3234_v23 = vadd.f32 %v10826_v53, %v3110_v5  ;;  %v3112_v25 = vpop.f32.mrb[150].mxu1  ;;  %4007 = vmatprep.mubr.bf16.mxu0 %v10868_v52 }
 0x405   : > { %v9088_v46 = vpop.eup %9087  ;;  %9105 = vrcp.f32 %v3353_v3  ;;  %v3355_v47 = vadd.f32 1.0, %v9086_v56  ;;  %v7479_v24 = vmul.f32 -1.442695, %v3233_v4  ;;  %v3235_v48 = vadd.f32 %v10824_v34, %v3112_v25  ;;  %v3114_v55 = vpop.f32.mrb[151].mxu1  ;;  %4008 = vmatmul.mubr.bf16.gmra.mrb[196].mxu0 %v10866_v42 }
 0x406   : > { %9107 = vrcp.f32 %v3354_v22  ;;  %v3356_v58 = vadd.f32 1.0, %v9088_v46  ;;  %v7480_v12 = vmul.f32 -1.442695, %v3234_v23  ;;  %v3236_v49 = vadd.f32 %v10826_v53, %v3114_v55  ;;  %4083 = vmatpush1.bf16.msra.mxu0 %v8887_v36  ;;  %v8904_v46 = vld [vmem:[%s11980_s5 + $0x124] ss:$20 sps:$4 sm:$0xff]  }
 0x407   : > { %v9090_v19 = vpop.eup %9089  ;;  %9109 = vrcp.f32 %v3355_v47  ;;  %v7481_v9 = vmul.f32 -1.442695, %v3235_v48  ;;  %4084 = vmatprep.subr.bf16.mxu0 %v8892_v7  ;;  %v8899_v7 = vld [vmem:[%s11980_s5 + $0xf8] ss:$20 sps:$4 sm:$0xff]  }
 0x408   : > { %v9092_v10 = vpop.eup %9091  ;;  %9111 = vrcp.f32 %v3356_v58  ;;  %v7482_v11 = vmul.f32 -1.442695, %v3236_v49 }
 0x409   : > { %v9094_v43 = vpop.eup %9093  ;;  %9113 = vpow2.f32 %v7479_v24 }
 0x40a   : > { %v9096_v35 = vpop.eup %9095  ;;  %9115 = vpow2.f32 %v7480_v12  ;;  %v3118_v59 = vpop.f32.mrb[152].mxu1  ;;  %4085 = vmatpush1.bf16.msra.mxu0 %v8890_v13  ;;  %v10888_v20 = vpack.c.bf16 %v9094_v43, %v9090_v19 }
 0x40b   : > { %v9098_v1 = vpop.eup %9097  ;;  %9117 = vpow2.f32 %v7481_v9  ;;  %v3237_v8 = vadd.f32 %v10824_v34, %v3118_v59  ;;  %v3120_v31 = vpop.f32.mrb[153].mxu1  ;;  %v10891_v33 = vpack.c.bf16 %v9096_v35, %v9092_v10  ;;  %4086 = vmatprep.subr.bf16.mxu0 %v8895_v61  ;;  %v8902_v61 = vld [vmem:[%s11980_s5 + $0x120] ss:$20 sps:$4 sm:$0xff]  }
 0x40c   : > { %v9100_v2 = vpop.eup %9099  ;;  %v3357_v29 = vadd.f32 1.0, %v9098_v1  ;;  %9119 = vpow2.f32 %v7482_v11  ;;  %v3238_v62 = vadd.f32 %v10826_v53, %v3120_v31  ;;  %v3122_v57 = vpop.f32.mrb[154].mxu1  ;;  %v8907_v11 = vld [vmem:[%s11980_s5 + $0x14c] ss:$20 sps:$4 sm:$0xff]  }
 0x40d   : > { %v9102_v41 = vpop.eup %9101  ;;  %v3358_v17 = vadd.f32 1.0, %v9100_v2  ;;  %v3239_v45 = vadd.f32 %v10824_v34, %v3122_v57  ;;  %4017 = vmatprep.mubr.bf16.mxu0 %v10891_v33  ;;  %v3124_v60 = vpop.f32.mrb[155].mxu1  ;;  %v7483_v15 = vmul.f32 -1.442695, %v3237_v8 }
 0x40e   : > { %v9104_v37 = vpop.eup %9103  ;;  %9121 = vrcp.f32 %v3357_v29  ;;  %v3359_v0 = vadd.f32 1.0, %v9102_v41  ;;  %v3240_v14 = vadd.f32 %v10826_v53, %v3124_v60  ;;  %4018 = vmatmul.mubr.bf16.gmra.mrb[200].mxu0 %v10888_v20  ;;  %v7484_v26 = vmul.f32 -1.442695, %v3238_v62  ;;  %v8910_v62 = vld [vmem:[%s11980_s5 + $0x174] ss:$20 sps:$4 sm:$0xff]  }
 0x40f   : > { %v9106_v16 = vpop.eup %9105  ;;  %9123 = vrcp.f32 %v3358_v17  ;;  %v3360_v18 = vadd.f32 1.0, %v9104_v37  ;;  %4087 = vmatpush1.bf16.msra.mxu0 %v8893_v6  ;;  %v7485_v30 = vmul.f32 -1.442695, %v3239_v45  ;;  %v8905_v6 = vld [vmem:[%s11980_s5 + $0x148] ss:$20 sps:$4 sm:$0xff]  }
 0x410   : > { %v9108_v28 = vpop.eup %9107  ;;  %9125 = vrcp.f32 %v3359_v0  ;;  %4088 = vmatprep.subr.bf16.mxu0 %v8898_v63  ;;  %v7486_v40 = vmul.f32 -1.442695, %v3240_v14  ;;  %v8908_v37 = vld [vmem:[%s11980_s5 + $0x170] ss:$20 sps:$4 sm:$0xff]  }
 0x411   : > { %v9110_v39 = vpop.eup %9109  ;;  %9127 = vrcp.f32 %v3360_v18 }
 0x412   : > { %v9112_v50 = vpop.eup %9111  ;;  %9129 = vpow2.f32 %v7483_v15  ;;  %v3128_v51 = vpop.f32.mrb[156].mxu1  ;;  %v10910_v36 = vpack.c.bf16 %v9110_v39, %v9106_v16  ;;  %v8913_v15 = vld [vmem:[%s11980_s5 + $0x19c] ss:$20 sps:$4 sm:$0xff]   ;;  %v8916_v39 = vld [vmem:[%s11980_s5 + $0x1c4] ss:$20 sps:$4 sm:$0xff]  }
 0x413   : > { %v9114_v54 = vpop.eup %9113  ;;  %9131 = vpow2.f32 %v7484_v26  ;;  %v3241_v3 = vadd.f32 %v10824_v34, %v3128_v51  ;;  %4089 = vmatpush1.bf16.msra.mxu0 %v8896_v27  ;;  %v3130_v4 = vpop.f32.mrb[157].mxu1  ;;  %v10913_v5 = vpack.c.bf16 %v9112_v50, %v9108_v28  ;;  %v8911_v28 = vld [vmem:[%s11980_s5 + $0x198] ss:$20 sps:$4 sm:$0xff]  }
 0x414   : > { %v9116_v56 = vpop.eup %9115  ;;  %v3361_v22 = vadd.f32 1.0, %v9114_v54  ;;  %9133 = vpow2.f32 %v7485_v30  ;;  %v3242_v23 = vadd.f32 %v10826_v53, %v3130_v4  ;;  %v3132_v25 = vpop.f32.mrb[158].mxu1  ;;  %4090 = vmatprep.subr.bf16.mxu0 %v8901_v38  ;;  %v8914_v4 = vld [vmem:[%s11980_s5 + $0x1c0] ss:$20 sps:$4 sm:$0xff]  }
 0x415   : > { %v9118_v47 = vpop.eup %9117  ;;  %v3362_v24 = vadd.f32 1.0, %v9116_v56  ;;  %9135 = vpow2.f32 %v7486_v40  ;;  %v3243_v48 = vadd.f32 %v10824_v34, %v3132_v25  ;;  %4027 = vmatprep.mubr.bf16.mxu0 %v10913_v5  ;;  %v3134_v55 = vpop.f32.mrb[159].mxu1  ;;  %v7487_v49 = vmul.f32 -1.442695, %v3241_v3  ;;  %v8919_v56 = vld [vmem:[%s11980_s5 + $0x1ec] ss:$20 sps:$4 sm:$0xff]  }
 0x416   : > { %v9120_v58 = vpop.eup %9119  ;;  %9137 = vrcp.f32 %v3361_v22  ;;  %v3363_v12 = vadd.f32 1.0, %v9118_v47  ;;  %v3244_v13 = vadd.f32 %v10826_v53, %v3134_v55  ;;  %4028 = vmatmul.mubr.bf16.gmra.mrb[204].mxu0 %v10910_v36  ;;  %v7488_v9 = vmul.f32 -1.442695, %v3242_v23 }
 0x417   : > { %9139 = vrcp.f32 %v3362_v24  ;;  %v3364_v19 = vadd.f32 1.0, %v9120_v58  ;;  %4091 = vmatpush1.bf16.msra.mxu0 %v8899_v7  ;;  %v7489_v10 = vmul.f32 -1.442695, %v3243_v48  ;;  %v8917_v24 = vld [vmem:[%s11980_s5 + $0x1e8] ss:$20 sps:$4 sm:$0xff]  }
 0x418   : > { %v9122_v34 = vpop.eup %9121  ;;  %9141 = vrcp.f32 %v3363_v12  ;;  %4092 = vmatprep.subr.bf16.mxu0 %v8904_v46  ;;  %v7490_v53 = vmul.f32 -1.442695, %v3244_v13  ;;  %v8922_v48 = vld [vmem:[%s11980_s5 + $0x214] ss:$20 sps:$4 sm:$0xff]   ;;  %v8920_v58 = vld [vmem:[%s11980_s5 + $0x210] ss:$20 sps:$4 sm:$0xff]  }
 0x419   : > { %v9124_v43 = vpop.eup %9123  ;;  %9143 = vrcp.f32 %v3364_v19 }
 0x41a   : > { %v9126_v35 = vpop.eup %9125  ;;  %9145 = vpow2.f32 %v7487_v49  ;;  %v8925_v49 = vld [vmem:[%s11980_s5 + $0x23c] ss:$20 sps:$4 sm:$0xff]  }
 0x41b   : > { %v9128_v59 = vpop.eup %9127  ;;  %9147 = vpow2.f32 %v7488_v9  ;;  %4093 = vmatpush1.bf16.msra.mxu0 %v8902_v61  ;;  %v10932_v1 = vpack.c.bf16 %v9126_v35, %v9122_v34  ;;  %v8923_v34 = vld [vmem:[%s11980_s5 + $0x238] ss:$20 sps:$4 sm:$0xff]  }
 0x41c   : > { %v9130_v8 = vpop.eup %9129  ;;  %9149 = vpow2.f32 %v7489_v10  ;;  %v10934_v31 = vpack.c.bf16 %v9128_v59, %v9124_v43  ;;  %4094 = vmatprep.subr.bf16.mxu0 %v8907_v11  ;;  %v8928_v10 = vld [vmem:[%s11980_s5 + $0x264] ss:$20 sps:$4 sm:$0xff]   ;;  %v8926_v11 = vld [vmem:[%s11980_s5 + $0x260] ss:$20 sps:$4 sm:$0xff]  }
 0x41d   : > { %v9132_v2 = vpop.eup %9131  ;;  %v3365_v29 = vadd.f32 1.0, %v9130_v8  ;;  %9151 = vpow2.f32 %v7490_v53  ;;  %v8929_v43 = vld [vmem:[%s11980_s5 + $0x150] ss:$20 sps:$4 sm:$0xff]   ;;  %v8931_v35 = vld [vmem:[%s11980_s5 + $0x178] ss:$20 sps:$4 sm:$0xff]  }
 0x41e   : > { %v9134_v57 = vpop.eup %9133  ;;  %v3366_v63 = vadd.f32 1.0, %v9132_v2  ;;  %4037 = vmatprep.mubr.bf16.mxu0 %v10934_v31  ;;  %v8930_v53 = vld [vmem:[%s11980_s5 + $0x10] ss:$20 sps:$4 sm:$0xff]   ;;  %v8932_v59 = vld [vmem:[%s11980_s5 + $0x38] ss:$20 sps:$4 sm:$0xff]  }
 0x41f   : > { %v9136_v41 = vpop.eup %9135  ;;  %9153 = vrcp.f32 %v3365_v29  ;;  %v3367_v17 = vadd.f32 1.0, %v9134_v57  ;;  %4038 = vmatmul.mubr.bf16.gmra.mrb[208].mxu0 %v10932_v1  ;;  %v8933_v8 = vld [vmem:[%s11980_s5 + $0x1a0] ss:$20 sps:$4 sm:$0xff]   ;;  %v8935_v2 = vld [vmem:[%s11980_s5 + $0x1c8] ss:$20 sps:$4 sm:$0xff]  }
 0x420   : > { %v9138_v45 = vpop.eup %9137  ;;  %9155 = vrcp.f32 %v3366_v63  ;;  %v3368_v60 = vadd.f32 1.0, %v9136_v41  ;;  %4095 = vmatpush1.bf16.msra.mxu0 %v8905_v6  ;;  %v8934_v6 = vld [vmem:[%s11980_s5 + $0x60] ss:$20 sps:$4 sm:$0xff]   ;;  %v8936_v29 = vld [vmem:[%s11980_s5 + $0x88] ss:$20 sps:$4 sm:$0xff]  }
 0x421   : > { %v9140_v0 = vpop.eup %9139  ;;  %9157 = vrcp.f32 %v3367_v17  ;;  %4096 = vmatprep.subr.bf16.mxu0 %v8910_v62  ;;  %v8937_v62 = vld [vmem:[%s11980_s5 + $0x1f0] ss:$20 sps:$4 sm:$0xff]   ;;  %v8939_v63 = vld [vmem:[%s11980_s5 + $0x218] ss:$20 sps:$4 sm:$0xff]   ;;  %v8941_v17 = vld [vmem:[%s11980_s5 + $0x240] ss:$20 sps:$4 sm:$0xff]  }
 0x422   : > { %v9142_v14 = vpop.eup %9141  ;;  %9159 = vrcp.f32 %v3368_v60  ;;  %v8938_v57 = vld [vmem:[%s11980_s5 + $0xb0] ss:$20 sps:$4 sm:$0xff]   ;;  %v8940_v41 = vld [vmem:[%s11980_s5 + $0xd8] ss:$20 sps:$4 sm:$0xff]   ;;  %v8943_v60 = vld [vmem:[%s11980_s5 + $0x268] ss:$20 sps:$4 sm:$0xff]  }
 0x423   : > { %v9144_v16 = vpop.eup %9143  ;;  %v10950_v18 = vpack.c.bf16 %v9142_v14, %v9138_v45  ;;  %v8942_v45 = vld [vmem:[%s11980_s5 + $0x100] ss:$20 sps:$4 sm:$0xff]  }
 0x424   : > { %v9146_v26 = vpop.eup %9145  ;;  %4097 = vmatpush1.bf16.msra.mxu0 %v8908_v37  ;;  %v10952_v27 = vpack.c.bf16 %v9144_v16, %v9140_v0  ;;  %v8944_v37 = vld [vmem:[%s11980_s5 + $0x128] ss:$20 sps:$4 sm:$0xff]  }
 0x425   : > { %v9148_v30 = vpop.eup %9147  ;;  %v3369_v38 = vadd.f32 1.0, %v9146_v26  ;;  %4098 = vmatprep.subr.bf16.mxu0 %v8913_v15 }
 0x426   : > { %v9150_v40 = vpop.eup %9149  ;;  %v3370_v50 = vadd.f32 1.0, %v9148_v30  ;;  %4047 = vmatprep.mubr.bf16.mxu0 %v10952_v27 }
 0x427   : > { %v9152_v51 = vpop.eup %9151  ;;  %9161 = vrcp.f32 %v3369_v38  ;;  %v3371_v54 = vadd.f32 1.0, %v9150_v40  ;;  %4048 = vmatmul.mubr.bf16.gmra.mrb[212].mxu0 %v10950_v18 }
 0x428   : > { %9163 = vrcp.f32 %v3370_v50  ;;  %v3372_v3 = vadd.f32 1.0, %v9152_v51  ;;  %4099 = vmatpush1.bf16.msra.mxu0 %v8911_v28 }
 0x429   : > { %v9154_v7 = vpop.eup %9153  ;;  %9165 = vrcp.f32 %v3371_v54  ;;  %4100 = vmatprep.subr.bf16.mxu0 %v8916_v39 }
 0x42a   : > { %v9156_v22 = vpop.eup %9155  ;;  %9167 = vrcp.f32 %v3372_v3 }
 0x42b   : > { %v9158_v23 = vpop.eup %9157 }
 0x42c   : > { %v9160_v25 = vpop.eup %9159  ;;  %4101 = vmatpush1.bf16.msra.mxu0 %v8914_v4  ;;  %v10968_v46 = vpack.c.bf16 %v9158_v23, %v9154_v7 }
 0x42d   : > { %v10970_v47 = vpack.c.bf16 %v9160_v25, %v9156_v22  ;;  %4102 = vmatprep.subr.bf16.mxu0 %v8919_v56 }
 0x42f   : > { %4057 = vmatprep.mubr.bf16.mxu0 %v10970_v47 }
 0x430   : > { %4058 = vmatmul.mubr.bf16.gmra.mrb[216].mxu0 %v10968_v46 }
 0x431   : > { %v9162_v55 = vpop.eup %9161  ;;  %4103 = vmatpush1.bf16.msra.mxu0 %v8917_v24 }
 0x432   : > { %v9164_v12 = vpop.eup %9163  ;;  %4104 = vmatprep.subr.bf16.mxu0 %v8922_v48 }
 0x433   : > { %v9166_v13 = vpop.eup %9165 }
 0x434   : > { %v9168_v19 = vpop.eup %9167  ;;  %v10986_v9 = vpack.c.bf16 %v9166_v13, %v9162_v55 }
 0x435   : > { %4105 = vmatpush1.bf16.msra.mxu0 %v8920_v58  ;;  %v10988_v61 = vpack.c.bf16 %v9168_v19, %v9164_v12 }
 0x436   : > { %4106 = vmatprep.subr.bf16.mxu0 %v8925_v49 }
 0x437   : > { %4067 = vmatprep.mubr.bf16.mxu0 %v10988_v61 }
 0x438   : > { %4068 = vmatmul.mubr.bf16.gmra.mrb[220].mxu0 %v10986_v9 }
 0x439   : > { %4107 = vmatpush1.bf16.msra.mxu0 %v8923_v34  ;;  %4110 = vmatprep.mubr.bf16.mxu0 %v10846_v32 }
 0x43a   : > { %4108 = vmatprep.subr.bf16.mxu0 %v8928_v10 }
 0x43d   : > { %4109 = vmatpush1.bf16.msra.mxu0 %v8926_v11 }
 0x43e   : > { %7837 = vmatprep.subr.bf16.mxu0 %v8929_v43 }
 0x440   : > { %4111 = vmatmul.mubr.bf16.vlgmr.msra.gmra.mrb[224].mxu0 %v10844_v44 }
 0x441   : > { %4120 = vmatprep.mubr.bf16.mxu0 %v10868_v52  ;;  %7838 = vmatpush3.bf16.msra.mxu0 %v8930_v53 }
 0x442   : > { %7839 = vmatprep.subr.bf16.mxu0 %v8931_v35  ;;  %v8946_v35 = vld [vmem:[%s11979_s4 + $0x28] sm:$0xff]  }
 0x445   : > { %7840 = vmatpush3.bf16.msra.mxu0 %v8932_v59  ;;  %v8947_v59 = vld [vmem:[%s11979_s4 + $0x30] sm:$0xff]  }
 0x446   : > { %7841 = vmatprep.subr.bf16.mxu0 %v8933_v8 }
 0x448   : > { %4121 = vmatmul.mubr.bf16.gmra.mrb[228].mxu0 %v10866_v42 }
 0x449   : > { %4130 = vmatprep.mubr.bf16.mxu0 %v10891_v33  ;;  %7842 = vmatpush3.bf16.msra.mxu0 %v8934_v6 }
 0x44a   : > { %7843 = vmatprep.subr.bf16.mxu0 %v8935_v2 }
 0x44d   : > { %7844 = vmatpush3.bf16.msra.mxu0 %v8936_v29 }
 0x44e   : > { %7845 = vmatprep.subr.bf16.mxu0 %v8937_v62 }
 0x450   : > { %4131 = vmatmul.mubr.bf16.gmra.mrb[232].mxu0 %v10888_v20 }
 0x451   : > { %4140 = vmatprep.mubr.bf16.mxu0 %v10913_v5  ;;  %7846 = vmatpush3.bf16.msra.mxu0 %v8938_v57 }
 0x452   : > { %7847 = vmatprep.subr.bf16.mxu0 %v8939_v63  ;;  %v8948_v63 = vld [vmem:[%s11979_s4 + $0x38] sm:$0xff]  }
 0x455   : > { %7848 = vmatpush3.bf16.msra.mxu0 %v8940_v41  ;;  %v8949_v41 = vld [vmem:[%s11979_s4 + $0x60] sm:$0xff]  }
 0x456   : > { %7849 = vmatprep.subr.bf16.mxu0 %v8941_v17 }
 0x458   : > { %4141 = vmatmul.mubr.bf16.gmra.mrb[236].mxu0 %v10910_v36 }
 0x459   : > { %4150 = vmatprep.mubr.bf16.mxu0 %v10934_v31  ;;  %7850 = vmatpush3.bf16.msra.mxu0 %v8942_v45 }
 0x45a   : > { %7851 = vmatprep.subr.bf16.mxu0 %v8943_v60 }
 0x45d   : > { %7852 = vmatpush3.bf16.msra.mxu0 %v8944_v37 }
 0x460   : > { %4151 = vmatmul.mubr.bf16.gmra.mrb[240].mxu0 %v10932_v1 }
 0x461   : > { %4160 = vmatprep.mubr.bf16.mxu0 %v10952_v27 }
 0x468   : > { %4161 = vmatmul.mubr.bf16.gmra.mrb[244].mxu0 %v10950_v18 }
 0x469   : > { %4170 = vmatprep.mubr.bf16.mxu0 %v10970_v47 }
 0x470   : > { %4171 = vmatmul.mubr.bf16.gmra.mrb[248].mxu0 %v10968_v46 }
 0x471   : > { %4180 = vmatprep.mubr.bf16.mxu0 %v10988_v61 }
 0x478   : > { %4181 = vmatmul.mubr.bf16.gmra.mrb[252].mxu0 %v10986_v9 }
 0x479   : > { %4223 = vmatprep.mubr.bf16.mxu0 %v10846_v32 }
 0x480   : > { %4224 = vmatmul.mubr.bf16.vlgmr.msra.gmra.mrb[0].mxu0 %v10844_v44  ;;  %v8945_v44 = vld [vmem:[%s11979_s4 + $0x20] sm:$0xff]  }
 0x481   : > { %4231 = vmatprep.mubr.bf16.mxu0 %v10868_v52 }
 0x488   : > { %4232 = vmatmul.mubr.bf16.gmra.mrb[4].mxu0 %v10866_v42 }
 0x489   : > { %4239 = vmatprep.mubr.bf16.mxu0 %v10891_v33 }
 0x490   : > { %4240 = vmatmul.mubr.bf16.gmra.mrb[8].mxu0 %v10888_v20 }
 0x491   : > { %4247 = vmatprep.mubr.bf16.mxu0 %v10913_v5 }
 0x498   : > { %4248 = vmatmul.mubr.bf16.gmra.mrb[12].mxu0 %v10910_v36 }
 0x499   : > { %4255 = vmatprep.mubr.bf16.mxu0 %v10934_v31 }
 0x4a0   : > { %4256 = vmatmul.mubr.bf16.gmra.mrb[16].mxu0 %v10932_v1 }
 0x4a1   : > { %4263 = vmatprep.mubr.bf16.mxu0 %v10952_v27 }
 0x4a8   : > { %4264 = vmatmul.mubr.bf16.gmra.mrb[20].mxu0 %v10950_v18 }
 0x4a9   : > { %4271 = vmatprep.mubr.bf16.mxu0 %v10970_v47 }
 0x4b0   : > { %4272 = vmatmul.mubr.bf16.gmra.mrb[24].mxu0 %v10968_v46 }
 0x4b1   : > { %4279 = vmatprep.mubr.bf16.mxu0 %v10988_v61 }
 0x4b8   : > { %4280 = vmatmul.mubr.bf16.gmra.mrb[28].mxu0 %v10986_v9 }
 0x4b9   : > { %8069 = vmatprep.mubr.bf16.mxu0 %v8945_v44 }
 0x4d0   : > { %v3999_v32 = vpop.f32.mrb[192].mxu0 }
 0x4d1   : > { %v4001_v42 = vpop.f32.mrb[193].mxu0 }
 0x4d2   : > { %v4003_v52 = vpop.f32.mrb[194].mxu0 }
 0x4d3   : > { %v11084_v20 = vpack.c.bf16 %v4003_v52, %v3999_v32  ;;  %v4005_v33 = vpop.f32.mrb[195].mxu0 }
 0x4d4   : > { %v4289_v36 = vpack.c.bf16 %v4005_v33, %v4001_v42 }
 0x4d6   : > { %8053 = vmatprep.subr.bf16.mxu0 %v4289_v36 }
 0x4d7   : > { %8054 = vmatpush3.bf16.msra.mxu0 %v4289_v36 }
 0x4d8   : > { %v4009_v5 = vpop.f32.mrb[196].mxu0 }
 0x4d9   : > { %v4011_v1 = vpop.f32.mrb[197].mxu0 }
 0x4da   : > { %v4013_v31 = vpop.f32.mrb[198].mxu0 }
 0x4db   : > { %v11086_v0 = vpack.c.bf16 %v4013_v31, %v4009_v5  ;;  %v4015_v15 = vpop.f32.mrb[199].mxu0 }
 0x4dc   : > { %v4294_v14 = vpack.c.bf16 %v4015_v15, %v4011_v1 }
 0x4de   : > { %8055 = vmatprep.subr.bf16.mxu0 %v4294_v14 }
 0x4df   : > { %8056 = vmatpush3.bf16.msra.mxu0 %v4294_v14 }
 0x4e1   : > { %v4019_v16 = vpop.f32.mrb[200].mxu0 }
 0x4e2   : > { %v4021_v18 = vpop.f32.mrb[201].mxu0 }
 0x4e3   : > { %v4023_v26 = vpop.f32.mrb[202].mxu0 }
 0x4e4   : > { %v11088_v27 = vpack.c.bf16 %v4023_v26, %v4019_v16  ;;  %v4025_v28 = vpop.f32.mrb[203].mxu0 }
 0x4e5   : > { %v4299_v30 = vpack.c.bf16 %v4025_v28, %v4021_v18 }
 0x4e7   : > { %8057 = vmatprep.subr.bf16.mxu0 %v4299_v30 }
 0x4e8   : > { %8058 = vmatpush3.bf16.msra.mxu0 %v4299_v30 }
 0x4e9   : > { %v4029_v38 = vpop.f32.mrb[204].mxu0 }
 0x4ea   : > { %v4031_v39 = vpop.f32.mrb[205].mxu0 }
 0x4eb   : > { %v4033_v40 = vpop.f32.mrb[206].mxu0 }
 0x4ec   : > { %v11090_v50 = vpack.c.bf16 %v4033_v40, %v4029_v38  ;;  %v4035_v51 = vpop.f32.mrb[207].mxu0 }
 0x4ed   : > { %v4304_v54 = vpack.c.bf16 %v4035_v51, %v4031_v39 }
 0x4ef   : > { %8059 = vmatprep.subr.bf16.mxu0 %v4304_v54 }
 0x4f0   : > { %8060 = vmatpush3.bf16.msra.mxu0 %v4304_v54 }
 0x4f2   : > { %v4039_v3 = vpop.f32.mrb[208].mxu0 }
 0x4f3   : > { %v4041_v4 = vpop.f32.mrb[209].mxu0 }
 0x4f4   : > { %v4043_v7 = vpop.f32.mrb[210].mxu0 }
 0x4f5   : > { %v11092_v56 = vpack.c.bf16 %v4043_v7, %v4039_v3  ;;  %v4045_v22 = vpop.f32.mrb[211].mxu0 }
 0x4f6   : > { %v4309_v23 = vpack.c.bf16 %v4045_v22, %v4041_v4 }
 0x4f8   : > { %8061 = vmatprep.subr.bf16.mxu0 %v4309_v23 }
 0x4f9   : > { %8062 = vmatpush3.bf16.msra.mxu0 %v4309_v23 }
 0x4fa   : > { %v4049_v25 = vpop.f32.mrb[212].mxu0 }
 0x4fb   : > { %v4051_v46 = vpop.f32.mrb[213].mxu0 }
 0x4fc   : > { %v4053_v47 = vpop.f32.mrb[214].mxu0 }
 0x4fd   : > { %v11094_v24 = vpack.c.bf16 %v4053_v47, %v4049_v25  ;;  %v4055_v48 = vpop.f32.mrb[215].mxu0 }
 0x4fe   : > { %v4314_v55 = vpack.c.bf16 %v4055_v48, %v4051_v46 }
 0x500   : > { %8063 = vmatprep.subr.bf16.mxu0 %v4314_v55 }
 0x501   : > { %8064 = vmatpush3.bf16.msra.mxu0 %v4314_v55 }
 0x503   : > { %v4059_v58 = vpop.f32.mrb[216].mxu0 }
 0x504   : > { %v4061_v12 = vpop.f32.mrb[217].mxu0 }
 0x505   : > { %v4063_v49 = vpop.f32.mrb[218].mxu0 }
 0x506   : > { %v11096_v13 = vpack.c.bf16 %v4063_v49, %v4059_v58  ;;  %v4065_v19 = vpop.f32.mrb[219].mxu0 }
 0x507   : > { %v4319_v9 = vpack.c.bf16 %v4065_v19, %v4061_v12 }
 0x509   : > { %8065 = vmatprep.subr.bf16.mxu0 %v4319_v9 }
 0x50a   : > { %8066 = vmatpush3.bf16.msra.mxu0 %v4319_v9 }
 0x50b   : > { %v4069_v61 = vpop.f32.mrb[220].mxu0 }
 0x50c   : > { %v4071_v34 = vpop.f32.mrb[221].mxu0 }
 0x50d   : > { %v4073_v10 = vpop.f32.mrb[222].mxu0 }
 0x50e   : > { %v11098_v11 = vpack.c.bf16 %v4073_v10, %v4069_v61  ;;  %v4075_v43 = vpop.f32.mrb[223].mxu0  ;;  %v8950_v10 = vld [vmem:[%s11979_s4 + $0x68] sm:$0xff]  }
 0x50f   : > { %v4324_v53 = vpack.c.bf16 %v4075_v43, %v4071_v34  ;;  %v8951_v43 = vld [vmem:[%s11979_s4 + $0x70] sm:$0xff]  }
 0x511   : > { %8067 = vmatprep.subr.bf16.mxu0 %v4324_v53 }
 0x512   : > { %8068 = vmatpush3.bf16.msra.mxu0 %v4324_v53 }
 0x513   : > { %v4112_v8 = vpop.f32.mrb[224].mxu0 }
 0x514   : > { %v4114_v6 = vpop.f32.mrb[225].mxu0 }
 0x515   : > { %v4116_v2 = vpop.f32.mrb[226].mxu0  ;;  %8070 = vmatmul.mubr.bf16.vlgmr.msra.gmra.mrb[32].mxu0 %v8946_v35 }
 0x516   : > { %v11106_v29 = vpack.c.bf16 %v4116_v2, %v4112_v8  ;;  %v4118_v62 = vpop.f32.mrb[227].mxu0  ;;  %8073 = vmatprep.mubr.bf16.mxu0 %v8947_v59 }
 0x517   : > { %v4291_v57 = vpack.c.bf16 %v4118_v62, %v4114_v6 }
 0x519   : > { %8077 = vmatprep.subr.bf16.mxu0 %v4291_v57 }
 0x51a   : > { %8078 = vmatpush3.bf16.msra.mxu0 %v4291_v57  ;;  %v8952_v57 = vld [vmem:[%s11979_s4 + $0x78] sm:$0xff]  }
 0x51b   : > { %v4122_v17 = vpop.f32.mrb[228].mxu0 }
 0x51c   : > { %v4124_v45 = vpop.f32.mrb[229].mxu0 }
 0x51d   : > { %v4126_v60 = vpop.f32.mrb[230].mxu0  ;;  %8074 = vmatmul.mubr.bf16.gmra.mrb[36].mxu0 %v8948_v63  ;;  %v8953_v63 = vld [vmem:[%s11979_s4 + $0x80] sm:$0xff]  }
 0x51e   : > { %v11114_v37 = vpack.c.bf16 %v4126_v60, %v4122_v17  ;;  %v4128_v44 = vpop.f32.mrb[231].mxu0  ;;  %8093 = vmatprep.mubr.bf16.mxu0 %v8949_v41 }
 0x51f   : > { %v4296_v32 = vpack.c.bf16 %v4128_v44, %v4124_v45 }
 0x521   : > { %8079 = vmatprep.subr.bf16.mxu0 %v4296_v32 }
 0x522   : > { %8080 = vmatpush3.bf16.msra.mxu0 %v4296_v32 }
 0x523   : > { %v4132_v42 = vpop.f32.mrb[232].mxu0 }
 0x524   : > { %v4134_v52 = vpop.f32.mrb[233].mxu0 }
 0x525   : > { %v4136_v33 = vpop.f32.mrb[234].mxu0 }
 0x526   : > { %v11116_v36 = vpack.c.bf16 %v4136_v33, %v4132_v42  ;;  %v4138_v5 = vpop.f32.mrb[235].mxu0  ;;  %v8965_v42 = vld [vmem:[%s11983_s8] ss:$20 sps:$4 sm:$0xff]  }
 0x527   : > { %v4301_v1 = vpack.c.bf16 %v4138_v5, %v4134_v52  ;;  %v8967_v52 = vld [vmem:[%s11983_s8 + $0x4] ss:$20 sps:$4 sm:$0xff]   ;;  %v8970_v33 = vld [vmem:[%s11983_s8 + $0x2c] ss:$20 sps:$4 sm:$0xff]  }
 0x528   : > { %5156 = vmatprep.subr.bf16.mxu1 %v8967_v52 }
 0x529   : > { %8081 = vmatprep.subr.bf16.mxu0 %v4301_v1  ;;  %5157 = vmatpush1.bf16.msra.mxu1 %v8965_v42 }
 0x52a   : > { %8082 = vmatpush3.bf16.msra.mxu0 %v4301_v1  ;;  %v8968_v1 = vld [vmem:[%s11983_s8 + $0x28] ss:$20 sps:$4 sm:$0xff]   ;;  %5158 = vmatprep.subr.bf16.mxu1 %v8970_v33 }
 0x52b   : > { %v4142_v31 = vpop.f32.mrb[236].mxu0 }
 0x52c   : > { %v4144_v15 = vpop.f32.mrb[237].mxu0 }
 0x52d   : > { %v4146_v14 = vpop.f32.mrb[238].mxu0  ;;  %5159 = vmatpush1.bf16.msra.mxu1 %v8968_v1  ;;  %v8954_v1 = vld [vmem:[%s11979_s4 + $0x88] sm:$0xff]  }
 0x52e   : > { %v11118_v16 = vpack.c.bf16 %v4146_v14, %v4142_v31  ;;  %v4148_v18 = vpop.f32.mrb[239].mxu0 }
 0x52f   : > { %v4306_v26 = vpack.c.bf16 %v4148_v18, %v4144_v15  ;;  %v8973_v15 = vld [vmem:[%s11983_s8 + $0x54] ss:$20 sps:$4 sm:$0xff]  }
 0x530   : > { %5160 = vmatprep.subr.bf16.mxu1 %v8973_v15  ;;  %v8956_v15 = vld [vmem:[%s11979_s4 + $0x98] sm:$0xff]  }
 0x531   : > { %8083 = vmatprep.subr.bf16.mxu0 %v4306_v26 }
 0x532   : > { %8084 = vmatpush3.bf16.msra.mxu0 %v4306_v26 }
 0x533   : > { %v4152_v28 = vpop.f32.mrb[240].mxu0 }
 0x534   : > { %v4154_v30 = vpop.f32.mrb[241].mxu0 }
 0x535   : > { %v4156_v38 = vpop.f32.mrb[242].mxu0 }
 0x536   : > { %v11120_v39 = vpack.c.bf16 %v4156_v38, %v4152_v28  ;;  %v4158_v40 = vpop.f32.mrb[243].mxu0 }
 0x537   : > { %v4311_v51 = vpack.c.bf16 %v4158_v40, %v4154_v30  ;;  %v8971_v30 = vld [vmem:[%s11983_s8 + $0x50] ss:$20 sps:$4 sm:$0xff]  }
 0x538   : > { %v8976_v40 = vld [vmem:[%s11983_s8 + $0x7c] ss:$20 sps:$4 sm:$0xff]   ;;  %5161 = vmatpush1.bf16.msra.mxu1 %v8971_v30 }
 0x539   : > { %8085 = vmatprep.subr.bf16.mxu0 %v4311_v51  ;;  %5162 = vmatprep.subr.bf16.mxu1 %v8976_v40 }
 0x53a   : > { %8086 = vmatpush3.bf16.msra.mxu0 %v4311_v51 }
 0x53b   : > { %v4162_v54 = vpop.f32.mrb[244].mxu0 }
 0x53c   : > { %v4164_v3 = vpop.f32.mrb[245].mxu0 }
 0x53d   : > { %v4166_v4 = vpop.f32.mrb[246].mxu0 }
 0x53e   : > { %v11122_v7 = vpack.c.bf16 %v4166_v4, %v4162_v54  ;;  %v4168_v22 = vpop.f32.mrb[247].mxu0  ;;  %v8974_v54 = vld [vmem:[%s11983_s8 + $0x78] ss:$20 sps:$4 sm:$0xff]  }
 0x53f   : > { %v4316_v23 = vpack.c.bf16 %v4168_v22, %v4164_v3  ;;  %5163 = vmatpush1.bf16.msra.mxu1 %v8974_v54 }
 0x541   : > { %8087 = vmatprep.subr.bf16.mxu0 %v4316_v23 }
 0x542   : > { %8088 = vmatpush3.bf16.msra.mxu0 %v4316_v23 }
 0x543   : > { %v4172_v25 = vpop.f32.mrb[248].mxu0 }
 0x544   : > { %v4174_v46 = vpop.f32.mrb[249].mxu0 }
 0x545   : > { %v4176_v47 = vpop.f32.mrb[250].mxu0 }
 0x546   : > { %v11124_v48 = vpack.c.bf16 %v4176_v47, %v4172_v25  ;;  %v4178_v55 = vpop.f32.mrb[251].mxu0 }
 0x547   : > { %v4321_v58 = vpack.c.bf16 %v4178_v55, %v4174_v46 }
 0x549   : > { %8089 = vmatprep.subr.bf16.mxu0 %v4321_v58 }
 0x54a   : > { %8090 = vmatpush3.bf16.msra.mxu0 %v4321_v58 }
 0x54b   : > { %v4182_v12 = vpop.f32.mrb[252].mxu0 }
 0x54c   : > { %v4184_v49 = vpop.f32.mrb[253].mxu0 }
 0x54d   : > { %v4186_v19 = vpop.f32.mrb[254].mxu0 }
 0x54e   : > { %v11126_v9 = vpack.c.bf16 %v4186_v19, %v4182_v12  ;;  %v4188_v61 = vpop.f32.mrb[255].mxu0 }
 0x54f   : > { %v4326_v34 = vpack.c.bf16 %v4188_v61, %v4184_v49 }
 0x551   : > { %8091 = vmatprep.subr.bf16.mxu0 %v4326_v34 }
 0x552   : > { %8092 = vmatpush3.bf16.msra.mxu0 %v4326_v34 }
 0x553   : > { %v7853_v53 = vpop.f32.mrb[0].mxu0 }
 0x554   : > { %v7854_v35 = vpop.f32.mrb[1].mxu0 }
 0x555   : > { %v7855_v59 = vadd.f32 %v7854_v35, %v7853_v53  ;;  %v7856_v8 = vpop.f32.mrb[2].mxu0  ;;  %8094 = vmatmul.mubr.bf16.vlgmr.msra.gmra.mrb[32].mxu0 %v8950_v10 }
 0x556   : > { %v7857_v6 = vpop.f32.mrb[3].mxu0  ;;  %8097 = vmatprep.mubr.bf16.mxu0 %v8951_v43 }
 0x557   : > { %v7858_v2 = vadd.f32 %v7857_v6, %v7856_v8 }
 0x559   : > { %v4292_v62 = vpack.c.bf16 %v7858_v2, %v7855_v59 }
 0x55b   : > { %v7859_v41 = vpop.f32.mrb[4].mxu0  ;;  %8101 = vmatprep.subr.bf16.mxu0 %v4292_v62 }
 0x55c   : > { %v7860_v17 = vpop.f32.mrb[5].mxu0  ;;  %8102 = vmatpush3.bf16.msra.mxu0 %v4292_v62 }
 0x55d   : > { %v7861_v45 = vadd.f32 %v7860_v17, %v7859_v41  ;;  %v7862_v60 = vpop.f32.mrb[6].mxu0  ;;  %8098 = vmatmul.mubr.bf16.gmra.mrb[36].mxu0 %v8952_v57 }
 0x55e   : > { %v7863_v44 = vpop.f32.mrb[7].mxu0  ;;  %8117 = vmatprep.mubr.bf16.mxu0 %v8953_v63 }
 0x55f   : > { %v7864_v32 = vadd.f32 %v7863_v44, %v7862_v60 }
 0x561   : > { %v4297_v5 = vpack.c.bf16 %v7864_v32, %v7861_v45 }
 0x563   : > { %v7865_v31 = vpop.f32.mrb[8].mxu0  ;;  %8103 = vmatprep.subr.bf16.mxu0 %v4297_v5 }
 0x564   : > { %v7866_v14 = vpop.f32.mrb[9].mxu0  ;;  %8104 = vmatpush3.bf16.msra.mxu0 %v4297_v5 }
 0x565   : > { %v7867_v18 = vadd.f32 %v7866_v14, %v7865_v31  ;;  %v7868_v26 = vpop.f32.mrb[10].mxu0  ;;  %v8955_v31 = vld [vmem:[%s11979_s4 + $0x90] sm:$0xff]   ;;  %v8957_v14 = vld [vmem:[%s11979_s4] sm:$0xff]  }
 0x566   : > { %v7869_v28 = vpop.f32.mrb[11].mxu0 }
 0x567   : > { %v7870_v38 = vadd.f32 %v7869_v28, %v7868_v26 }
 0x569   : > { %v4302_v51 = vpack.c.bf16 %v7870_v38, %v7867_v18  ;;  %v7623_v18 = vld [vmem:[%s11981_s6] ss:$0 sm:$0xff] }
 0x56b   : > { %v7871_v3 = vpop.f32.mrb[12].mxu0  ;;  %8105 = vmatprep.subr.bf16.mxu0 %v4302_v51 }
 0x56c   : > { %v7872_v4 = vpop.f32.mrb[13].mxu0  ;;  %8106 = vmatpush3.bf16.msra.mxu0 %v4302_v51 }
 0x56d   : > { %v7873_v22 = vadd.f32 %v7872_v4, %v7871_v3  ;;  %v7874_v23 = vpop.f32.mrb[14].mxu0 }
 0x56e   : > { %v7875_v25 = vpop.f32.mrb[15].mxu0 }
 0x56f   : > { %v7876_v46 = vadd.f32 %v7875_v25, %v7874_v23 }
 0x571   : > { %v4307_v47 = vpack.c.bf16 %v7876_v46, %v7873_v22 }
 0x573   : > { %v7877_v55 = vpop.f32.mrb[16].mxu0  ;;  %8107 = vmatprep.subr.bf16.mxu0 %v4307_v47 }
 0x574   : > { %v7878_v58 = vpop.f32.mrb[17].mxu0  ;;  %8108 = vmatpush3.bf16.msra.mxu0 %v4307_v47 }
 0x575   : > { %v7879_v12 = vadd.f32 %v7878_v58, %v7877_v55  ;;  %v7880_v49 = vpop.f32.mrb[18].mxu0 }
 0x576   : > { %v7881_v19 = vpop.f32.mrb[19].mxu0 }
 0x577   : > { %v7882_v61 = vadd.f32 %v7881_v19, %v7880_v49 }
 0x579   : > { %v4312_v34 = vpack.c.bf16 %v7882_v61, %v7879_v12 }
 0x57b   : > { %v7883_v10 = vpop.f32.mrb[20].mxu0  ;;  %8109 = vmatprep.subr.bf16.mxu0 %v4312_v34 }
 0x57c   : > { %v7884_v43 = vpop.f32.mrb[21].mxu0  ;;  %8110 = vmatpush3.bf16.msra.mxu0 %v4312_v34 }
 0x57d   : > { %v7885_v53 = vadd.f32 %v7884_v43, %v7883_v10  ;;  %v7886_v35 = vpop.f32.mrb[22].mxu0 }
 0x57e   : > { %v7887_v59 = vpop.f32.mrb[23].mxu0 }
 0x57f   : > { %v7888_v8 = vadd.f32 %v7887_v59, %v7886_v35 }
 0x581   : > { %v4317_v6 = vpack.c.bf16 %v7888_v8, %v7885_v53 }
 0x583   : > { %v7889_v2 = vpop.f32.mrb[24].mxu0  ;;  %8111 = vmatprep.subr.bf16.mxu0 %v4317_v6 }
 0x584   : > { %v7890_v62 = vpop.f32.mrb[25].mxu0  ;;  %8112 = vmatpush3.bf16.msra.mxu0 %v4317_v6 }
 0x585   : > { %v7891_v57 = vadd.f32 %v7890_v62, %v7889_v2  ;;  %v7892_v63 = vpop.f32.mrb[26].mxu0 }
 0x586   : > { %v7893_v41 = vpop.f32.mrb[27].mxu0 }
 0x587   : > { %v7894_v17 = vadd.f32 %v7893_v41, %v7892_v63 }
 0x589   : > { %v4322_v45 = vpack.c.bf16 %v7894_v17, %v7891_v57 }
 0x58b   : > { %v7895_v60 = vpop.f32.mrb[28].mxu0  ;;  %8113 = vmatprep.subr.bf16.mxu0 %v4322_v45 }
 0x58c   : > { %v7896_v44 = vpop.f32.mrb[29].mxu0  ;;  %8114 = vmatpush3.bf16.msra.mxu0 %v4322_v45 }
 0x58d   : > { %v7897_v32 = vadd.f32 %v7896_v44, %v7895_v60  ;;  %v7898_v42 = vpop.f32.mrb[30].mxu0 }
 0x58e   : > { %v7899_v52 = vpop.f32.mrb[31].mxu0 }
 0x58f   : > { %v7900_v33 = vadd.f32 %v7899_v52, %v7898_v42 }
 0x591   : > { %v4327_v5 = vpack.c.bf16 %v7900_v33, %v7897_v32 }
 0x593   : > { %8115 = vmatprep.subr.bf16.mxu0 %v4327_v5 }
 0x594   : > { %8116 = vmatpush3.bf16.msra.mxu0 %v4327_v5 }
 0x595   : > { %8125 = vmatprep.subr.bf16.mxu0 %v11084_v20 }
 0x597   : > { %8118 = vmatmul.mubr.bf16.vlgmr.msra.gmra.mrb[32].mxu0 %v8954_v1 }
 0x598   : > { %8126 = vmatpush3.bf16.msra.mxu0 %v11084_v20  ;;  %8121 = vmatprep.mubr.bf16.mxu0 %v8955_v31  ;;  %v8958_v20 = vld [vmem:[%s11979_s4 + $0x8] sm:$0xff]  }
 0x599   : > { %8127 = vmatprep.subr.bf16.mxu0 %v11086_v0 }
 0x59c   : > { %8128 = vmatpush3.bf16.msra.mxu0 %v11086_v0  ;;  %v8959_v0 = vld [vmem:[%s11979_s4 + $0x10] sm:$0xff]  }
 0x59d   : > { %8129 = vmatprep.subr.bf16.mxu0 %v11088_v27 }
 0x59f   : > { %8122 = vmatmul.mubr.bf16.gmra.mrb[36].mxu0 %v8956_v15  ;;  %v8989_v15 = vld [vmem:[%s11983_s8 + $0x8] ss:$20 sps:$4 sm:$0xff]  }
 0x5a0   : > { %8130 = vmatpush3.bf16.msra.mxu0 %v11088_v27  ;;  %8141 = vmatprep.mubr.bf16.mxu0 %v8957_v14  ;;  %v8960_v27 = vld [vmem:[%s11979_s4 + $0x18] sm:$0xff]  }
 0x5a1   : > { %8131 = vmatprep.subr.bf16.mxu0 %v11090_v50 }
 0x5a4   : > { %8132 = vmatpush3.bf16.msra.mxu0 %v11090_v50  ;;  %v8961_v50 = vld [vmem:[%s11979_s4 + $0x40] sm:$0xff]  }
 0x5a5   : > { %8133 = vmatprep.subr.bf16.mxu0 %v11092_v56 }
 0x5a8   : > { %8134 = vmatpush3.bf16.msra.mxu0 %v11092_v56  ;;  %v8962_v56 = vld [vmem:[%s11979_s4 + $0x48] sm:$0xff]  }
 0x5a9   : > { %8135 = vmatprep.subr.bf16.mxu0 %v11094_v24 }
 0x5ac   : > { %8136 = vmatpush3.bf16.msra.mxu0 %v11094_v24  ;;  %v8963_v24 = vld [vmem:[%s11979_s4 + $0x50] sm:$0xff]  }
 0x5ad   : > { %8137 = vmatprep.subr.bf16.mxu0 %v11096_v13 }
 0x5b0   : > { %8138 = vmatpush3.bf16.msra.mxu0 %v11096_v13  ;;  %v8964_v13 = vld [vmem:[%s11979_s4 + $0x58] sm:$0xff]  }
 0x5b1   : > { %8139 = vmatprep.subr.bf16.mxu0 %v11098_v11 }
 0x5b4   : > { %8140 = vmatpush3.bf16.msra.mxu0 %v11098_v11  ;;  %v8979_v11 = vld [vmem:[%s11983_s8 + $0xa4] ss:$20 sps:$4 sm:$0xff]  }
 0x5b5   : > { %8149 = vmatprep.subr.bf16.mxu0 %v11106_v29  ;;  %5164 = vmatprep.subr.bf16.mxu1 %v8979_v11 }
 0x5b7   : > { %8142 = vmatmul.mubr.bf16.vlgmr.msra.gmra.mrb[32].mxu0 %v8958_v20 }
 0x5b8   : > { %8150 = vmatpush3.bf16.msra.mxu0 %v11106_v29  ;;  %8145 = vmatprep.mubr.bf16.mxu0 %v8959_v0  ;;  %v8977_v29 = vld [vmem:[%s11983_s8 + $0xa0] ss:$20 sps:$4 sm:$0xff]  }
 0x5b9   : > { %8151 = vmatprep.subr.bf16.mxu0 %v11114_v37  ;;  %5165 = vmatpush1.bf16.msra.mxu1 %v8977_v29  ;;  %v8994_v0 = vld [vmem:[%s11983_s8 + $0x34] ss:$20 sps:$4 sm:$0xff]   ;;  %v8995_v29 = vld [vmem:[%s11983_s8 + $0x58] ss:$20 sps:$4 sm:$0xff]  }
 0x5bc   : > { %8152 = vmatpush3.bf16.msra.mxu0 %v11114_v37  ;;  %v8982_v37 = vld [vmem:[%s11983_s8 + $0xcc] ss:$20 sps:$4 sm:$0xff]  }
 0x5bd   : > { %8153 = vmatprep.subr.bf16.mxu0 %v11116_v36  ;;  %5166 = vmatprep.subr.bf16.mxu1 %v8982_v37 }
 0x5bf   : > { %8146 = vmatmul.mubr.bf16.gmra.mrb[36].mxu0 %v8960_v27  ;;  %v8992_v27 = vld [vmem:[%s11983_s8 + $0x30] ss:$20 sps:$4 sm:$0xff]  }
 0x5c0   : > { %8154 = vmatpush3.bf16.msra.mxu0 %v11116_v36  ;;  %8165 = vmatprep.mubr.bf16.mxu0 %v8961_v50  ;;  %v8980_v36 = vld [vmem:[%s11983_s8 + $0xc8] ss:$20 sps:$4 sm:$0xff]  }
 0x5c1   : > { %8155 = vmatprep.subr.bf16.mxu0 %v11118_v16  ;;  %5167 = vmatpush1.bf16.msra.mxu1 %v8980_v36  ;;  %v9000_v36 = vld [vmem:[%s11983_s8 + $0x84] ss:$20 sps:$4 sm:$0xff]  }
 0x5c4   : > { %8156 = vmatpush3.bf16.msra.mxu0 %v11118_v16  ;;  %v8985_v16 = vld [vmem:[%s11983_s8 + $0xf4] ss:$20 sps:$4 sm:$0xff]  }
 0x5c5   : > { %8157 = vmatprep.subr.bf16.mxu0 %v11120_v39  ;;  %5168 = vmatprep.subr.bf16.mxu1 %v8985_v16 }
 0x5c8   : > { %8158 = vmatpush3.bf16.msra.mxu0 %v11120_v39  ;;  %v8983_v39 = vld [vmem:[%s11983_s8 + $0xf0] ss:$20 sps:$4 sm:$0xff]  }
 0x5c9   : > { %8159 = vmatprep.subr.bf16.mxu0 %v11122_v7  ;;  %5169 = vmatpush1.bf16.msra.mxu1 %v8983_v39  ;;  %v8998_v39 = vld [vmem:[%s11983_s8 + $0x80] ss:$20 sps:$4 sm:$0xff]  }
 0x5cc   : > { %8160 = vmatpush3.bf16.msra.mxu0 %v11122_v7  ;;  %v8988_v7 = vld [vmem:[%s11983_s8 + $0x11c] ss:$20 sps:$4 sm:$0xff]  }
 0x5cd   : > { %8161 = vmatprep.subr.bf16.mxu0 %v11124_v48  ;;  %5170 = vmatprep.subr.bf16.mxu1 %v8988_v7  ;;  %v9003_v7 = vld [vmem:[%s11983_s8 + $0xac] ss:$20 sps:$4 sm:$0xff]  }
 0x5d0   : > { %8162 = vmatpush3.bf16.msra.mxu0 %v11124_v48  ;;  %v8986_v48 = vld [vmem:[%s11983_s8 + $0x118] ss:$20 sps:$4 sm:$0xff]  }
 0x5d1   : > { %8163 = vmatprep.subr.bf16.mxu0 %v11126_v9  ;;  %5171 = vmatpush1.bf16.msra.mxu1 %v8986_v48  ;;  %v9001_v48 = vld [vmem:[%s11983_s8 + $0xa8] ss:$20 sps:$4 sm:$0xff]  }
 0x5d4   : > { %8164 = vmatpush3.bf16.msra.mxu0 %v11126_v9  ;;  %v8991_v9 = vld [vmem:[%s11983_s8 + $0xc] ss:$20 sps:$4 sm:$0xff]  }
 0x5d5   : > { %5229 = vmatprep.subr.bf16.mxu1 %v8991_v9  ;;  %v9006_v9 = vld [vmem:[%s11983_s8 + $0xd4] ss:$20 sps:$4 sm:$0xff]  }
 0x5d7   : > { %8166 = vmatmul.mubr.bf16.vlgmr.msra.gmra.mrb[32].mxu0 %v8962_v56  ;;  %v8997_v56 = vld [vmem:[%s11983_s8 + $0x5c] ss:$20 sps:$4 sm:$0xff]  }
 0x5d8   : > { %8169 = vmatprep.mubr.bf16.mxu0 %v8963_v24 }
 0x5df   : > { %8170 = vmatmul.mubr.bf16.gmra.mrb[36].mxu0 %v8964_v13 }
 0x5e0   : > { %6416 = vmatprep.mubr.bf16.mxu0 %v12316_v21 }
 0x6aa   : > { %v8167_v26 = vpop.f32.mrb[32].mxu0 }
 0x6ab   : > { %v4842_v28 = vadd.f32 %v8167_v26, %v7623_v18  ;;  %v4786_v30 = vpop.f32.mrb[33].mxu0  ;;  %v9009_v26 = vld [vmem:[%s11983_s8 + $0xfc] ss:$20 sps:$4 sm:$0xff]  }
 0x6ac   : > { %v4840_v38 = vadd.f32 %v7623_v18, %v4786_v30  ;;  %v8168_v40 = vpop.f32.mrb[34].mxu0  ;;  %v9012_v30 = vld [vmem:[%s11983_s8 + $0x124] ss:$20 sps:$4 sm:$0xff]  }
 0x6ad   : > { %v7626_v51 = vmul.f32 -1.442695, %v4842_v28  ;;  %v4843_v54 = vadd.f32 %v8168_v40, %v7623_v18  ;;  %v4789_v3 = vpop.f32.mrb[35].mxu0  ;;  %v9007_v28 = vld [vmem:[%s11983_s8 + $0xf8] ss:$20 sps:$4 sm:$0xff]  }
 0x6ae   : > { %v7624_v4 = vmul.f32 -1.442695, %v4840_v38  ;;  %v4841_v22 = vadd.f32 %v7623_v18, %v4789_v3  ;;  %v9010_v38 = vld [vmem:[%s11983_s8 + $0x120] ss:$20 sps:$4 sm:$0xff]   ;;  %v9013_v40 = vld [vmem:[%s11983_s8 + $0x10] ss:$20 sps:$4 sm:$0xff]  }
 0x6af   : > { %9169 = vpow2.f32 %v7626_v51  ;;  %v7627_v23 = vmul.f32 -1.442695, %v4843_v54  ;;  %v9014_v51 = vld [vmem:[%s11983_s8 + $0x38] ss:$20 sps:$4 sm:$0xff]   ;;  %v9015_v54 = vld [vmem:[%s11983_s8 + $0x60] ss:$20 sps:$4 sm:$0xff]  }
 0x6b0   : > { %9171 = vpow2.f32 %v7624_v4  ;;  %v7625_v25 = vmul.f32 -1.442695, %v4841_v22  ;;  %v9016_v3 = vld [vmem:[%s11983_s8 + $0x88] ss:$20 sps:$4 sm:$0xff]   ;;  %v9017_v4 = vld [vmem:[%s11983_s8 + $0xb0] ss:$20 sps:$4 sm:$0xff]  }
 0x6b1   : > { %9173 = vpow2.f32 %v7627_v23  ;;  %v9018_v22 = vld [vmem:[%s11983_s8 + $0xd8] ss:$20 sps:$4 sm:$0xff]   ;;  %v9019_v23 = vld [vmem:[%s11983_s8 + $0x100] ss:$20 sps:$4 sm:$0xff]  }
 0x6b2   : > { %9175 = vpow2.f32 %v7625_v25  ;;  %v8171_v46 = vpop.f32.mrb[36].mxu0  ;;  %v9020_v25 = vld [vmem:[%s11983_s8 + $0x128] ss:$20 sps:$4 sm:$0xff]  }
 0x6b3   : > { %v4846_v47 = vadd.f32 %v8171_v46, %v7623_v18  ;;  %v4802_v55 = vpop.f32.mrb[37].mxu0  ;;  %v9021_v46 = vld [vmem:[%s11982_s7 + $0x20] sm:$0xff]  }
 0x6b4   : > { %v4844_v58 = vadd.f32 %v7623_v18, %v4802_v55  ;;  %v8172_v12 = vpop.f32.mrb[38].mxu0 }
 0x6b5   : > { %v7630_v49 = vmul.f32 -1.442695, %v4846_v47  ;;  %v4847_v19 = vadd.f32 %v8172_v12, %v7623_v18  ;;  %v4805_v61 = vpop.f32.mrb[39].mxu0 }
 0x6b6   : > { %v7628_v34 = vmul.f32 -1.442695, %v4844_v58  ;;  %v4845_v10 = vadd.f32 %v7623_v18, %v4805_v61  ;;  %v9004_v18 = vld [vmem:[%s11983_s8 + $0xd0] ss:$20 sps:$4 sm:$0xff]  }
 0x6b7   : > { %9177 = vpow2.f32 %v7630_v49  ;;  %v7631_v43 = vmul.f32 -1.442695, %v4847_v19 }
 0x6b8   : > { %9179 = vpow2.f32 %v7628_v34  ;;  %v7629_v53 = vmul.f32 -1.442695, %v4845_v10 }
 0x6b9   : > { %v9170_v35 = vpop.eup %9169  ;;  %9181 = vpow2.f32 %v7631_v43 }
 0x6ba   : > { %v9172_v59 = vpop.eup %9171  ;;  %v4874_v8 = vadd.f32 1.0, %v9170_v35  ;;  %9183 = vpow2.f32 %v7629_v53 }
 0x6bb   : > { %v9174_v6 = vpop.eup %9173  ;;  %v4872_v2 = vadd.f32 1.0, %v9172_v59 }
 0x6bc   : > { %v9176_v62 = vpop.eup %9175  ;;  %9185 = vrcp.f32 %v4874_v8  ;;  %v4875_v57 = vadd.f32 1.0, %v9174_v6 }
 0x6bd   : > { %9187 = vrcp.f32 %v4872_v2  ;;  %v4873_v63 = vadd.f32 1.0, %v9176_v62 }
 0x6be   : > { %9189 = vrcp.f32 %v4875_v57 }
 0x6bf   : > { %9191 = vrcp.f32 %v4873_v63 }
 0x6c1   : > { %v9178_v41 = vpop.eup %9177 }
 0x6c2   : > { %v9180_v17 = vpop.eup %9179  ;;  %v4878_v45 = vadd.f32 1.0, %v9178_v41 }
 0x6c3   : > { %v9182_v60 = vpop.eup %9181  ;;  %v4876_v44 = vadd.f32 1.0, %v9180_v17 }
 0x6c4   : > { %v9184_v32 = vpop.eup %9183  ;;  %9193 = vrcp.f32 %v4878_v45  ;;  %v4879_v42 = vadd.f32 1.0, %v9182_v60 }
 0x6c5   : > { %9195 = vrcp.f32 %v4876_v44  ;;  %v4877_v52 = vadd.f32 1.0, %v9184_v32  ;;  %v9022_v32 = vld [vmem:[%s11982_s7 + $0x28] sm:$0xff]  }
 0x6c6   : > { %v9186_v33 = vpop.eup %9185  ;;  %9197 = vrcp.f32 %v4879_v42  ;;  %v9023_v42 = vld [vmem:[%s11982_s7 + $0x30] sm:$0xff]  }
 0x6c7   : > { %v9188_v5 = vpop.eup %9187  ;;  %9199 = vrcp.f32 %v4877_v52 }
 0x6c8   : > { %v9190_v1 = vpop.eup %9189 }
 0x6c9   : > { %v9192_v31 = vpop.eup %9191  ;;  %v11263_v14 = vpack.c.bf16 %v9190_v1, %v9186_v33 }
 0x6ca   : > { %v11265_v20 = vpack.c.bf16 %v9192_v31, %v9188_v5 }
 0x6cc   : > { %5189 = vmatmul.mubr.bf16.vlgmr.msra.gmra.mrb[160].mxu1 %v11265_v20 }
 0x6cd   : > { %5230 = vmatpush1.bf16.msra.mxu1 %v8989_v15  ;;  %5198 = vmatprep.mubr.bf16.mxu1 %v12316_v21 }
 0x6ce   : > { %v9194_v50 = vpop.eup %9193  ;;  %5231 = vmatprep.subr.bf16.mxu1 %v8994_v0 }
 0x6cf   : > { %v9196_v24 = vpop.eup %9195 }
 0x6d0   : > { %v9198_v13 = vpop.eup %9197 }
 0x6d1   : > { %v9200_v11 = vpop.eup %9199  ;;  %5232 = vmatpush1.bf16.msra.mxu1 %v8992_v27  ;;  %v11281_v37 = vpack.c.bf16 %v9198_v13, %v9194_v50 }
 0x6d2   : > { %5233 = vmatprep.subr.bf16.mxu1 %v8997_v56  ;;  %v4898_v16 = vpack.c.bf16 %v9200_v11, %v9196_v24 }
 0x6d4   : > { %5199 = vmatmul.mubr.bf16.gmra.mrb[164].mxu1 %v11263_v14 }
 0x6d5   : > { %5234 = vmatpush1.bf16.msra.mxu1 %v8995_v29  ;;  %5208 = vmatprep.mubr.bf16.mxu1 %v12316_v21 }
 0x6d6   : > { %5235 = vmatprep.subr.bf16.mxu1 %v9000_v36 }
 0x6d9   : > { %5236 = vmatpush1.bf16.msra.mxu1 %v8998_v39 }
 0x6da   : > { %5237 = vmatprep.subr.bf16.mxu1 %v9003_v7 }
 0x6dc   : > { %5209 = vmatmul.mubr.bf16.gmra.mrb[168].mxu1 %v4898_v16 }
 0x6dd   : > { %5238 = vmatpush1.bf16.msra.mxu1 %v9001_v48  ;;  %5218 = vmatprep.mubr.bf16.mxu1 %v12316_v21 }
 0x6de   : > { %5239 = vmatprep.subr.bf16.mxu1 %v9006_v9 }
 0x6e1   : > { %5240 = vmatpush1.bf16.msra.mxu1 %v9004_v18 }
 0x6e2   : > { %5241 = vmatprep.subr.bf16.mxu1 %v9009_v26 }
 0x6e4   : > { %5219 = vmatmul.mubr.bf16.gmra.mrb[172].mxu1 %v11281_v37 }
 0x6e5   : > { %5242 = vmatpush1.bf16.msra.mxu1 %v9007_v28  ;;  %5261 = vmatprep.mubr.bf16.mxu1 %v12316_v21 }
 0x6e6   : > { %5243 = vmatprep.subr.bf16.mxu1 %v9012_v30  ;;  %v9026_v30 = vld [vmem:[%s11982_s7 + $0x68] sm:$0xff]  }
 0x6e9   : > { %5244 = vmatpush1.bf16.msra.mxu1 %v9010_v38  ;;  %v9027_v38 = vld [vmem:[%s11982_s7 + $0x70] sm:$0xff]  }
 0x6ea   : > { %8173 = vmatprep.subr.bf16.mxu1 %v9013_v40 }
 0x6ec   : > { %5262 = vmatmul.mubr.bf16.vlgmr.msra.gmra.mrb[176].mxu1 %v11265_v20 }
 0x6ed   : > { %8174 = vmatpush3.bf16.msra.mxu1 %v9013_v40  ;;  %5271 = vmatprep.mubr.bf16.mxu1 %v12316_v21 }
 0x6ee   : > { %8175 = vmatprep.subr.bf16.mxu1 %v9014_v51 }
 0x6f1   : > { %8176 = vmatpush3.bf16.msra.mxu1 %v9014_v51 }
 0x6f2   : > { %8177 = vmatprep.subr.bf16.mxu1 %v9015_v54 }
 0x6f4   : > { %5272 = vmatmul.mubr.bf16.gmra.mrb[180].mxu1 %v11263_v14 }
 0x6f5   : > { %8178 = vmatpush3.bf16.msra.mxu1 %v9015_v54  ;;  %5281 = vmatprep.mubr.bf16.mxu1 %v12316_v21 }
 0x6f6   : > { %8179 = vmatprep.subr.bf16.mxu1 %v9016_v3 }
 0x6f9   : > { %8180 = vmatpush3.bf16.msra.mxu1 %v9016_v3 }
 0x6fa   : > { %8181 = vmatprep.subr.bf16.mxu1 %v9017_v4 }
 0x6fc   : > { %5282 = vmatmul.mubr.bf16.gmra.mrb[184].mxu1 %v4898_v16 }
 0x6fd   : > { %8182 = vmatpush3.bf16.msra.mxu1 %v9017_v4  ;;  %5291 = vmatprep.mubr.bf16.mxu1 %v12316_v21 }
 0x6fe   : > { %8183 = vmatprep.subr.bf16.mxu1 %v9018_v22 }
 0x701   : > { %8184 = vmatpush3.bf16.msra.mxu1 %v9018_v22 }
 0x702   : > { %8185 = vmatprep.subr.bf16.mxu1 %v9019_v23 }
 0x704   : > { %5292 = vmatmul.mubr.bf16.gmra.mrb[188].mxu1 %v11281_v37 }
 0x705   : > { %8186 = vmatpush3.bf16.msra.mxu1 %v9019_v23  ;;  %8189 = vmatprep.mubr.bf16.mxu1 %v11265_v20  ;;  %v9025_v20 = vld [vmem:[%s11982_s7 + $0x60] sm:$0xff]   ;;  %v9028_v23 = vld [vmem:[%s11982_s7 + $0x78] sm:$0xff]  }
 0x706   : > { %8187 = vmatprep.subr.bf16.mxu1 %v9020_v25 }
 0x709   : > { %8188 = vmatpush3.bf16.msra.mxu1 %v9020_v25  ;;  %v9029_v25 = vld [vmem:[%s11982_s7 + $0x80] sm:$0xff]  }
 0x70c   : > { %8190 = vmatmul.mubr.bf16.vlgmr.msra.gmra.mrb[192].mxu1 %v11263_v14  ;;  %v9024_v14 = vld [vmem:[%s11982_s7 + $0x38] sm:$0xff]  }
 0x70d   : > { %8193 = vmatprep.mubr.bf16.mxu1 %v4898_v16 }
 0x714   : > { %8194 = vmatmul.mubr.bf16.gmra.mrb[196].mxu1 %v11281_v37 }
 0x715   : > { %8205 = vmatprep.mubr.msk.bf16.mxu1 %vm5424_vm1, %v9021_v46 }
 0x79f   : > { %v5190_v47 = vpop.f32.mrb[160].mxu1 }
 0x7a0   : > { %v5192_v55 = vpop.f32.mrb[161].mxu1 }
 0x7a1   : > { %v5194_v58 = vpop.f32.mrb[162].mxu1 }
 0x7a2   : > { %v11355_v12 = vpack.c.bf16 %v5194_v58, %v5190_v47  ;;  %v5196_v49 = vpop.f32.mrb[163].mxu1 }
 0x7a3   : > { %v5368_v19 = vpack.c.bf16 %v5196_v49, %v5192_v55 }
 0x7a5   : > { %8197 = vmatprep.subr.bf16.mxu1 %v5368_v19 }
 0x7a6   : > { %8198 = vmatpush3.bf16.msra.mxu1 %v5368_v19 }
 0x7a7   : > { %v5200_v61 = vpop.f32.mrb[164].mxu1 }
 0x7a8   : > { %v5202_v34 = vpop.f32.mrb[165].mxu1 }
 0x7a9   : > { %v5204_v10 = vpop.f32.mrb[166].mxu1 }
 0x7aa   : > { %v11357_v43 = vpack.c.bf16 %v5204_v10, %v5200_v61  ;;  %v5206_v53 = vpop.f32.mrb[167].mxu1  ;;  %v9030_v61 = vld [vmem:[%s11982_s7 + $0x88] sm:$0xff]   ;;  %v9032_v10 = vld [vmem:[%s11982_s7 + $0x98] sm:$0xff]  }
 0x7ab   : > { %v5373_v35 = vpack.c.bf16 %v5206_v53, %v5202_v34  ;;  %v9031_v34 = vld [vmem:[%s11982_s7 + $0x90] sm:$0xff]   ;;  %v9033_v53 = vld [vmem:[%s11982_s7] sm:$0xff]  }
 0x7ad   : > { %8199 = vmatprep.subr.bf16.mxu1 %v5373_v35 }
 0x7ae   : > { %8200 = vmatpush3.bf16.msra.mxu1 %v5373_v35  ;;  %v9036_v35 = vld [vmem:[%s11982_s7 + $0x18] sm:$0xff]  }
 0x7af   : > { %v5210_v59 = vpop.f32.mrb[168].mxu1 }
 0x7b0   : > { %v5212_v8 = vpop.f32.mrb[169].mxu1 }
 0x7b1   : > { %v5214_v6 = vpop.f32.mrb[170].mxu1 }
 0x7b2   : > { %v11359_v2 = vpack.c.bf16 %v5214_v6, %v5210_v59  ;;  %v5216_v62 = vpop.f32.mrb[171].mxu1  ;;  %v9037_v59 = vld [vmem:[%s11982_s7 + $0x40] sm:$0xff]   ;;  %v9039_v6 = vld [vmem:[%s11982_s7 + $0x50] sm:$0xff]  }
 0x7b3   : > { %v5378_v57 = vpack.c.bf16 %v5216_v62, %v5212_v8  ;;  %v9038_v8 = vld [vmem:[%s11982_s7 + $0x48] sm:$0xff]   ;;  %v6000_v62 = vld [vmem:[%s11986_s11] sm:$0xff] }
 0x7b5   : > { %8201 = vmatprep.subr.bf16.mxu1 %v5378_v57 }
 0x7b6   : > { %8202 = vmatpush3.bf16.msra.mxu1 %v5378_v57  ;;  %v6004_v57 = vld [vmem:[%s11986_s11 + $0x20] sm:$0xff] }
 0x7b7   : > { %v5220_v63 = vpop.f32.mrb[172].mxu1 }
 0x7b8   : > { %v5222_v41 = vpop.f32.mrb[173].mxu1 }
 0x7b9   : > { %v5224_v17 = vpop.f32.mrb[174].mxu1 }
 0x7ba   : > { %v11361_v45 = vpack.c.bf16 %v5224_v17, %v5220_v63  ;;  %v5226_v60 = vpop.f32.mrb[175].mxu1  ;;  %v6001_v63 = vld [vmem:[%s11986_s11 + $0x8] sm:$0xff] }
 0x7bb   : > { %v5383_v44 = vpack.c.bf16 %v5226_v60, %v5222_v41  ;;  %v7754_v41 = vcombine.high %v6000_v62, %v6004_v57  ;;  %v6005_v17 = vld [vmem:[%s11986_s11 + $0x28] sm:$0xff] }
 0x7bc   : > { %v7755_v60 = vcombine.low %v6001_v63, %v6005_v17 }
 0x7bd   : > { %8203 = vmatprep.subr.bf16.mxu1 %v5383_v44  ;;  %6384 = vmatprep.subr.bf16.mxu0 %v7754_v41  ;;  %v11573_v41 = vld [vmem:[%s11986_s11 + $0x18] sm:$0xff] }
 0x7be   : > { %8204 = vmatpush3.bf16.msra.mxu1 %v5383_v44  ;;  %v7756_v44 = vcombine.high %v6001_v63, %v6005_v17  ;;  %v11568_v63 = vld [vmem:[%s11986_s11 + $0x30] sm:$0xff] }
 0x7bf   : > { %v5263_v52 = vpop.f32.mrb[176].mxu1 }
 0x7c0   : > { %v5265_v33 = vpop.f32.mrb[177].mxu1 }
 0x7c1   : > { %v5267_v5 = vpop.f32.mrb[178].mxu1  ;;  %8206 = vmatmul.mubr.msk.bf16.vlgmr.msra.gmra.mrb[200].mxu1 %vm5424_vm1, %v9022_v32  ;;  %v6008_v32 = vld [vmem:[%s11986_s11 + $0x40] sm:$0xff] }
 0x7c2   : > { %v11370_v1 = vpack.c.bf16 %v5267_v5, %v5263_v52  ;;  %v5269_v31 = vpop.f32.mrb[179].mxu1  ;;  %8209 = vmatprep.mubr.msk.bf16.mxu1 %vm5424_vm1, %v9023_v42  ;;  %v6012_v42 = vld [vmem:[%s11986_s11 + $0x60] sm:$0xff]  ;;  %v6009_v52 = vld [vmem:[%s11986_s11 + $0x48] sm:$0xff] }
 0x7c3   : > { %v5370_v15 = vpack.c.bf16 %v5269_v31, %v5265_v33  ;;  %v7762_v33 = vcombine.high %v6008_v32, %v6012_v42  ;;  %v6013_v5 = vld [vmem:[%s11986_s11 + $0x68] sm:$0xff] }
 0x7c4   : > { %v7763_v31 = vcombine.low %v6009_v52, %v6013_v5 }
 0x7c5   : > { %8213 = vmatprep.subr.bf16.mxu1 %v5370_v15 }
 0x7c6   : > { %8214 = vmatpush3.bf16.msra.mxu1 %v5370_v15  ;;  %v7764_v15 = vcombine.high %v6009_v52, %v6013_v5 }
 0x7c7   : > { %v5273_v0 = vpop.f32.mrb[180].mxu1 }
 0x7c8   : > { %v5275_v27 = vpop.f32.mrb[181].mxu1 }
 0x7c9   : > { %v5277_v50 = vpop.f32.mrb[182].mxu1  ;;  %8210 = vmatmul.mubr.msk.bf16.gmra.mrb[204].mxu1 %vm5424_vm1, %v9024_v14  ;;  %v6016_v14 = vld [vmem:[%s11986_s11 + $0x80] sm:$0xff] }
 0x7ca   : > { %v11380_v56 = vpack.c.bf16 %v5277_v50, %v5273_v0  ;;  %v5279_v24 = vpop.f32.mrb[183].mxu1  ;;  %8221 = vmatprep.mubr.msk.bf16.mxu1 %vm5424_vm1, %v9025_v20  ;;  %v6020_v20 = vld [vmem:[%s11986_s11 + $0xa0] sm:$0xff]  ;;  %v6017_v0 = vld [vmem:[%s11986_s11 + $0x88] sm:$0xff] }
 0x7cb   : > { %v5375_v13 = vpack.c.bf16 %v5279_v24, %v5275_v27  ;;  %v7770_v27 = vcombine.high %v6016_v14, %v6020_v20  ;;  %v6021_v50 = vld [vmem:[%s11986_s11 + $0xa8] sm:$0xff] }
 0x7cc   : > { %v7771_v24 = vcombine.low %v6017_v0, %v6021_v50 }
 0x7cd   : > { %8215 = vmatprep.subr.bf16.mxu1 %v5375_v13 }
 0x7ce   : > { %8216 = vmatpush3.bf16.msra.mxu1 %v5375_v13  ;;  %v7772_v13 = vcombine.high %v6017_v0, %v6021_v50 }
 0x7cf   : > { %v5283_v11 = vpop.f32.mrb[184].mxu1 }
 0x7d0   : > { %v5285_v29 = vpop.f32.mrb[185].mxu1 }
 0x7d1   : > { %v5287_v37 = vpop.f32.mrb[186].mxu1 }
 0x7d2   : > { %v11383_v36 = vpack.c.bf16 %v5287_v37, %v5283_v11  ;;  %v5289_v16 = vpop.f32.mrb[187].mxu1  ;;  %v6024_v11 = vld [vmem:[%s11986_s11 + $0xc0] sm:$0xff]  ;;  %v6025_v37 = vld [vmem:[%s11986_s11 + $0xc8] sm:$0xff] }
 0x7d3   : > { %v5380_v39 = vpack.c.bf16 %v5289_v16, %v5285_v29  ;;  %v6028_v29 = vld [vmem:[%s11986_s11 + $0xe0] sm:$0xff]  ;;  %v6029_v16 = vld [vmem:[%s11986_s11 + $0xe8] sm:$0xff] }
 0x7d5   : > { %8217 = vmatprep.subr.bf16.mxu1 %v5380_v39 }
 0x7d6   : > { %8218 = vmatpush3.bf16.msra.mxu1 %v5380_v39  ;;  %v7777_v39 = vcombine.low %v6024_v11, %v6028_v29 }
 0x7d7   : > { %v5293_v7 = vpop.f32.mrb[188].mxu1 }
 0x7d8   : > { %v5295_v48 = vpop.f32.mrb[189].mxu1 }
 0x7d9   : > { %v5297_v9 = vpop.f32.mrb[190].mxu1 }
 0x7da   : > { %v11385_v18 = vpack.c.bf16 %v5297_v9, %v5293_v7  ;;  %v5299_v26 = vpop.f32.mrb[191].mxu1  ;;  %v7779_v7 = vcombine.low %v6025_v37, %v6029_v16  ;;  %v6032_v9 = vld [vmem:[%s11986_s11 + $0x100] sm:$0xff] }
 0x7db   : > { %v5385_v28 = vpack.c.bf16 %v5299_v26, %v5295_v48  ;;  %v7780_v48 = vcombine.high %v6025_v37, %v6029_v16  ;;  %v6033_v26 = vld [vmem:[%s11986_s11 + $0x108] sm:$0xff] }
 0x7dd   : > { %8219 = vmatprep.subr.bf16.mxu1 %v5385_v28 }
 0x7de   : > { %8220 = vmatpush3.bf16.msra.mxu1 %v5385_v28 }
 0x7df   : > { %v8191_v40 = vpop.f32.mrb[192].mxu1 }
 0x7e0   : > { %v5336_v51 = vpop.f32.mrb[193].mxu1 }
 0x7e1   : > { %v8192_v54 = vpop.f32.mrb[194].mxu1  ;;  %8222 = vmatmul.mubr.msk.bf16.vlgmr.msra.gmra.mrb[200].mxu1 %vm5424_vm1, %v9026_v30  ;;  %v6037_v30 = vld [vmem:[%s11986_s11 + $0x128] sm:$0xff] }
 0x7e2   : > { %v5376_v3 = vpack.c.bf16 %v8192_v54, %v8191_v40  ;;  %v5339_v4 = vpop.f32.mrb[195].mxu1  ;;  %8225 = vmatprep.mubr.msk.bf16.mxu1 %vm5424_vm1, %v9027_v38  ;;  %v7787_v40 = vcombine.low %v6033_v26, %v6037_v30  ;;  %v6040_v54 = vld [vmem:[%s11986_s11 + $0x140] sm:$0xff] }
 0x7e3   : > { %v5371_v22 = vpack.c.bf16 %v5339_v4, %v5336_v51  ;;  %v7788_v51 = vcombine.high %v6033_v26, %v6037_v30  ;;  %v6041_v4 = vld [vmem:[%s11986_s11 + $0x148] sm:$0xff] }
 0x7e5   : > { %8229 = vmatprep.subr.bf16.mxu1 %v5371_v22 }
 0x7e6   : > { %8230 = vmatpush3.bf16.msra.mxu1 %v5371_v22 }
 0x7e7   : > { %v8195_v46 = vpop.f32.mrb[196].mxu1  ;;  %8231 = vmatprep.subr.bf16.mxu1 %v5376_v3 }
 0x7e8   : > { %v5352_v47 = vpop.f32.mrb[197].mxu1 }
 0x7e9   : > { %v8196_v55 = vpop.f32.mrb[198].mxu1  ;;  %8226 = vmatmul.mubr.msk.bf16.gmra.mrb[204].mxu1 %vm5424_vm1, %v9028_v23  ;;  %v6045_v23 = vld [vmem:[%s11986_s11 + $0x168] sm:$0xff] }
 0x7ea   : > { %v5386_v58 = vpack.c.bf16 %v8196_v55, %v8195_v46  ;;  %v5355_v49 = vpop.f32.mrb[199].mxu1  ;;  %8232 = vmatpush3.bf16.msra.mxu1 %v5376_v3  ;;  %8237 = vmatprep.mubr.msk.bf16.mxu1 %vm5424_vm1, %v9029_v25  ;;  %v6044_v3 = vld [vmem:[%s11986_s11 + $0x160] sm:$0xff]  ;;  %v7795_v46 = vcombine.low %v6041_v4, %v6045_v23 }
 0x7eb   : > { %v5381_v19 = vpack.c.bf16 %v5355_v49, %v5352_v47  ;;  %v7794_v22 = vcombine.high %v6040_v54, %v6044_v3  ;;  %v7793_v25 = vcombine.low %v6040_v54, %v6044_v3  ;;  %v7796_v47 = vcombine.high %v6041_v4, %v6045_v23  ;;  %v6048_v55 = vld [vmem:[%s11986_s11 + $0x180] sm:$0xff]  ;;  %v6049_v49 = vld [vmem:[%s11986_s11 + $0x188] sm:$0xff] }
 0x7ed   : > { %8233 = vmatprep.subr.bf16.mxu1 %v5381_v19 }
 0x7ee   : > { %8234 = vmatpush3.bf16.msra.mxu1 %v5381_v19 }
 0x7ef   : > { %8235 = vmatprep.subr.bf16.mxu1 %v5386_v58 }
 0x7f2   : > { %8236 = vmatpush3.bf16.msra.mxu1 %v5386_v58  ;;  %v6052_v58 = vld [vmem:[%s11986_s11 + $0x1a0] sm:$0xff] }
 0x7f3   : > { %8245 = vmatprep.subr.bf16.mxu1 %v11355_v12  ;;  %v7802_v19 = vcombine.high %v6048_v55, %v6052_v58 }
 0x7f5   : > { %8238 = vmatmul.mubr.msk.bf16.vlgmr.msra.gmra.mrb[200].mxu1 %vm5424_vm1, %v9030_v61  ;;  %v6053_v61 = vld [vmem:[%s11986_s11 + $0x1a8] sm:$0xff] }
 0x7f6   : > { %8246 = vmatpush3.bf16.msra.mxu1 %v11355_v12  ;;  %8241 = vmatprep.mubr.msk.bf16.mxu1 %vm5424_vm1, %v9031_v34  ;;  %v9034_v12 = vld [vmem:[%s11982_s7 + $0x8] sm:$0xff]   ;;  %v7801_v34 = vcombine.low %v6048_v55, %v6052_v58 }
 0x7f7   : > { %8247 = vmatprep.subr.bf16.mxu1 %v11357_v43 }
 0x7fa   : > { %8248 = vmatpush3.bf16.msra.mxu1 %v11357_v43  ;;  %v9035_v43 = vld [vmem:[%s11982_s7 + $0x10] sm:$0xff]  }
 0x7fb   : > { %8249 = vmatprep.subr.bf16.mxu1 %v11359_v2 }
 0x7fd   : > { %8242 = vmatmul.mubr.msk.bf16.gmra.mrb[204].mxu1 %vm5424_vm1, %v9032_v10  ;;  %v7803_v10 = vcombine.low %v6049_v49, %v6053_v61 }
 0x7fe   : > { %8250 = vmatpush3.bf16.msra.mxu1 %v11359_v2  ;;  %8253 = vmatprep.mubr.msk.bf16.mxu1 %vm5424_vm1, %v9033_v53  ;;  %v9040_v2 = vld [vmem:[%s11982_s7 + $0x58] sm:$0xff]   ;;  %v7804_v53 = vcombine.high %v6049_v49, %v6053_v61 }
 0x7ff   : > { %8251 = vmatprep.subr.bf16.mxu1 %v11361_v45 }
 0x802   : > { %8252 = vmatpush3.bf16.msra.mxu1 %v11361_v45  ;;  %v7753_v45 = vcombine.low %v6000_v62, %v6004_v57  ;;  %v11563_v57 = vld [vmem:[%s11986_s11 + $0x10] sm:$0xff] }
 0x803   : > { %8261 = vmatprep.subr.bf16.mxu1 %v11370_v1  ;;  %v7758_v17 = vcombine.high %v11563_v57, %v11568_v63 }
 0x804   : > { %6385 = vmatpush1.bf16.msra.mxu0 %v7753_v45  ;;  %v11580_v45 = vld [vmem:[%s11986_s11 + $0x38] sm:$0xff] }
 0x805   : > { %8254 = vmatmul.mubr.msk.bf16.vlgmr.msra.gmra.mrb[200].mxu1 %vm5424_vm1, %v9034_v12  ;;  %6386 = vmatprep.subr.bf16.mxu0 %v7762_v33  ;;  %v6056_v12 = vld [vmem:[%s11986_s11 + $0x1c0] sm:$0xff] }
 0x806   : > { %8262 = vmatpush3.bf16.msra.mxu1 %v11370_v1  ;;  %8257 = vmatprep.mubr.msk.bf16.mxu1 %vm5424_vm1, %v9035_v43  ;;  %v7761_v1 = vcombine.low %v6008_v32, %v6012_v42  ;;  %v6060_v43 = vld [vmem:[%s11986_s11 + $0x1e0] sm:$0xff]  ;;  %v7760_v32 = vcombine.high %v11573_v41, %v11580_v45 }
 0x807   : > { %8263 = vmatprep.subr.bf16.mxu1 %v11380_v56  ;;  %v7744_v42 = vld [vmem:[%s11984_s9] ss:$0 sm:$0xff] }
 0x808   : > { %6387 = vmatpush1.bf16.msra.mxu0 %v7761_v1 }
 0x809   : > { %6388 = vmatprep.subr.bf16.mxu0 %v7770_v27 }
 0x80a   : > { %8264 = vmatpush3.bf16.msra.mxu1 %v11380_v56  ;;  %v7769_v56 = vcombine.low %v6016_v14, %v6020_v20 }
 0x80b   : > { %8265 = vmatprep.subr.bf16.mxu1 %v11383_v36 }
 0x80c   : > { %6389 = vmatpush1.bf16.msra.mxu0 %v7769_v56 }
 0x80d   : > { %8258 = vmatmul.mubr.msk.bf16.gmra.mrb[204].mxu1 %vm5424_vm1, %v9036_v35  ;;  %v6057_v35 = vld [vmem:[%s11986_s11 + $0x1c8] sm:$0xff] }
 0x80e   : > { %8266 = vmatpush3.bf16.msra.mxu1 %v11383_v36  ;;  %8269 = vmatprep.mubr.msk.bf16.mxu1 %vm5424_vm1, %v9037_v59  ;;  %v7778_v36 = vcombine.high %v6024_v11, %v6028_v29  ;;  %v7810_v59 = vcombine.high %v6056_v12, %v6060_v43 }
 0x80f   : > { %8267 = vmatprep.subr.bf16.mxu1 %v11385_v18 }
 0x810   : > { %6390 = vmatprep.subr.bf16.mxu0 %v7778_v36 }
 0x811   : > { %6391 = vmatpush1.bf16.msra.mxu0 %v7777_v39 }
 0x812   : > { %8268 = vmatpush3.bf16.msra.mxu1 %v11385_v18  ;;  %v6036_v18 = vld [vmem:[%s11986_s11 + $0x120] sm:$0xff] }
 0x813   : > { %6457 = vmatprep.subr.bf16.mxu1 %v7756_v44  ;;  %v7786_v28 = vcombine.high %v6032_v9, %v6036_v18  ;;  %v7785_v38 = vcombine.low %v6032_v9, %v6036_v18  ;;  %v7759_v44 = vcombine.low %v11573_v41, %v11580_v45  ;;  %v6031_v41 = vld [vmem:[%s11986_s11 + $0xf8] sm:$0xff] }
 0x815   : > { %8270 = vmatmul.mubr.msk.bf16.vlgmr.msra.gmra.mrb[200].mxu1 %vm5424_vm1, %v9038_v8  ;;  %6392 = vmatprep.subr.bf16.mxu0 %v7786_v28  ;;  %v6061_v8 = vld [vmem:[%s11986_s11 + $0x1e8] sm:$0xff] }
 0x816   : > { %8273 = vmatprep.mubr.msk.bf16.mxu1 %vm5424_vm1, %v9039_v6  ;;  %6458 = vmatpush1.bf16.msra.mxu1 %v7755_v60  ;;  %v7809_v6 = vcombine.low %v6056_v12, %v6060_v43  ;;  %v7812_v62 = vcombine.high %v6057_v35, %v6061_v8  ;;  %v7757_v60 = vcombine.low %v11563_v57, %v11568_v63  ;;  %v6030_v57 = vld [vmem:[%s11986_s11 + $0xf0] sm:$0xff]  ;;  %v6027_v63 = vld [vmem:[%s11986_s11 + $0xd8] sm:$0xff] }
 0x817   : > { %6459 = vmatprep.subr.bf16.mxu1 %v7764_v15  ;;  %6393 = vmatpush1.bf16.msra.mxu0 %v7785_v38 }
 0x818   : > { %6394 = vmatprep.subr.bf16.mxu0 %v7794_v22 }
 0x81a   : > { %6460 = vmatpush1.bf16.msra.mxu1 %v7763_v31 }
 0x81b   : > { %6461 = vmatprep.subr.bf16.mxu1 %v7772_v13  ;;  %6395 = vmatpush1.bf16.msra.mxu0 %v7793_v25 }
 0x81c   : > { %6396 = vmatprep.subr.bf16.mxu0 %v7802_v19  ;;  %v6010_v19 = vld [vmem:[%s11986_s11 + $0x50] sm:$0xff] }
 0x81d   : > { %8274 = vmatmul.mubr.msk.bf16.gmra.mrb[204].mxu1 %vm5424_vm1, %v9040_v2  ;;  %v7811_v2 = vcombine.low %v6057_v35, %v6061_v8 }
 0x81e   : > { %6489 = vmatprep.mubr.bf16.mxu1 %v12316_v21  ;;  %6462 = vmatpush1.bf16.msra.mxu1 %v7771_v24 }
 0x81f   : > { %6463 = vmatprep.subr.bf16.mxu1 %v7780_v48  ;;  %6397 = vmatpush1.bf16.msra.mxu0 %v7801_v34  ;;  %v6014_v34 = vld [vmem:[%s11986_s11 + $0x70] sm:$0xff] }
 0x820   : > { %6398 = vmatprep.subr.bf16.mxu0 %v7810_v59  ;;  %v7766_v8 = vcombine.high %v6010_v19, %v6014_v34 }
 0x822   : > { %6464 = vmatpush1.bf16.msra.mxu1 %v7779_v7 }
 0x823   : > { %6465 = vmatprep.subr.bf16.mxu1 %v7788_v51  ;;  %6399 = vmatpush1.bf16.msra.mxu0 %v7809_v6 }
 0x824   : > { %6530 = vmatprep.subr.bf16.mxu0 %v7758_v17  ;;  %v6019_v17 = vld [vmem:[%s11986_s11 + $0x98] sm:$0xff] }
 0x826   : > { %6466 = vmatpush1.bf16.msra.mxu1 %v7787_v40 }
 0x827   : > { %6467 = vmatprep.subr.bf16.mxu1 %v7796_v47 }
 0x82a   : > { %6468 = vmatpush1.bf16.msra.mxu1 %v7795_v46 }
 0x82b   : > { %6469 = vmatprep.subr.bf16.mxu1 %v7804_v53  ;;  %v6015_v53 = vld [vmem:[%s11986_s11 + $0x78] sm:$0xff] }
 0x82e   : > { %6470 = vmatpush1.bf16.msra.mxu1 %v7803_v10  ;;  %v6011_v10 = vld [vmem:[%s11986_s11 + $0x58] sm:$0xff] }
 0x82f   : > { %6471 = vmatprep.subr.bf16.mxu1 %v7812_v62  ;;  %v7768_v6 = vcombine.high %v6011_v10, %v6015_v53  ;;  %v6022_v62 = vld [vmem:[%s11986_s11 + $0xb0] sm:$0xff] }
 0x832   : > { %6472 = vmatpush1.bf16.msra.mxu1 %v7811_v2  ;;  %v6018_v2 = vld [vmem:[%s11986_s11 + $0x90] sm:$0xff] }
 0x833   : > { %6603 = vmatprep.subr.bf16.mxu1 %v7760_v32  ;;  %v6023_v32 = vld [vmem:[%s11986_s11 + $0xb8] sm:$0xff] }
 0x8e8   : > { %v8271_v52 = vpop.f32.mrb[200].mxu1 }
 0x8e9   : > { %v5942_v33 = vadd.f32 %v8271_v52, %v7744_v42  ;;  %v5886_v5 = vpop.f32.mrb[201].mxu1  ;;  %v7767_v52 = vcombine.low %v6011_v10, %v6015_v53  ;;  %v9310_v53 = vmov 0.0  }
 0x8ea   : > { %v5940_v1 = vadd.f32 %v7744_v42, %v5886_v5  ;;  %v8272_v31 = vpop.f32.mrb[202].mxu1  ;;  %v7774_v5 = vcombine.high %v6018_v2, %v6022_v62 }
 0x8eb   : > { %v7747_v15 = vmul.f32 -1.442695, %v5942_v33  ;;  %v5943_v14 = vadd.f32 %v8272_v31, %v7744_v42  ;;  %v5889_v20 = vpop.f32.mrb[203].mxu1  ;;  %v6026_v31 = vld [vmem:[%s11986_s11 + $0xd0] sm:$0xff] }
 0x8ec   : > { %v7745_v0 = vmul.f32 -1.442695, %v5940_v1  ;;  %v5941_v27 = vadd.f32 %v7744_v42, %v5889_v20  ;;  %v7776_v1 = vcombine.high %v6019_v17, %v6023_v32  ;;  %v7775_v20 = vcombine.low %v6019_v17, %v6023_v32 }
 0x8ed   : > { %9201 = vpow2.f32 %v7747_v15  ;;  %v7748_v50 = vmul.f32 -1.442695, %v5943_v14  ;;  %v7773_v14 = vcombine.low %v6018_v2, %v6022_v62 }
 0x8ee   : > { %9203 = vpow2.f32 %v7745_v0  ;;  %v7746_v56 = vmul.f32 -1.442695, %v5941_v27  ;;  %v7782_v27 = vcombine.high %v6026_v31, %v6030_v57 }
 0x8ef   : > { %9205 = vpow2.f32 %v7748_v50  ;;  %v7784_v50 = vcombine.high %v6027_v63, %v6031_v41 }
 0x8f0   : > { %9207 = vpow2.f32 %v7746_v56  ;;  %v8275_v24 = vpop.f32.mrb[204].mxu1  ;;  %v6034_v56 = vld [vmem:[%s11986_s11 + $0x110] sm:$0xff] }
 0x8f1   : > { %v5946_v13 = vadd.f32 %v8275_v24, %v7744_v42  ;;  %v5902_v11 = vpop.f32.mrb[205].mxu1  ;;  %v6038_v24 = vld [vmem:[%s11986_s11 + $0x130] sm:$0xff] }
 0x8f2   : > { %v5944_v29 = vadd.f32 %v7744_v42, %v5902_v11  ;;  %v8276_v37 = vpop.f32.mrb[206].mxu1  ;;  %v6039_v11 = vld [vmem:[%s11986_s11 + $0x138] sm:$0xff] }
 0x8f3   : > { %v7751_v36 = vmul.f32 -1.442695, %v5946_v13  ;;  %v5947_v16 = vadd.f32 %v8276_v37, %v7744_v42  ;;  %v5905_v39 = vpop.f32.mrb[207].mxu1  ;;  %v6035_v13 = vld [vmem:[%s11986_s11 + $0x118] sm:$0xff]  ;;  %v7783_v37 = vcombine.low %v6027_v63, %v6031_v41 }
 0x8f4   : > { %v7749_v7 = vmul.f32 -1.442695, %v5944_v29  ;;  %v5945_v48 = vadd.f32 %v7744_v42, %v5905_v39  ;;  %v7765_v42 = vcombine.low %v6010_v19, %v6014_v34  ;;  %v7781_v29 = vcombine.low %v6026_v31, %v6030_v57  ;;  %v6042_v39 = vld [vmem:[%s11986_s11 + $0x150] sm:$0xff] }
 0x8f5   : > { %9209 = vpow2.f32 %v7751_v36  ;;  %v7752_v9 = vmul.f32 -1.442695, %v5947_v16  ;;  %v7790_v36 = vcombine.high %v6034_v56, %v6038_v24  ;;  %v7792_v16 = vcombine.high %v6035_v13, %v6039_v11 }
 0x8f6   : > { %9211 = vpow2.f32 %v7749_v7  ;;  %v7750_v18 = vmul.f32 -1.442695, %v5945_v48  ;;  %v6046_v7 = vld [vmem:[%s11986_s11 + $0x170] sm:$0xff]  ;;  %v6043_v48 = vld [vmem:[%s11986_s11 + $0x158] sm:$0xff] }
 0x8f7   : > { %v9202_v26 = vpop.eup %9201  ;;  %9213 = vpow2.f32 %v7752_v9  ;;  %v6047_v9 = vld [vmem:[%s11986_s11 + $0x178] sm:$0xff] }
 0x8f8   : > { %v9204_v28 = vpop.eup %9203  ;;  %v5974_v30 = vadd.f32 1.0, %v9202_v26  ;;  %9215 = vpow2.f32 %v7750_v18  ;;  %v7789_v18 = vcombine.low %v6034_v56, %v6038_v24  ;;  %v7791_v26 = vcombine.low %v6035_v13, %v6039_v11 }
 0x8f9   : > { %v9206_v38 = vpop.eup %9205  ;;  %v5972_v40 = vadd.f32 1.0, %v9204_v28  ;;  %v7798_v28 = vcombine.high %v6042_v39, %v6046_v7 }
 0x8fa   : > { %v9208_v51 = vpop.eup %9207  ;;  %9217 = vrcp.f32 %v5974_v30  ;;  %v5975_v54 = vadd.f32 1.0, %v9206_v38  ;;  %v7800_v30 = vcombine.high %v6043_v48, %v6047_v9  ;;  %v6050_v38 = vld [vmem:[%s11986_s11 + $0x190] sm:$0xff] }
 0x8fb   : > { %9219 = vrcp.f32 %v5972_v40  ;;  %v5973_v3 = vadd.f32 1.0, %v9208_v51  ;;  %v6054_v40 = vld [vmem:[%s11986_s11 + $0x1b0] sm:$0xff]  ;;  %v6051_v51 = vld [vmem:[%s11986_s11 + $0x198] sm:$0xff] }
 0x8fc   : > { %9221 = vrcp.f32 %v5975_v54  ;;  %v6055_v54 = vld [vmem:[%s11986_s11 + $0x1b8] sm:$0xff] }
 0x8fd   : > { %9223 = vrcp.f32 %v5973_v3  ;;  %v7797_v3 = vcombine.low %v6042_v39, %v6046_v7 }
 0x8ff   : > { %v9210_v4 = vpop.eup %9209 }
 0x900   : > { %v9212_v22 = vpop.eup %9211  ;;  %v5978_v23 = vadd.f32 1.0, %v9210_v4  ;;  %v7799_v4 = vcombine.low %v6043_v48, %v6047_v9 }
 0x901   : > { %v9214_v25 = vpop.eup %9213  ;;  %v5976_v46 = vadd.f32 1.0, %v9212_v22  ;;  %v7806_v22 = vcombine.high %v6050_v38, %v6054_v40 }
 0x902   : > { %v9216_v47 = vpop.eup %9215  ;;  %9225 = vrcp.f32 %v5978_v23  ;;  %v5979_v55 = vadd.f32 1.0, %v9214_v25  ;;  %v7808_v23 = vcombine.high %v6051_v51, %v6055_v54  ;;  %v6058_v25 = vld [vmem:[%s11986_s11 + $0x1d0] sm:$0xff] }
 0x903   : > { %9227 = vrcp.f32 %v5976_v46  ;;  %v5977_v58 = vadd.f32 1.0, %v9216_v47  ;;  %v6062_v46 = vld [vmem:[%s11986_s11 + $0x1f0] sm:$0xff]  ;;  %v6059_v47 = vld [vmem:[%s11986_s11 + $0x1d8] sm:$0xff] }
 0x904   : > { %v9218_v49 = vpop.eup %9217  ;;  %9229 = vrcp.f32 %v5979_v55  ;;  %v6063_v55 = vld [vmem:[%s11986_s11 + $0x1f8] sm:$0xff]  ;;  %v7814_v19 = vcombine.high %v6058_v25, %v6062_v46  ;;  %v7813_v34 = vcombine.low %v6058_v25, %v6062_v46 }
 0x905   : > { %v9220_v61 = vpop.eup %9219  ;;  %9231 = vrcp.f32 %v5977_v58  ;;  %v7805_v58 = vcombine.low %v6050_v38, %v6054_v40  ;;  %v7815_v10 = vcombine.low %v6059_v47, %v6063_v55 }
 0x906   : > { %v9222_v12 = vpop.eup %9221 }
 0x907   : > { %v9224_v43 = vpop.eup %9223  ;;  %v11603_v35 = vpack.c.bf16 %v9222_v12, %v9218_v49  ;;  %v7807_v49 = vcombine.low %v6051_v51, %v6055_v54  ;;  %v7817_v54 = vld [vmem:[%s11985_s10 + $0x4] sm:$0xf] }
 0x908   : > { %v11605_v59 = vpack.c.bf16 %v9224_v43, %v9220_v61  ;;  %v7816_v61 = vcombine.high %v6059_v47, %v6063_v55 }
 0x90a   : > { %6417 = vmatmul.mubr.bf16.vlgmr.msra.gmra.mrb[40].mxu0 %v11605_v59  ;;  %6490 = vmatmul.mubr.bf16.vlgmr.msra.gmra.mrb[208].mxu1 %v11605_v59 }
 0x90b   : > { %6531 = vmatpush1.bf16.msra.mxu0 %v7757_v60  ;;  %6604 = vmatpush1.bf16.msra.mxu1 %v7759_v44 }
 0x90c   : > { %v9226_v33 = vpop.eup %9225  ;;  %6532 = vmatprep.subr.bf16.mxu0 %v7766_v8  ;;  %6605 = vmatprep.subr.bf16.mxu1 %v7768_v6 }
 0x90d   : > { %v9228_v15 = vpop.eup %9227  ;;  %6426 = vmatprep.mubr.bf16.mxu0 %v12316_v21  ;;  %6499 = vmatprep.mubr.bf16.mxu1 %v12316_v21 }
 0x90e   : > { %v9230_v45 = vpop.eup %9229 }
 0x90f   : > { %v9232_v60 = vpop.eup %9231  ;;  %v11641_v44 = vpack.c.bf16 %v9230_v45, %v9226_v33  ;;  %6533 = vmatpush1.bf16.msra.mxu0 %v7765_v42  ;;  %6606 = vmatpush1.bf16.msra.mxu1 %v7767_v52 }
 0x910   : > { %v11643_v0 = vpack.c.bf16 %v9232_v60, %v9228_v15  ;;  %6534 = vmatprep.subr.bf16.mxu0 %v7774_v5  ;;  %6607 = vmatprep.subr.bf16.mxu1 %v7776_v1 }
 0x912   : > { %6427 = vmatmul.mubr.bf16.gmra.mrb[44].mxu0 %v11603_v35  ;;  %6500 = vmatmul.mubr.bf16.gmra.mrb[212].mxu1 %v11603_v35 }
 0x913   : > { %6535 = vmatpush1.bf16.msra.mxu0 %v7773_v14  ;;  %6608 = vmatpush1.bf16.msra.mxu1 %v7775_v20 }
 0x914   : > { %6536 = vmatprep.subr.bf16.mxu0 %v7782_v27  ;;  %6609 = vmatprep.subr.bf16.mxu1 %v7784_v50 }
 0x915   : > { %6436 = vmatprep.mubr.bf16.mxu0 %v12316_v21  ;;  %6509 = vmatprep.mubr.bf16.mxu1 %v12316_v21 }
 0x917   : > { %6537 = vmatpush1.bf16.msra.mxu0 %v7781_v29  ;;  %6610 = vmatpush1.bf16.msra.mxu1 %v7783_v37 }
 0x918   : > { %6538 = vmatprep.subr.bf16.mxu0 %v7790_v36  ;;  %6611 = vmatprep.subr.bf16.mxu1 %v7792_v16 }
 0x91a   : > { %6437 = vmatmul.mubr.bf16.gmra.mrb[48].mxu0 %v11643_v0  ;;  %6510 = vmatmul.mubr.bf16.gmra.mrb[216].mxu1 %v11643_v0 }
 0x91b   : > { %6539 = vmatpush1.bf16.msra.mxu0 %v7789_v18  ;;  %6612 = vmatpush1.bf16.msra.mxu1 %v7791_v26 }
 0x91c   : > { %6540 = vmatprep.subr.bf16.mxu0 %v7798_v28  ;;  %6613 = vmatprep.subr.bf16.mxu1 %v7800_v30 }
 0x91d   : > { %6446 = vmatprep.mubr.bf16.mxu0 %v12316_v21  ;;  %6519 = vmatprep.mubr.bf16.mxu1 %v12316_v21 }
 0x91f   : > { %6541 = vmatpush1.bf16.msra.mxu0 %v7797_v3  ;;  %6614 = vmatpush1.bf16.msra.mxu1 %v7799_v4 }
 0x920   : > { %6542 = vmatprep.subr.bf16.mxu0 %v7806_v22  ;;  %6615 = vmatprep.subr.bf16.mxu1 %v7808_v23 }
 0x922   : > { %6447 = vmatmul.mubr.bf16.gmra.mrb[52].mxu0 %v11641_v44  ;;  %6520 = vmatmul.mubr.bf16.gmra.mrb[220].mxu1 %v11641_v44 }
 0x923   : > { %6543 = vmatpush1.bf16.msra.mxu0 %v7805_v58  ;;  %6616 = vmatpush1.bf16.msra.mxu1 %v7807_v49 }
 0x924   : > { %6544 = vmatprep.subr.bf16.mxu0 %v7814_v19  ;;  %6617 = vmatprep.subr.bf16.mxu1 %v7816_v61 }
 0x925   : > { %6562 = vmatprep.mubr.bf16.mxu0 %v12316_v21  ;;  %6635 = vmatprep.mubr.bf16.mxu1 %v12316_v21 }
 0x927   : > { %6545 = vmatpush1.bf16.msra.mxu0 %v7813_v34  ;;  %6618 = vmatpush1.bf16.msra.mxu1 %v7815_v10 }
 0x928   : > { %8277 = vmatprep.subr.bf16.mxu0 %v9310_v53  ;;  %8301 = vmatprep.subr.bf16.mxu1 %v9310_v53 }
 0x92a   : > { %6563 = vmatmul.mubr.bf16.vlgmr.msra.gmra.mrb[56].mxu0 %v11605_v59  ;;  %6636 = vmatmul.mubr.bf16.vlgmr.msra.gmra.mrb[224].mxu1 %v11605_v59 }
 0x92b   : > { %6572 = vmatprep.mubr.bf16.mxu0 %v12316_v21  ;;  %6645 = vmatprep.mubr.bf16.mxu1 %v12316_v21 }
 0x932   : > { %6573 = vmatmul.mubr.bf16.gmra.mrb[60].mxu0 %v11603_v35  ;;  %6646 = vmatmul.mubr.bf16.gmra.mrb[228].mxu1 %v11603_v35 }
 0x933   : > { %6582 = vmatprep.mubr.bf16.mxu0 %v12316_v21  ;;  %6655 = vmatprep.mubr.bf16.mxu1 %v12316_v21 }
 0x93a   : > { %6583 = vmatmul.mubr.bf16.gmra.mrb[64].mxu0 %v11643_v0  ;;  %6656 = vmatmul.mubr.bf16.gmra.mrb[232].mxu1 %v11643_v0 }
 0x93b   : > { %6592 = vmatprep.mubr.bf16.mxu0 %v12316_v21  ;;  %6665 = vmatprep.mubr.bf16.mxu1 %v12316_v21 }
 0x942   : > { %6593 = vmatmul.mubr.bf16.gmra.mrb[68].mxu0 %v11641_v44  ;;  %6666 = vmatmul.mubr.bf16.gmra.mrb[236].mxu1 %v11641_v44 }
 0x943   : > { %8285 = vmatprep.mubr.msk.bf16.mxu0 %vm9311_vm2, %v9310_v53  ;;  %8309 = vmatprep.mubr.msk.bf16.mxu1 %vm9311_vm2, %v9310_v53 }
 0x9dd   : > { %v11725_v12 = vpop.f32.mrb[40].mxu0  ;;  %v11727_v43 = vpop.f32.mrb[208].mxu1 }
 0x9de   : > { %v6420_v21 = vpop.f32.mrb[41].mxu0  ;;  %v6493_v35 = vpop.f32.mrb[209].mxu1 }
 0x9df   : > { %v11729_v59 = vpop.f32.mrb[42].mxu0  ;;  %v11731_v8 = vpop.f32.mrb[210].mxu1 }
 0x9e0   : > { %v6676_v6 = vpack.c.bf16 %v11729_v59, %v11725_v12  ;;  %v6678_v2 = vpack.c.bf16 %v11731_v8, %v11727_v43  ;;  %v6424_v62 = vpop.f32.mrb[43].mxu0  ;;  %v6497_v17 = vpop.f32.mrb[211].mxu1  ;;  %v6708_v12 = vld [vmem:[%s11985_s10] sm:$0xf]  ;;  %v7819_v43 = vld [vmem:[%s11985_s10 + $0x8] sm:$0xf] }
 0x9e1   : > { %v6677_v32 = vpack.c.bf16 %v6424_v62, %v6420_v21  ;;  %v6679_v42 = vpack.c.bf16 %v6497_v17, %v6493_v35  ;;  %v7822_v59 = vld [vmem:[%s11985_s10 + $0x10] sm:$0xf]  ;;  %v7825_v8 = vld [vmem:[%s11985_s10 + $0x18] sm:$0xf] }
 0x9e3   : > { %8278 = vmatpush3.bf16.msra.mxu0 %v6677_v32 }
 0x9e4   : > { %8279 = vmatprep.subr.bf16.mxu0 %v9310_v53 }
 0x9e5   : > { %v11738_v52 = vpop.f32.mrb[44].mxu0  ;;  %v11740_v33 = vpop.f32.mrb[212].mxu1 }
 0x9e6   : > { %v6430_v5 = vpop.f32.mrb[45].mxu0  ;;  %v6503_v1 = vpop.f32.mrb[213].mxu1 }
 0x9e7   : > { %v11742_v31 = vpop.f32.mrb[46].mxu0  ;;  %v11744_v15 = vpop.f32.mrb[214].mxu1 }
 0x9e8   : > { %v6684_v57 = vpack.c.bf16 %v11742_v31, %v11738_v52  ;;  %v6686_v63 = vpack.c.bf16 %v11744_v15, %v11740_v33  ;;  %v6434_v41 = vpop.f32.mrb[47].mxu0  ;;  %v6507_v45 = vpop.f32.mrb[215].mxu1 }
 0x9e9   : > { %v6685_v60 = vpack.c.bf16 %v6434_v41, %v6430_v5  ;;  %v6687_v44 = vpack.c.bf16 %v6507_v45, %v6503_v1 }
 0x9eb   : > { %8280 = vmatpush3.bf16.msra.mxu0 %v6685_v60  ;;  %v7820_v60 = vld [vmem:[%s11985_s10 + $0xc] sm:$0xf] }
 0x9ec   : > { %8281 = vmatprep.subr.bf16.mxu0 %v9310_v53 }
 0x9ed   : > { %v11751_v14 = vpop.f32.mrb[48].mxu0  ;;  %v11753_v20 = vpop.f32.mrb[216].mxu1 }
 0x9ee   : > { %v6440_v0 = vpop.f32.mrb[49].mxu0  ;;  %v6513_v27 = vpop.f32.mrb[217].mxu1 }
 0x9ef   : > { %v11755_v50 = vpop.f32.mrb[50].mxu0  ;;  %v11757_v56 = vpop.f32.mrb[218].mxu1 }
 0x9f0   : > { %v6692_v24 = vpack.c.bf16 %v11755_v50, %v11751_v14  ;;  %v6694_v13 = vpack.c.bf16 %v11757_v56, %v11753_v20  ;;  %v6444_v11 = vpop.f32.mrb[51].mxu0  ;;  %v6517_v29 = vpop.f32.mrb[219].mxu1 }
 0x9f1   : > { %v6693_v37 = vpack.c.bf16 %v6444_v11, %v6440_v0  ;;  %v6695_v36 = vpack.c.bf16 %v6517_v29, %v6513_v27 }
 0x9f3   : > { %8282 = vmatpush3.bf16.msra.mxu0 %v6693_v37 }
 0x9f4   : > { %8283 = vmatprep.subr.bf16.mxu0 %v9310_v53 }
 0x9f5   : > { %v11764_v16 = vpop.f32.mrb[52].mxu0  ;;  %v11766_v39 = vpop.f32.mrb[220].mxu1 }
 0x9f6   : > { %v6450_v7 = vpop.f32.mrb[53].mxu0  ;;  %v6523_v48 = vpop.f32.mrb[221].mxu1 }
 0x9f7   : > { %v11768_v9 = vpop.f32.mrb[54].mxu0  ;;  %v11770_v18 = vpop.f32.mrb[222].mxu1 }
 0x9f8   : > { %v6700_v26 = vpack.c.bf16 %v11768_v9, %v11764_v16  ;;  %v6702_v28 = vpack.c.bf16 %v11770_v18, %v11766_v39  ;;  %v6454_v30 = vpop.f32.mrb[55].mxu0  ;;  %v6527_v38 = vpop.f32.mrb[223].mxu1 }
 0x9f9   : > { %v6701_v40 = vpack.c.bf16 %v6454_v30, %v6450_v7  ;;  %v6703_v51 = vpack.c.bf16 %v6527_v38, %v6523_v48 }
 0x9fb   : > { %8284 = vmatpush3.bf16.msra.mxu0 %v6701_v40 }
 0x9fc   : > { %8289 = vmatprep.subr.bf16.mxu0 %v9310_v53 }
 0x9fd   : > { %v11780_v3 = vpop.f32.mrb[56].mxu0  ;;  %v11782_v4 = vpop.f32.mrb[224].mxu1 }
 0x9fe   : > { %v6566_v22 = vpop.f32.mrb[57].mxu0  ;;  %v6639_v23 = vpop.f32.mrb[225].mxu1  ;;  %8286 = vmatmul.mubr.msk.bf16.vlgmr.msra.gmra.mrb[72].mxu0 %vm5424_vm1, %v7817_v54 }
 0x9ff   : > { %v11785_v25 = vpop.f32.mrb[58].mxu0  ;;  %v11787_v46 = vpop.f32.mrb[226].mxu1  ;;  %8290 = vmatpush3.bf16.msra.mxu0 %v6679_v42  ;;  %8297 = vmatprep.mubr.msk.bf16.mxu0 %vm9311_vm2, %v9310_v53 }
 0xa00   : > { %v6680_v47 = vpack.c.bf16 %v11785_v25, %v11780_v3  ;;  %v6682_v55 = vpack.c.bf16 %v11787_v46, %v11782_v4  ;;  %v6570_v58 = vpop.f32.mrb[59].mxu0  ;;  %v6643_v49 = vpop.f32.mrb[227].mxu1  ;;  %8291 = vmatprep.subr.bf16.mxu0 %v9310_v53 }
 0xa01   : > { %v6681_v19 = vpack.c.bf16 %v6570_v58, %v6566_v22  ;;  %v6683_v61 = vpack.c.bf16 %v6643_v49, %v6639_v23 }
 0xa03   : > { %8292 = vmatpush3.bf16.msra.mxu0 %v6687_v44  ;;  %8302 = vmatpush3.bf16.msra.mxu1 %v6681_v19 }
 0xa04   : > { %8293 = vmatprep.subr.bf16.mxu0 %v9310_v53  ;;  %8303 = vmatprep.subr.bf16.mxu1 %v9310_v53 }
 0xa05   : > { %v11798_v34 = vpop.f32.mrb[60].mxu0  ;;  %v11800_v10 = vpop.f32.mrb[228].mxu1 }
 0xa06   : > { %v6576_v21 = vpop.f32.mrb[61].mxu0  ;;  %v6649_v35 = vpop.f32.mrb[229].mxu1 }
 0xa07   : > { %v11802_v62 = vpop.f32.mrb[62].mxu0  ;;  %v11804_v17 = vpop.f32.mrb[230].mxu1  ;;  %8294 = vmatpush3.bf16.msra.mxu0 %v6695_v36 }
 0xa08   : > { %v6688_v32 = vpack.c.bf16 %v11802_v62, %v11798_v34  ;;  %v6690_v42 = vpack.c.bf16 %v11804_v17, %v11800_v10  ;;  %v6580_v5 = vpop.f32.mrb[63].mxu0  ;;  %v6653_v1 = vpop.f32.mrb[231].mxu1  ;;  %8295 = vmatprep.subr.bf16.mxu0 %v9310_v53 }
 0xa09   : > { %v6689_v41 = vpack.c.bf16 %v6580_v5, %v6576_v21  ;;  %v6691_v45 = vpack.c.bf16 %v6653_v1, %v6649_v35 }
 0xa0b   : > { %8296 = vmatpush3.bf16.msra.mxu0 %v6703_v51  ;;  %8304 = vmatpush3.bf16.msra.mxu1 %v6689_v41  ;;  %v7823_v41 = vld [vmem:[%s11985_s10 + $0x14] sm:$0xf] }
 0xa0c   : > { %8313 = vmatprep.subr.bf16.mxu0 %v9310_v53  ;;  %8305 = vmatprep.subr.bf16.mxu1 %v9310_v53 }
 0xa0d   : > { %v11816_v44 = vpop.f32.mrb[64].mxu0  ;;  %v11818_v0 = vpop.f32.mrb[232].mxu1 }
 0xa0e   : > { %v6586_v27 = vpop.f32.mrb[65].mxu0  ;;  %v6659_v11 = vpop.f32.mrb[233].mxu1  ;;  %8298 = vmatmul.mubr.msk.bf16.vlgmr.msra.gmra.mrb[76].mxu0 %vm5424_vm1, %v7820_v60 }
 0xa0f   : > { %v11821_v29 = vpop.f32.mrb[66].mxu0  ;;  %v11823_v37 = vpop.f32.mrb[234].mxu1  ;;  %8314 = vmatpush3.bf16.msra.mxu0 %v6683_v61  ;;  %8321 = vmatprep.mubr.msk.bf16.mxu0 %vm9311_vm2, %v9310_v53 }
 0xa10   : > { %v6696_v36 = vpack.c.bf16 %v11821_v29, %v11816_v44  ;;  %v6698_v7 = vpack.c.bf16 %v11823_v37, %v11818_v0  ;;  %v6590_v48 = vpop.f32.mrb[67].mxu0  ;;  %v6663_v30 = vpop.f32.mrb[235].mxu1  ;;  %8315 = vmatprep.subr.bf16.mxu0 %v9310_v53  ;;  %v7832_v29 = vld [vmem:[%s11987_s12] ss:$0 sm:$0xff] }
 0xa11   : > { %v6697_v38 = vpack.c.bf16 %v6590_v48, %v6586_v27  ;;  %v6699_v40 = vpack.c.bf16 %v6663_v30, %v6659_v11 }
 0xa13   : > { %8306 = vmatpush3.bf16.msra.mxu1 %v6697_v38  ;;  %8316 = vmatpush3.bf16.msra.mxu0 %v6691_v45  ;;  %v7826_v45 = vld [vmem:[%s11985_s10 + $0x1c] sm:$0xf] }
 0xa14   : > { %8317 = vmatprep.subr.bf16.mxu0 %v9310_v53  ;;  %8307 = vmatprep.subr.bf16.mxu1 %v9310_v53 }
 0xa15   : > { %v6594_v51 = vpop.f32.mrb[68].mxu0  ;;  %v6667_v54 = vpop.f32.mrb[236].mxu1 }
 0xa16   : > { %v6596_v22 = vpop.f32.mrb[69].mxu0  ;;  %v6669_v23 = vpop.f32.mrb[237].mxu1 }
 0xa17   : > { %v6598_v58 = vpop.f32.mrb[70].mxu0  ;;  %v6671_v49 = vpop.f32.mrb[238].mxu1  ;;  %8318 = vmatpush3.bf16.msra.mxu0 %v6699_v40 }
 0xa18   : > { %v6704_v19 = vpack.c.bf16 %v6598_v58, %v6594_v51  ;;  %v6706_v61 = vpack.c.bf16 %v6671_v49, %v6667_v54  ;;  %v6600_v21 = vpop.f32.mrb[71].mxu0  ;;  %v6673_v35 = vpop.f32.mrb[239].mxu1  ;;  %8319 = vmatprep.subr.bf16.mxu0 %v9310_v53 }
 0xa19   : > { %v6705_v5 = vpack.c.bf16 %v6600_v21, %v6596_v22  ;;  %v6707_v1 = vpack.c.bf16 %v6673_v35, %v6669_v23 }
 0xa1b   : > { %8308 = vmatpush3.bf16.msra.mxu1 %v6705_v5  ;;  %8320 = vmatpush3.bf16.msra.mxu0 %v6707_v1 }
 0xa1c   : > { %8325 = vmatprep.subr.bf16.mxu1 %v9310_v53  ;;  %8337 = vmatprep.subr.bf16.mxu0 %v9310_v53 }
 0xa1e   : > { %8310 = vmatmul.mubr.msk.bf16.vlgmr.msra.gmra.mrb[240].mxu1 %vm5424_vm1, %v7823_v41  ;;  %8322 = vmatmul.mubr.msk.bf16.vlgmr.msra.gmra.mrb[80].mxu0 %vm5424_vm1, %v7826_v45 }
 0xa1f   : > { %8326 = vmatpush3.bf16.msra.mxu1 %v6676_v6  ;;  %8338 = vmatpush3.bf16.msra.mxu0 %v6678_v2 }
 0xa20   : > { %8327 = vmatprep.subr.bf16.mxu1 %v9310_v53  ;;  %8339 = vmatprep.subr.bf16.mxu0 %v9310_v53 }
 0xa21   : > { %8333 = vmatprep.mubr.msk.bf16.mxu1 %vm9311_vm2, %v9310_v53  ;;  %8345 = vmatprep.mubr.msk.bf16.mxu0 %vm9311_vm2, %v9310_v53 }
 0xa23   : > { %8328 = vmatpush3.bf16.msra.mxu1 %v6684_v57  ;;  %8340 = vmatpush3.bf16.msra.mxu0 %v6686_v63 }
 0xa24   : > { %8329 = vmatprep.subr.bf16.mxu1 %v9310_v53  ;;  %8341 = vmatprep.subr.bf16.mxu0 %v9310_v53 }
 0xa27   : > { %8330 = vmatpush3.bf16.msra.mxu1 %v6692_v24  ;;  %8342 = vmatpush3.bf16.msra.mxu0 %v6694_v13 }
 0xa28   : > { %8331 = vmatprep.subr.bf16.mxu1 %v9310_v53  ;;  %8343 = vmatprep.subr.bf16.mxu0 %v9310_v53 }
 0xa2b   : > { %8332 = vmatpush3.bf16.msra.mxu1 %v6700_v26  ;;  %8344 = vmatpush3.bf16.msra.mxu0 %v6702_v28 }
 0xa2c   : > { %8349 = vmatprep.subr.bf16.mxu1 %v9310_v53  ;;  %8361 = vmatprep.subr.bf16.mxu0 %v9310_v53 }
 0xa2e   : > { %8334 = vmatmul.mubr.msk.bf16.vlgmr.msra.gmra.mrb[244].mxu1 %vm5424_vm1, %v6708_v12  ;;  %8346 = vmatmul.mubr.msk.bf16.vlgmr.msra.gmra.mrb[84].mxu0 %vm5424_vm1, %v7819_v43 }
 0xa2f   : > { %8350 = vmatpush3.bf16.msra.mxu1 %v6680_v47  ;;  %8362 = vmatpush3.bf16.msra.mxu0 %v6682_v55 }
 0xa30   : > { %8351 = vmatprep.subr.bf16.mxu1 %v9310_v53  ;;  %8363 = vmatprep.subr.bf16.mxu0 %v9310_v53 }
 0xa31   : > { %8357 = vmatprep.mubr.msk.bf16.mxu1 %vm9311_vm2, %v9310_v53  ;;  %8369 = vmatprep.mubr.msk.bf16.mxu0 %vm9311_vm2, %v9310_v53 }
 0xa33   : > { %8352 = vmatpush3.bf16.msra.mxu1 %v6688_v32  ;;  %8364 = vmatpush3.bf16.msra.mxu0 %v6690_v42 }
 0xa34   : > { %8353 = vmatprep.subr.bf16.mxu1 %v9310_v53  ;;  %8365 = vmatprep.subr.bf16.mxu0 %v9310_v53 }
 0xa37   : > { %8354 = vmatpush3.bf16.msra.mxu1 %v6696_v36  ;;  %8366 = vmatpush3.bf16.msra.mxu0 %v6698_v7 }
 0xa38   : > { %8355 = vmatprep.subr.bf16.mxu1 %v9310_v53  ;;  %8367 = vmatprep.subr.bf16.mxu0 %v9310_v53 }
 0xa3b   : > { %8356 = vmatpush3.bf16.msra.mxu1 %v6704_v19  ;;  %8368 = vmatpush3.bf16.msra.mxu0 %v6706_v61 }
 0xa3e   : > { %8358 = vmatmul.mubr.msk.bf16.vlgmr.msra.gmra.mrb[248].mxu1 %vm5424_vm1, %v7822_v59  ;;  %8370 = vmatmul.mubr.msk.bf16.vlgmr.msra.gmra.mrb[88].mxu0 %vm5424_vm1, %v7825_v8 }
 0xad1   : > { %v6748_v6 = vpop.f32.mrb[72].mxu0 }
 0xad2   : > { %v8287_v2 = vpop.f32.mrb[73].mxu0 }
 0xad3   : > { %v6751_v52 = vpop.f32.mrb[74].mxu0 }
 0xad4   : > { %v8288_v33 = vpop.f32.mrb[75].mxu0 }
 0xae1   : > { %v6795_v31 = vpop.f32.mrb[76].mxu0 }
 0xae2   : > { %v8299_v53 = vpop.f32.mrb[77].mxu0 }
 0xae3   : > { %v6798_v15 = vpop.f32.mrb[78].mxu0 }
 0xae4   : > { %v8300_v57 = vpop.f32.mrb[79].mxu0 }
 0xaf1   : > { %v6842_v63 = vpop.f32.mrb[240].mxu1  ;;  %v6889_v14 = vpop.f32.mrb[80].mxu0 }
 0xaf2   : > { %v8311_v20 = vpop.f32.mrb[241].mxu1  ;;  %v8323_v50 = vpop.f32.mrb[81].mxu0 }
 0xaf3   : > { %v6845_v56 = vpop.f32.mrb[242].mxu1  ;;  %v6892_v24 = vpop.f32.mrb[82].mxu0 }
 0xaf4   : > { %v8312_v13 = vpop.f32.mrb[243].mxu1  ;;  %v8324_v16 = vpop.f32.mrb[83].mxu0 }
 0xb01   : > { %v6932_v39 = vpop.f32.mrb[244].mxu1  ;;  %v6975_v9 = vpop.f32.mrb[84].mxu0 }
 0xb02   : > { %v6933_v18 = vadd.f32 %v6932_v39, %v6748_v6  ;;  %v6976_v26 = vadd.f32 %v6975_v9, %v6795_v31  ;;  %v8335_v28 = vpop.f32.mrb[245].mxu1  ;;  %v8347_v3 = vpop.f32.mrb[85].mxu0 }
 0xb03   : > { %v6935_v4 = vpop.f32.mrb[246].mxu1  ;;  %v6978_v25 = vpop.f32.mrb[86].mxu0 }
 0xb04   : > { %v7067_v46 = vadd.f32 %v6976_v26, %v6933_v18  ;;  %v8336_v47 = vpop.f32.mrb[247].mxu1  ;;  %v8348_v55 = vpop.f32.mrb[87].mxu0 }
 0xb11   : > { %v7018_v34 = vpop.f32.mrb[248].mxu1  ;;  %v7061_v10 = vpop.f32.mrb[88].mxu0 }
 0xb12   : > { %v7019_v62 = vadd.f32 %v7018_v34, %v6842_v63  ;;  %v7062_v17 = vadd.f32 %v7061_v10, %v6889_v14  ;;  %v8359_v32 = vpop.f32.mrb[249].mxu1  ;;  %v8371_v42 = vpop.f32.mrb[89].mxu0 }
 0xb13   : > { %v7021_v60 = vpop.f32.mrb[250].mxu1  ;;  %v7064_v44 = vpop.f32.mrb[90].mxu0 }
 0xb14   : > { %v7068_v0 = vadd.f32 %v7062_v17, %v7019_v62  ;;  %v8360_v27 = vpop.f32.mrb[251].mxu1  ;;  %v8372_v11 = vpop.f32.mrb[91].mxu0 }
 0xb16   : > { %v7069_v37 = vadd.f32 %v7068_v0, %v7067_v46 }
 0xb18   : > { %v7077_v36 = vadd.f32 %v7832_v29, %v7069_v37 }
 0xb1a   : > { %7078 = vst [vmem:[%s434_s24] sm:$0xff] %v7077_v36 }
 0xb1b   : > { %9258 = shalt.err (!%p9255_p3)
}
 0xb1c   : > { %s9259_s27 = scalar_lea.hbm %s11933_s17, 128  ;;  %s9263_s24 = scalar_lea.hbm %s11988_s13, 256 }
 0xb1d   : > { %p9260_p4 = scmp.ne.s32.totalorder %s11933_s17, %s9259_s27  ;;  %p9264_p9 = scmp.lt.u32.totalorder %s11933_s17, %s11988_s13 }
 0xb1e   : > { %p9265_p10 = scmp.lt.u32.totalorder %s9263_s24, %s9259_s27  ;;  %p9267_p12 = scmp.lt.u32.totalorder %s9259_s27, %s11933_s17 }
 0xb1f   : > { %p9261_p7 = pnand %p9260_p4, %p9421_p5 }
 0xb20   : > { %p9266_p11 = por %p9265_p10, %p9264_p9 }
 0xb21   : > { %p9262_p8 = pneg %p9261_p7 }
 0xb22   : > { %p9268_p13 = por %p9267_p12, %p9266_p11 }
 0xb24   : > { %p9269_p0 = pnand %p9268_p13, %p9262_p8 }
 0xb26   : > { %9272 = shalt.err (!%p9269_p0)
}
 0xb27   : > { %8565 = dma.vmem_to_hbm [thread:$0]  (%p9421_p5), %s11935_s22, 128, %s11933_s17, %s7080_s19  }
 0xb28 PF: > { %p8571_p1 = scmp.ge.s32.totalorder %s9307_s28, 2  ;;  %s7105_s29 = sand.u32 1, %s9295_s25  }
 0xb29   : > { %s7106_s16 = scalar_lea.sflag [#allocation3], %s7105_s29 }
 0xb2a   : > { %p8568_p2 = pnand %p8571_p1, %p9425_p6 }
 0xb2c   : > { %9290 = dma.done.wait (!%p8568_p2), %s7106_s16, 128  }
 0xb2d   : > { %9292 = vsyncadd (!%p8568_p2), %s7106_s16, 4294967168  ;;  %s12318_s28 = sld [smem:[#allocation6_spill]]  ;;  %s12319_s30 = sld [smem:[#allocation5_spill]] }
 0xb2e   : > { %s12320_s27 = sld [smem:[#allocation7_spill]]  ;;  %s12321_s25 = smov %s9299_s26 }
 0xb33   : > { %p23_p3 = scmp.ge.s32.totalorder %s12318_s28, 4   ;;  %s12322_s26 = smov %s12319_s30 }
 0xb35   :  { %25 = sbr.rel (!%p23_p3) target bundleno = 3 (0x3), region = 126 }
 0xb3c   :  { %7111 = vsyncpa [#allocation3], 1 }
 0xb3d   :  { %7113 = vsyncpa [#allocation3 + $0x1], 1 }

</bundles_post_ra>
